<compile_context>
chip_gen: v6e
topology: v6e:2x2x1
jax: 0.10.0
libtpu: 0.0.40
codegen_flags: <defaults>
</compile_context>

<pallas_src>
import functools

import jax
import jax.numpy as jnp
from jax import lax
from jax.experimental import pallas as pl
from jax.experimental.pallas import tpu as pltpu


# --------------------------------------------------------------------------
# In-kernel helpers (operate on values, traced inline into the fused kernels)
# --------------------------------------------------------------------------

def _add_ln(x2, r2, g, b, eps=1e-5):
    """LayerNorm(x + r) with affine params (torch nn.LayerNorm semantics)."""
    y = x2 + r2
    mean = jnp.mean(y, axis=-1, keepdims=True)
    var = jnp.mean(jnp.square(y - mean), axis=-1, keepdims=True)
    return (y - mean) * lax.rsqrt(var + eps) * g + b


def _ffn(x2, w1, b1, w2, b2):
    """Linear -> ReLU -> Linear, weights in (in, out) layout."""
    h = jnp.dot(x2, w1, preferred_element_type=jnp.float32) + b1
    h = jnp.maximum(h, 0.0)
    return jnp.dot(h, w2, preferred_element_type=jnp.float32) + b2


def _attention(q2, k2, v2, n, lq, lk, keep2, causal, heads, wq, wk, wv, wo, bo):
    """SelfAttention module of the reference.

    q2: (n*lq, E), k2/v2: (n*lk, E).  wq/wk/wv are block-diagonal (E,E) matrices
    in (in, out) layout (single matmul projects all heads).  wo is (E,E) in
    (in, out) layout.  Returns (n*lq, E).
    """
    e = q2.shape[-1]
    d = e // heads
    scale = 1.0 / (float(e) ** 0.5)          # softmax(energy / sqrt(embed_size))
    neg = jnp.float32(-1e20)

    qp = jnp.dot(q2, wq, preferred_element_type=jnp.float32).reshape(n, lq, e)
    kp = jnp.dot(k2, wk, preferred_element_type=jnp.float32).reshape(n, lk, e)
    vp = jnp.dot(v2, wv, preferred_element_type=jnp.float32).reshape(n, lk, e)

    if causal:
        row = lax.broadcasted_iota(jnp.int32, (lq, lk), 0)
        col = lax.broadcasted_iota(jnp.int32, (lq, lk), 1)
        keep_b = (col <= row)[None, :, :]              # (1, lq, lk)
    else:
        keep_b = (keep2 != 0.0)[:, None, :]            # (n, 1, lk)

    ctx = []
    for h in range(heads):                             # tiny static loop over heads
        s = slice(h * d, (h + 1) * d)
        sc = jnp.einsum('nqd,nkd->nqk', qp[:, :, s], kp[:, :, s],
                        preferred_element_type=jnp.float32)
        sc = jnp.where(keep_b, sc, neg) * scale        # masked_fill then / sqrt(E)
        m = jnp.max(sc, axis=-1, keepdims=True)
        p = jnp.exp(sc - m)
        p = p * pl.reciprocal(jnp.sum(p, axis=-1, keepdims=True), approx=True)
        ctx.append(jnp.einsum('nqk,nkd->nqd', p, vp[:, :, s],
                              preferred_element_type=jnp.float32))
    concat = jnp.concatenate(ctx, axis=-1).reshape(n * lq, e)
    return jnp.dot(concat, wo, preferred_element_type=jnp.float32) + bo


# --------------------------------------------------------------------------
# Fused Pallas kernels
# --------------------------------------------------------------------------

def _encoder_block_kernel(x_ref, keep_ref,
                          wq_ref, wk_ref, wv_ref, wo_ref, bo_ref,
                          ln1g_ref, ln1b_ref,
                          w1_ref, b1_ref, w2_ref, b2_ref,
                          ln2g_ref, ln2b_ref,
                          out_ref, *, heads):
    """Full TransformerBlock: attn + add&LN + FFN + add&LN, whole batch."""
    n, l, e = x_ref.shape
    x2 = x_ref[...].reshape(n * l, e)
    attn = _attention(x2, x2, x2, n, l, l, keep_ref[...], False, heads,
                      wq_ref[...], wk_ref[...], wv_ref[...], wo_ref[...],
                      bo_ref[...])
    h = _add_ln(attn, x2, ln1g_ref[...], ln1b_ref[...])
    ff = _ffn(h, w1_ref[...], b1_ref[...], w2_ref[...], b2_ref[...])
    out2 = _add_ln(ff, h, ln2g_ref[...], ln2b_ref[...])
    out_ref[...] = out2.reshape(n, l, e)


def _decoder_block_kernel(x_ref, enc_ref, keep_ref,
                          swq_ref, swk_ref, swv_ref, swo_ref, sbo_ref,
                          slng_ref, slnb_ref,
                          cwq_ref, cwk_ref, cwv_ref, cwo_ref, cbo_ref,
                          ln1g_ref, ln1b_ref,
                          w1_ref, b1_ref, w2_ref, b2_ref,
                          ln2g_ref, ln2b_ref,
                          out_ref, *, heads):
    """Full DecoderBlock: causal self-attn + add&LN, then cross-attn block."""
    n, lt, e = x_ref.shape
    ls = enc_ref.shape[1]
    x2 = x_ref[...].reshape(n * lt, e)
    enc2 = enc_ref[...].reshape(n * ls, e)

    # masked (causal) self-attention + add & norm
    sa = _attention(x2, x2, x2, n, lt, lt, None, True, heads,
                    swq_ref[...], swk_ref[...], swv_ref[...], swo_ref[...],
                    sbo_ref[...])
    q2 = _add_ln(sa, x2, slng_ref[...], slnb_ref[...])

    # cross-attention TransformerBlock (keys/values = encoder output)
    ca = _attention(q2, enc2, enc2, n, lt, ls, keep_ref[...], False, heads,
                    cwq_ref[...], cwk_ref[...], cwv_ref[...], cwo_ref[...],
                    cbo_ref[...])
    h = _add_ln(ca, q2, ln1g_ref[...], ln1b_ref[...])
    ff = _ffn(h, w1_ref[...], b1_ref[...], w2_ref[...], b2_ref[...])
    out2 = _add_ln(ff, h, ln2g_ref[...], ln2b_ref[...])
    out_ref[...] = out2.reshape(n, lt, e)


def _linear_kernel(x_ref, w_ref, b_ref, out_ref):
    """Final vocab projection; vocab dim is pre-padded to a lane-dense width."""
    n, l, e = x_ref.shape
    v = w_ref.shape[-1]
    x2 = x_ref[...].reshape(n * l, e)
    y = jnp.dot(x2, w_ref[...], preferred_element_type=jnp.float32) + b_ref[...]
    out_ref[...] = y.reshape(n, l, v)


# --------------------------------------------------------------------------
# pallas_call wrappers (no grid: whole problem in VMEM, one invocation)
# --------------------------------------------------------------------------

def _vmem_spec():
    return pl.BlockSpec(memory_space=pltpu.MemorySpace.VMEM)


def _call(kernel, out_shape, *args):
    return pl.pallas_call(
        kernel,
        out_shape=out_shape,
        in_specs=[_vmem_spec() for _ in args],
        out_specs=_vmem_spec(),
    )(*args)


def encoder_block(x, src_keep, p, heads):
    kernel = functools.partial(_encoder_block_kernel, heads=heads)
    args = (x, src_keep,
            p["wq"], p["wk"], p["wv"], p["wo"], p["bo"],
            p["ln1_g"], p["ln1_b"],
            p["ff_w1"], p["ff_b1"], p["ff_w2"], p["ff_b2"],
            p["ln2_g"], p["ln2_b"])
    return _call(kernel, jax.ShapeDtypeStruct(x.shape, jnp.float32), *args)


def decoder_block(x, enc_out, src_keep, p, heads):
    kernel = functools.partial(_decoder_block_kernel, heads=heads)
    a = p["attn"]
    tb = p["tb"]
    args = (x, enc_out, src_keep,
            a["wq"], a["wk"], a["wv"], a["wo"], a["bo"],
            p["ln_g"], p["ln_b"],
            tb["wq"], tb["wk"], tb["wv"], tb["wo"], tb["bo"],
            tb["ln1_g"], tb["ln1_b"],
            tb["ff_w1"], tb["ff_b1"], tb["ff_w2"], tb["ff_b2"],
            tb["ln2_g"], tb["ln2_b"])
    return _call(kernel, jax.ShapeDtypeStruct(x.shape, jnp.float32), *args)


def output_projection(x, w, b):
    n, l, _ = x.shape
    v = w.shape[1]
    return _call(_linear_kernel, jax.ShapeDtypeStruct((n, l, v), jnp.float32),
                 x, w, b)


# --------------------------------------------------------------------------
# Model assembly (embedding lookups are plain-JAX glue; dropout=0 -> identity)
# --------------------------------------------------------------------------

def transformer_forward(src, trg, params, *, src_pad_idx, heads):
    src_keep = (src != src_pad_idx).astype(jnp.float32)        # (N, Ls)

    # ----- encoder -----
    Ls = src.shape[1]
    enc_p = params["enc"]
    x = enc_p["word_emb"][src] + enc_p["pos_emb"][jnp.arange(Ls)][None, :, :]
    for lp in enc_p["layers"]:
        x = encoder_block(x, src_keep, lp, heads)
    enc_out = x

    # ----- decoder -----
    Lt = trg.shape[1]
    dec_p = params["dec"]
    y = dec_p["word_emb"][trg] + dec_p["pos_emb"][jnp.arange(Lt)][None, :, :]
    for lp in dec_p["layers"]:
        y = decoder_block(y, enc_out, src_keep, lp, heads)

    # returns lane-dense padded logits; pad is sliced off by the caller
    return output_projection(y, dec_p["fc_w"], dec_p["fc_b"])


# --------------------------------------------------------------------------
# Deterministic parameter initialization (kernel-ready layouts)
# --------------------------------------------------------------------------

def init_params(key, src_vocab, trg_vocab, E, H, n_layers, ff_exp, max_len):
    keys = iter(jax.random.split(key, 1024))
    D = E // H
    eye_h = jnp.eye(H, dtype=jnp.float32)
    vpad = ((trg_vocab + 127) // 128) * 128

    def nrm(shape, scale=0.05):
        return (scale * jax.random.normal(next(keys), shape)).astype(jnp.float32)

    def attn_params():
        # per-head (D, D) torch weights (out, in), shared across heads as in the
        # reference; expanded to block-diagonal (E, E) in (in, out) layout.
        wq, wk, wv = nrm((D, D)), nrm((D, D)), nrm((D, D))
        wo = nrm((E, E))                                  # torch (out, in)
        return dict(wq=jnp.kron(eye_h, wq.T),
                    wk=jnp.kron(eye_h, wk.T),
                    wv=jnp.kron(eye_h, wv.T),
                    wo=wo.T,                              # (in, out)
                    bo=jnp.zeros((1, E), jnp.float32))

    def tb_params():
        p = attn_params()
        p.update(ln1_g=jnp.ones((1, E), jnp.float32),
                 ln1_b=jnp.zeros((1, E), jnp.float32),
                 ln2_g=jnp.ones((1, E), jnp.float32),
                 ln2_b=jnp.zeros((1, E), jnp.float32),
                 ff_w1=nrm((E, ff_exp * E)),              # (in, out)
                 ff_b1=jnp.zeros((1, ff_exp * E), jnp.float32),
                 ff_w2=nrm((ff_exp * E, E)),              # (in, out)
                 ff_b2=jnp.zeros((1, E), jnp.float32))
        return p

    def db_params():
        return dict(attn=attn_params(),
                    ln_g=jnp.ones((1, E), jnp.float32),
                    ln_b=jnp.zeros((1, E), jnp.float32),
                    tb=tb_params())

    fc_w = jnp.pad(nrm((E, trg_vocab)), ((0, 0), (0, vpad - trg_vocab)))
    fc_b = jnp.zeros((1, vpad), jnp.float32)

    enc = dict(word_emb=nrm((src_vocab, E), 1.0),
               pos_emb=nrm((max_len, E), 1.0),
               layers=[tb_params() for _ in range(n_layers)])
    dec = dict(word_emb=nrm((trg_vocab, E), 1.0),
               pos_emb=nrm((max_len, E), 1.0),
               layers=[db_params() for _ in range(n_layers)],
               fc_w=fc_w, fc_b=fc_b)
    return dict(enc=enc, dec=dec)


# --------------------------------------------------------------------------
# Main
# --------------------------------------------------------------------------

if __name__ == "__main__":
    key = jax.random.PRNGKey(0)
    src_vocab, trg_vocab = 50, 50
    src_pad_idx = 0
    embed_size, heads, num_layers, forward_expansion, max_length = 32, 4, 2, 4, 16
    N, src_len, trg_len = 2, 8, 8

    k_src, k_trg, k_param = jax.random.split(key, 3)
    src = jax.random.randint(k_src, (N, src_len), 1, src_vocab)
    trg = jax.random.randint(k_trg, (N, trg_len), 1, trg_vocab)
    # a couple of pad tokens so the src mask actually does something
    src = src.at[0, -2:].set(src_pad_idx)

    params = init_params(k_param, src_vocab, trg_vocab, embed_size, heads,
                         num_layers, forward_expansion, max_length)

    fwd = jax.jit(functools.partial(transformer_forward,
                                    src_pad_idx=src_pad_idx, heads=heads))
    out_padded = jax.block_until_ready(fwd(src, trg, params))
    out = out_padded[:, :, :trg_vocab]          # strip lane padding of vocab dim

    assert out.shape == (N, trg_len, trg_vocab), out.shape
    assert bool(jnp.all(jnp.isfinite(out)))
    print("KERNEL_OK")
</pallas_src>

<mosaic_0001>
module attributes {stable_mosaic.version = 11 : i64} {
  func.func @_linear_kernel(%arg0: memref<2x8x32xf32, #tpu.memory_space<vmem>>, %arg1: memref<32x128xf32, #tpu.memory_space<vmem>>, %arg2: memref<1x128xf32, #tpu.memory_space<vmem>>, %arg3: memref<2x8x128xf32, #tpu.memory_space<vmem>>) attributes {dimension_semantics = [], scalar_prefetch = 0 : i64, scratch_operands = 0 : i64, tpu.core_type = #tpu.core_type<tc>} {
    %c0 = arith.constant 0 : index
    %c0_0 = arith.constant 0 : index
    %c0_1 = arith.constant 0 : index
    %0 = vector.load %arg0[%c0, %c0_0, %c0_1] : memref<2x8x32xf32, #tpu.memory_space<vmem>>, vector<2x8x32xf32>
    %1 = vector.shape_cast %0 : vector<2x8x32xf32> to vector<16x32xf32>
    %c0_2 = arith.constant 0 : index
    %c0_3 = arith.constant 0 : index
    %2 = vector.load %arg1[%c0_2, %c0_3] : memref<32x128xf32, #tpu.memory_space<vmem>>, vector<32x128xf32>
    %cst = arith.constant dense<0.000000e+00> : vector<16x128xf32>
    %3 = tpu.matmul %1, %2, %cst {dimension_numbers = #tpu.dot_dimension_numbers<[1], [0], [0], [1], [0, 0, 1, 1], [], []>} : vector<16x32xf32>, vector<32x128xf32>, vector<16x128xf32> -> vector<16x128xf32>
    %c0_4 = arith.constant 0 : index
    %c0_5 = arith.constant 0 : index
    %4 = vector.load %arg2[%c0_4, %c0_5] : memref<1x128xf32, #tpu.memory_space<vmem>>, vector<1x128xf32>
    %5 = vector.broadcast %4 : vector<1x128xf32> to vector<16x128xf32>
    %6 = arith.addf %3, %5 : vector<16x128xf32>
    %7 = vector.shape_cast %6 : vector<16x128xf32> to vector<2x8x128xf32>
    %c0_6 = arith.constant 0 : index
    %c0_7 = arith.constant 0 : index
    %c0_8 = arith.constant 0 : index
    %8 = vector.load %arg3[%c0_6, %c0_7, %c0_8] : memref<2x8x128xf32, #tpu.memory_space<vmem>>, vector<2x8x128xf32>
    tpu.vector_store %arg3[%c0_6, %c0_7, %c0_8], %7 {strides = array<i32>} : memref<2x8x128xf32, #tpu.memory_space<vmem>>, vector<2x8x128xf32>,
    return
  }
}

module attributes {stable_mosaic.version = 11 : i64} {
  func.func @_encoder_block_kernel(%arg0: memref<2x8x32xf32, #tpu.memory_space<vmem>>, %arg1: memref<2x8xf32, #tpu.memory_space<vmem>>, %arg2: memref<32x32xf32, #tpu.memory_space<vmem>>, %arg3: memref<32x32xf32, #tpu.memory_space<vmem>>, %arg4: memref<32x32xf32, #tpu.memory_space<vmem>>, %arg5: memref<32x32xf32, #tpu.memory_space<vmem>>, %arg6: memref<1x32xf32, #tpu.memory_space<vmem>>, %arg7: memref<1x32xf32, #tpu.memory_space<vmem>>, %arg8: memref<1x32xf32, #tpu.memory_space<vmem>>, %arg9: memref<32x128xf32, #tpu.memory_space<vmem>>, %arg10: memref<1x128xf32, #tpu.memory_space<vmem>>, %arg11: memref<128x32xf32, #tpu.memory_space<vmem>>, %arg12: memref<1x32xf32, #tpu.memory_space<vmem>>, %arg13: memref<1x32xf32, #tpu.memory_space<vmem>>, %arg14: memref<1x32xf32, #tpu.memory_space<vmem>>, %arg15: memref<2x8x32xf32, #tpu.memory_space<vmem>>) attributes {dimension_semantics = [], scalar_prefetch = 0 : i64, scratch_operands = 0 : i64, tpu.core_type = #tpu.core_type<tc>} {
    %c0 = arith.constant 0 : index
    %c0_0 = arith.constant 0 : index
    %c0_1 = arith.constant 0 : index
    %0 = vector.load %arg0[%c0, %c0_0, %c0_1] : memref<2x8x32xf32, #tpu.memory_space<vmem>>, vector<2x8x32xf32>
    %1 = vector.shape_cast %0 : vector<2x8x32xf32> to vector<16x32xf32>
    %c0_2 = arith.constant 0 : index
    %c0_3 = arith.constant 0 : index
    %2 = vector.load %arg1[%c0_2, %c0_3] : memref<2x8xf32, #tpu.memory_space<vmem>>, vector<2x8xf32>
    %c0_4 = arith.constant 0 : index
    %c0_5 = arith.constant 0 : index
    %3 = vector.load %arg2[%c0_4, %c0_5] : memref<32x32xf32, #tpu.memory_space<vmem>>, vector<32x32xf32>
    %c0_6 = arith.constant 0 : index
    %c0_7 = arith.constant 0 : index
    %4 = vector.load %arg3[%c0_6, %c0_7] : memref<32x32xf32, #tpu.memory_space<vmem>>, vector<32x32xf32>
    %c0_8 = arith.constant 0 : index
    %c0_9 = arith.constant 0 : index
    %5 = vector.load %arg4[%c0_8, %c0_9] : memref<32x32xf32, #tpu.memory_space<vmem>>, vector<32x32xf32>
    %c0_10 = arith.constant 0 : index
    %c0_11 = arith.constant 0 : index
    %6 = vector.load %arg5[%c0_10, %c0_11] : memref<32x32xf32, #tpu.memory_space<vmem>>, vector<32x32xf32>
    %c0_12 = arith.constant 0 : index
    %c0_13 = arith.constant 0 : index
    %7 = vector.load %arg6[%c0_12, %c0_13] : memref<1x32xf32, #tpu.memory_space<vmem>>, vector<1x32xf32>
    %cst = arith.constant dense<0.000000e+00> : vector<16x32xf32>
    %8 = tpu.matmul %1, %3, %cst {dimension_numbers = #tpu.dot_dimension_numbers<[1], [0], [0], [1], [0, 0, 1, 1], [], []>} : vector<16x32xf32>, vector<32x32xf32>, vector<16x32xf32> -> vector<16x32xf32>
    %9 = vector.shape_cast %8 : vector<16x32xf32> to vector<2x8x32xf32>
    %cst_14 = arith.constant dense<0.000000e+00> : vector<16x32xf32>
    %10 = tpu.matmul %1, %4, %cst_14 {dimension_numbers = #tpu.dot_dimension_numbers<[1], [0], [0], [1], [0, 0, 1, 1], [], []>} : vector<16x32xf32>, vector<32x32xf32>, vector<16x32xf32> -> vector<16x32xf32>
    %11 = vector.shape_cast %10 : vector<16x32xf32> to vector<2x8x32xf32>
    %cst_15 = arith.constant dense<0.000000e+00> : vector<16x32xf32>
    %12 = tpu.matmul %1, %5, %cst_15 {dimension_numbers = #tpu.dot_dimension_numbers<[1], [0], [0], [1], [0, 0, 1, 1], [], []>} : vector<16x32xf32>, vector<32x32xf32>, vector<16x32xf32> -> vector<16x32xf32>
    %13 = vector.shape_cast %12 : vector<16x32xf32> to vector<2x8x32xf32>
    %cst_16 = arith.constant 0.000000e+00 : f32
    %14 = vector.broadcast %cst_16 : f32 to vector<2x8xf32>
    %15 = arith.cmpf one, %2, %14 : vector<2x8xf32>
    %16 = vector.shape_cast %15 : vector<2x8xi1> to vector<2x1x8xi1>
    %17 = vector.extract_strided_slice %9 {offsets = [0, 0, 0], sizes = [2, 8, 8], strides = [1, 1, 1]} : vector<2x8x32xf32> to vector<2x8x8xf32>
    %18 = vector.extract_strided_slice %11 {offsets = [0, 0, 0], sizes = [2, 8, 8], strides = [1, 1, 1]} : vector<2x8x32xf32> to vector<2x8x8xf32>
    "tpu.trace_start"() <{level = 10 : i32, message = "nqd,nkd->nqk"}> : () -> ()
    %cst_17 = arith.constant dense<0.000000e+00> : vector<2x8x8xf32>
    %19 = tpu.matmul %17, %18, %cst_17 {dimension_numbers = #tpu.dot_dimension_numbers<[2], [2], [1], [1], [0, 0, 0, 1, 1, 1], [0], [0]>} : vector<2x8x8xf32>, vector<2x8x8xf32>, vector<2x8x8xf32> -> vector<2x8x8xf32>
    %cst_18 = arith.constant -1.000000e+20 : f32
    "tpu.trace_stop"() : () -> ()
    %20 = vector.shape_cast %16 : vector<2x1x8xi1> to vector<2x1x8xi1>
    %21 = vector.broadcast %20 : vector<2x1x8xi1> to vector<2x8x8xi1>
    %22 = vector.broadcast %cst_18 : f32 to vector<2x8x8xf32>
    %23 = arith.select %21, %19, %22 : vector<2x8x8xi1>, vector<2x8x8xf32>
    %cst_19 = arith.constant 0.176776692 : f32
    %24 = vector.broadcast %cst_19 : f32 to vector<2x8x8xf32>
    %25 = arith.mulf %23, %24 : vector<2x8x8xf32>
    %cst_20 = arith.constant dense<0xFF800000> : vector<2x8xf32>
    %26 = vector.multi_reduction <maximumf>, %25, %cst_20 [2] : vector<2x8x8xf32> to vector<2x8xf32>
    %27 = vector.shape_cast %26 : vector<2x8xf32> to vector<2x8x1xf32>
    %28 = vector.broadcast %27 : vector<2x8x1xf32> to vector<2x8x8xf32>
    %29 = arith.subf %25, %28 : vector<2x8x8xf32>
    %30 = math.exp %29 : vector<2x8x8xf32>
    %cst_21 = arith.constant dense<0.000000e+00> : vector<2x8xf32>
    %31 = vector.multi_reduction <add>, %30, %cst_21 [2] : vector<2x8x8xf32> to vector<2x8xf32>
    %32 = vector.shape_cast %31 : vector<2x8xf32> to vector<2x8x1xf32>
    %33 = tpu.reciprocal %32 {approx = true} : vector<2x8x1xf32> -> vector<2x8x1xf32>
    %34 = vector.broadcast %33 : vector<2x8x1xf32> to vector<2x8x8xf32>
    %35 = arith.mulf %30, %34 : vector<2x8x8xf32>
    %36 = vector.extract_strided_slice %13 {offsets = [0, 0, 0], sizes = [2, 8, 8], strides = [1, 1, 1]} : vector<2x8x32xf32> to vector<2x8x8xf32>
    "tpu.trace_start"() <{level = 10 : i32, message = "nqk,nkd->nqd"}> : () -> ()
    %cst_22 = arith.constant dense<0.000000e+00> : vector<2x8x8xf32>
    %37 = tpu.matmul %35, %36, %cst_22 {dimension_numbers = #tpu.dot_dimension_numbers<[2], [1], [1], [2], [0, 0, 0, 1, 1, 2], [0], [0]>} : vector<2x8x8xf32>, vector<2x8x8xf32>, vector<2x8x8xf32> -> vector<2x8x8xf32>
    "tpu.trace_stop"() : () -> ()
    %38 = vector.extract_strided_slice %9 {offsets = [0, 0, 8], sizes = [2, 8, 8], strides = [1, 1, 1]} : vector<2x8x32xf32> to vector<2x8x8xf32>
    %39 = vector.extract_strided_slice %11 {offsets = [0, 0, 8], sizes = [2, 8, 8], strides = [1, 1, 1]} : vector<2x8x32xf32> to vector<2x8x8xf32>
    "tpu.trace_start"() <{level = 10 : i32, message = "nqd,nkd->nqk"}> : () -> ()
    %cst_23 = arith.constant dense<0.000000e+00> : vector<2x8x8xf32>
    %40 = tpu.matmul %38, %39, %cst_23 {dimension_numbers = #tpu.dot_dimension_numbers<[2], [2], [1], [1], [0, 0, 0, 1, 1, 1], [0], [0]>} : vector<2x8x8xf32>, vector<2x8x8xf32>, vector<2x8x8xf32> -> vector<2x8x8xf32>
    %cst_24 = arith.constant -1.000000e+20 : f32
    "tpu.trace_stop"() : () -> ()
    %41 = vector.shape_cast %16 : vector<2x1x8xi1> to vector<2x1x8xi1>
    %42 = vector.broadcast %41 : vector<2x1x8xi1> to vector<2x8x8xi1>
    %43 = vector.broadcast %cst_24 : f32 to vector<2x8x8xf32>
    %44 = arith.select %42, %40, %43 : vector<2x8x8xi1>, vector<2x8x8xf32>
    %cst_25 = arith.constant 0.176776692 : f32
    %45 = vector.broadcast %cst_25 : f32 to vector<2x8x8xf32>
    %46 = arith.mulf %44, %45 : vector<2x8x8xf32>
    %cst_26 = arith.constant dense<0xFF800000> : vector<2x8xf32>
    %47 = vector.multi_reduction <maximumf>, %46, %cst_26 [2] : vector<2x8x8xf32> to vector<2x8xf32>
    %48 = vector.shape_cast %47 : vector<2x8xf32> to vector<2x8x1xf32>
    %49 = vector.broadcast %48 : vector<2x8x1xf32> to vector<2x8x8xf32>
    %50 = arith.subf %46, %49 : vector<2x8x8xf32>
    %51 = math.exp %50 : vector<2x8x8xf32>
    %cst_27 = arith.constant dense<0.000000e+00> : vector<2x8xf32>
    %52 = vector.multi_reduction <add>, %51, %cst_27 [2] : vector<2x8x8xf32> to vector<2x8xf32>
    %53 = vector.shape_cast %52 : vector<2x8xf32> to vector<2x8x1xf32>
    %54 = tpu.reciprocal %53 {approx = true} : vector<2x8x1xf32> -> vector<2x8x1xf32>
    %55 = vector.broadcast %54 : vector<2x8x1xf32> to vector<2x8x8xf32>
    %56 = arith.mulf %51, %55 : vector<2x8x8xf32>
    %57 = vector.extract_strided_slice %13 {offsets = [0, 0, 8], sizes = [2, 8, 8], strides = [1, 1, 1]} : vector<2x8x32xf32> to vector<2x8x8xf32>
    "tpu.trace_start"() <{level = 10 : i32, message = "nqk,nkd->nqd"}> : () -> ()
    %cst_28 = arith.constant dense<0.000000e+00> : vector<2x8x8xf32>
    %58 = tpu.matmul %56, %57, %cst_28 {dimension_numbers = #tpu.dot_dimension_numbers<[2], [1], [1], [2], [0, 0, 0, 1, 1, 2], [0], [0]>} : vector<2x8x8xf32>, vector<2x8x8xf32>, vector<2x8x8xf32> -> vector<2x8x8xf32>
    "tpu.trace_stop"() : () -> ()
    %59 = vector.extract_strided_slice %9 {offsets = [0, 0, 16], sizes = [2, 8, 8], strides = [1, 1, 1]} : vector<2x8x32xf32> to vector<2x8x8xf32>
    %60 = vector.extract_strided_slice %11 {offsets = [0, 0, 16], sizes = [2, 8, 8], strides = [1, 1, 1]} : vector<2x8x32xf32> to vector<2x8x8xf32>
    "tpu.trace_start"() <{level = 10 : i32, message = "nqd,nkd->nqk"}> : () -> ()
    %cst_29 = arith.constant dense<0.000000e+00> : vector<2x8x8xf32>
    %61 = tpu.matmul %59, %60, %cst_29 {dimension_numbers = #tpu.dot_dimension_numbers<[2], [2], [1], [1], [0, 0, 0, 1, 1, 1], [0], [0]>} : vector<2x8x8xf32>, vector<2x8x8xf32>, vector<2x8x8xf32> -> vector<2x8x8xf32>
    %cst_30 = arith.constant -1.000000e+20 : f32
    "tpu.trace_stop"() : () -> ()
    %62 = vector.shape_cast %16 : vector<2x1x8xi1> to vector<2x1x8xi1>
    %63 = vector.broadcast %62 : vector<2x1x8xi1> to vector<2x8x8xi1>
    %64 = vector.broadcast %cst_30 : f32 to vector<2x8x8xf32>
    %65 = arith.select %63, %61, %64 : vector<2x8x8xi1>, vector<2x8x8xf32>
    %cst_31 = arith.constant 0.176776692 : f32
    %66 = vector.broadcast %cst_31 : f32 to vector<2x8x8xf32>
    %67 = arith.mulf %65, %66 : vector<2x8x8xf32>
    %cst_32 = arith.constant dense<0xFF800000> : vector<2x8xf32>
    %68 = vector.multi_reduction <maximumf>, %67, %cst_32 [2] : vector<2x8x8xf32> to vector<2x8xf32>
    %69 = vector.shape_cast %68 : vector<2x8xf32> to vector<2x8x1xf32>
    %70 = vector.broadcast %69 : vector<2x8x1xf32> to vector<2x8x8xf32>
    %71 = arith.subf %67, %70 : vector<2x8x8xf32>
    %72 = math.exp %71 : vector<2x8x8xf32>
    %cst_33 = arith.constant dense<0.000000e+00> : vector<2x8xf32>
    %73 = vector.multi_reduction <add>, %72, %cst_33 [2] : vector<2x8x8xf32> to vector<2x8xf32>
    %74 = vector.shape_cast %73 : vector<2x8xf32> to vector<2x8x1xf32>
    %75 = tpu.reciprocal %74 {approx = true} : vector<2x8x1xf32> -> vector<2x8x1xf32>
    %76 = vector.broadcast %75 : vector<2x8x1xf32> to vector<2x8x8xf32>
    %77 = arith.mulf %72, %76 : vector<2x8x8xf32>
    %78 = vector.extract_strided_slice %13 {offsets = [0, 0, 16], sizes = [2, 8, 8], strides = [1, 1, 1]} : vector<2x8x32xf32> to vector<2x8x8xf32>
    "tpu.trace_start"() <{level = 10 : i32, message = "nqk,nkd->nqd"}> : () -> ()
    %cst_34 = arith.constant dense<0.000000e+00> : vector<2x8x8xf32>
    %79 = tpu.matmul %77, %78, %cst_34 {dimension_numbers = #tpu.dot_dimension_numbers<[2], [1], [1], [2], [0, 0, 0, 1, 1, 2], [0], [0]>} : vector<2x8x8xf32>, vector<2x8x8xf32>, vector<2x8x8xf32> -> vector<2x8x8xf32>
    "tpu.trace_stop"() : () -> ()
    %80 = vector.extract_strided_slice %9 {offsets = [0, 0, 24], sizes = [2, 8, 8], strides = [1, 1, 1]} : vector<2x8x32xf32> to vector<2x8x8xf32>
    %81 = vector.extract_strided_slice %11 {offsets = [0, 0, 24], sizes = [2, 8, 8], strides = [1, 1, 1]} : vector<2x8x32xf32> to vector<2x8x8xf32>
    "tpu.trace_start"() <{level = 10 : i32, message = "nqd,nkd->nqk"}> : () -> ()
    %cst_35 = arith.constant dense<0.000000e+00> : vector<2x8x8xf32>
    %82 = tpu.matmul %80, %81, %cst_35 {dimension_numbers = #tpu.dot_dimension_numbers<[2], [2], [1], [1], [0, 0, 0, 1, 1, 1], [0], [0]>} : vector<2x8x8xf32>, vector<2x8x8xf32>, vector<2x8x8xf32> -> vector<2x8x8xf32>
    %cst_36 = arith.constant -1.000000e+20 : f32
    "tpu.trace_stop"() : () -> ()
    %83 = vector.shape_cast %16 : vector<2x1x8xi1> to vector<2x1x8xi1>
    %84 = vector.broadcast %83 : vector<2x1x8xi1> to vector<2x8x8xi1>
    %85 = vector.broadcast %cst_36 : f32 to vector<2x8x8xf32>
    %86 = arith.select %84, %82, %85 : vector<2x8x8xi1>, vector<2x8x8xf32>
    %cst_37 = arith.constant 0.176776692 : f32
    %87 = vector.broadcast %cst_37 : f32 to vector<2x8x8xf32>
    %88 = arith.mulf %86, %87 : vector<2x8x8xf32>
    %cst_38 = arith.constant dense<0xFF800000> : vector<2x8xf32>
    %89 = vector.multi_reduction <maximumf>, %88, %cst_38 [2] : vector<2x8x8xf32> to vector<2x8xf32>
    %90 = vector.shape_cast %89 : vector<2x8xf32> to vector<2x8x1xf32>
    %91 = vector.broadcast %90 : vector<2x8x1xf32> to vector<2x8x8xf32>
    %92 = arith.subf %88, %91 : vector<2x8x8xf32>
    %93 = math.exp %92 : vector<2x8x8xf32>
    %cst_39 = arith.constant dense<0.000000e+00> : vector<2x8xf32>
    %94 = vector.multi_reduction <add>, %93, %cst_39 [2] : vector<2x8x8xf32> to vector<2x8xf32>
    %95 = vector.shape_cast %94 : vector<2x8xf32> to vector<2x8x1xf32>
    %96 = tpu.reciprocal %95 {approx = true} : vector<2x8x1xf32> -> vector<2x8x1xf32>
    %97 = vector.broadcast %96 : vector<2x8x1xf32> to vector<2x8x8xf32>
    %98 = arith.mulf %93, %97 : vector<2x8x8xf32>
    %99 = vector.extract_strided_slice %13 {offsets = [0, 0, 24], sizes = [2, 8, 8], strides = [1, 1, 1]} : vector<2x8x32xf32> to vector<2x8x8xf32>
    "tpu.trace_start"() <{level = 10 : i32, message = "nqk,nkd->nqd"}> : () -> ()
    %cst_40 = arith.constant dense<0.000000e+00> : vector<2x8x8xf32>
    %100 = tpu.matmul %98, %99, %cst_40 {dimension_numbers = #tpu.dot_dimension_numbers<[2], [1], [1], [2], [0, 0, 0, 1, 1, 2], [0], [0]>} : vector<2x8x8xf32>, vector<2x8x8xf32>, vector<2x8x8xf32> -> vector<2x8x8xf32>
    "tpu.trace_stop"() : () -> ()
    %101 = tpu.concatenate %37, %58, %79, %100 in 2 : vector<2x8x8xf32>, vector<2x8x8xf32>, vector<2x8x8xf32>, vector<2x8x8xf32> -> vector<2x8x32xf32>
    %102 = vector.shape_cast %101 : vector<2x8x32xf32> to vector<16x32xf32>
    %cst_41 = arith.constant dense<0.000000e+00> : vector<16x32xf32>
    %103 = tpu.matmul %102, %6, %cst_41 {dimension_numbers = #tpu.dot_dimension_numbers<[1], [0], [0], [1], [0, 0, 1, 1], [], []>} : vector<16x32xf32>, vector<32x32xf32>, vector<16x32xf32> -> vector<16x32xf32>
    %104 = vector.broadcast %7 : vector<1x32xf32> to vector<16x32xf32>
    %105 = arith.addf %103, %104 : vector<16x32xf32>
    %c0_42 = arith.constant 0 : index
    %c0_43 = arith.constant 0 : index
    %106 = vector.load %arg7[%c0_42, %c0_43] : memref<1x32xf32, #tpu.memory_space<vmem>>, vector<1x32xf32>
    %c0_44 = arith.constant 0 : index
    %c0_45 = arith.constant 0 : index
    %107 = vector.load %arg8[%c0_44, %c0_45] : memref<1x32xf32, #tpu.memory_space<vmem>>, vector<1x32xf32>
    %108 = arith.addf %105, %1 : vector<16x32xf32>
    %cst_46 = arith.constant dense<0.000000e+00> : vector<16xf32>
    %109 = vector.multi_reduction <add>, %108, %cst_46 [1] : vector<16x32xf32> to vector<16xf32>
    %110 = vector.shape_cast %109 : vector<16xf32> to vector<16x1xf32>
    %cst_47 = arith.constant 3.200000e+01 : f32
    %111 = vector.broadcast %cst_47 : f32 to vector<16x1xf32>
    %112 = arith.divf %110, %111 : vector<16x1xf32>
    %113 = vector.broadcast %112 : vector<16x1xf32> to vector<16x32xf32>
    %114 = arith.subf %108, %113 : vector<16x32xf32>
    %115 = arith.mulf %114, %114 : vector<16x32xf32>
    %cst_48 = arith.constant dense<0.000000e+00> : vector<16xf32>
    %116 = vector.multi_reduction <add>, %115, %cst_48 [1] : vector<16x32xf32> to vector<16xf32>
    %117 = vector.shape_cast %116 : vector<16xf32> to vector<16x1xf32>
    %cst_49 = arith.constant 3.200000e+01 : f32
    %118 = vector.broadcast %cst_49 : f32 to vector<16x1xf32>
    %119 = arith.divf %117, %118 : vector<16x1xf32>
    %120 = vector.broadcast %112 : vector<16x1xf32> to vector<16x32xf32>
    %121 = arith.subf %108, %120 : vector<16x32xf32>
    %cst_50 = arith.constant 9.99999974E-6 : f32
    %122 = vector.broadcast %cst_50 : f32 to vector<16x1xf32>
    %123 = arith.addf %119, %122 : vector<16x1xf32>
    %124 = math.rsqrt %123 : vector<16x1xf32>
    %125 = vector.broadcast %124 : vector<16x1xf32> to vector<16x32xf32>
    %126 = arith.mulf %121, %125 : vector<16x32xf32>
    %127 = vector.broadcast %106 : vector<1x32xf32> to vector<16x32xf32>
    %128 = arith.mulf %126, %127 : vector<16x32xf32>
    %129 = vector.broadcast %107 : vector<1x32xf32> to vector<16x32xf32>
    %130 = arith.addf %128, %129 : vector<16x32xf32>
    %c0_51 = arith.constant 0 : index
    %c0_52 = arith.constant 0 : index
    %131 = vector.load %arg9[%c0_51, %c0_52] : memref<32x128xf32, #tpu.memory_space<vmem>>, vector<32x128xf32>
    %c0_53 = arith.constant 0 : index
    %c0_54 = arith.constant 0 : index
    %132 = vector.load %arg10[%c0_53, %c0_54] : memref<1x128xf32, #tpu.memory_space<vmem>>, vector<1x128xf32>
    %c0_55 = arith.constant 0 : index
    %c0_56 = arith.constant 0 : index
    %133 = vector.load %arg11[%c0_55, %c0_56] : memref<128x32xf32, #tpu.memory_space<vmem>>, vector<128x32xf32>
    %c0_57 = arith.constant 0 : index
    %c0_58 = arith.constant 0 : index
    %134 = vector.load %arg12[%c0_57, %c0_58] : memref<1x32xf32, #tpu.memory_space<vmem>>, vector<1x32xf32>
    %cst_59 = arith.constant dense<0.000000e+00> : vector<16x128xf32>
    %135 = tpu.matmul %130, %131, %cst_59 {dimension_numbers = #tpu.dot_dimension_numbers<[1], [0], [0], [1], [0, 0, 1, 1], [], []>} : vector<16x32xf32>, vector<32x128xf32>, vector<16x128xf32> -> vector<16x128xf32>
    %136 = vector.broadcast %132 : vector<1x128xf32> to vector<16x128xf32>
    %137 = arith.addf %135, %136 : vector<16x128xf32>
    %cst_60 = arith.constant 0.000000e+00 : f32
    %138 = vector.broadcast %cst_60 : f32 to vector<16x128xf32>
    %139 = arith.maximumf %137, %138 : vector<16x128xf32>
    %cst_61 = arith.constant dense<0.000000e+00> : vector<16x32xf32>
    %140 = tpu.matmul %139, %133, %cst_61 {dimension_numbers = #tpu.dot_dimension_numbers<[1], [0], [0], [1], [0, 0, 1, 1], [], []>} : vector<16x128xf32>, vector<128x32xf32>, vector<16x32xf32> -> vector<16x32xf32>
    %141 = vector.broadcast %134 : vector<1x32xf32> to vector<16x32xf32>
    %142 = arith.addf %140, %141 : vector<16x32xf32>
    %c0_62 = arith.constant 0 : index
    %c0_63 = arith.constant 0 : index
    %143 = vector.load %arg13[%c0_62, %c0_63] : memref<1x32xf32, #tpu.memory_space<vmem>>, vector<1x32xf32>
    %c0_64 = arith.constant 0 : index
    %c0_65 = arith.constant 0 : index
    %144 = vector.load %arg14[%c0_64, %c0_65] : memref<1x32xf32, #tpu.memory_space<vmem>>, vector<1x32xf32>
    %145 = arith.addf %142, %130 : vector<16x32xf32>
    %cst_66 = arith.constant dense<0.000000e+00> : vector<16xf32>
    %146 = vector.multi_reduction <add>, %145, %cst_66 [1] : vector<16x32xf32> to vector<16xf32>
    %147 = vector.shape_cast %146 : vector<16xf32> to vector<16x1xf32>
    %cst_67 = arith.constant 3.200000e+01 : f32
    %148 = vector.broadcast %cst_67 : f32 to vector<16x1xf32>
    %149 = arith.divf %147, %148 : vector<16x1xf32>
    %150 = vector.broadcast %149 : vector<16x1xf32> to vector<16x32xf32>
    %151 = arith.subf %145, %150 : vector<16x32xf32>
    %152 = arith.mulf %151, %151 : vector<16x32xf32>
    %cst_68 = arith.constant dense<0.000000e+00> : vector<16xf32>
    %153 = vector.multi_reduction <add>, %152, %cst_68 [1] : vector<16x32xf32> to vector<16xf32>
    %154 = vector.shape_cast %153 : vector<16xf32> to vector<16x1xf32>
    %cst_69 = arith.constant 3.200000e+01 : f32
    %155 = vector.broadcast %cst_69 : f32 to vector<16x1xf32>
    %156 = arith.divf %154, %155 : vector<16x1xf32>
    %157 = vector.broadcast %149 : vector<16x1xf32> to vector<16x32xf32>
    %158 = arith.subf %145, %157 : vector<16x32xf32>
    %cst_70 = arith.constant 9.99999974E-6 : f32
    %159 = vector.broadcast %cst_70 : f32 to vector<16x1xf32>
    %160 = arith.addf %156, %159 : vector<16x1xf32>
    %161 = math.rsqrt %160 : vector<16x1xf32>
    %162 = vector.broadcast %161 : vector<16x1xf32> to vector<16x32xf32>
    %163 = arith.mulf %158, %162 : vector<16x32xf32>
    %164 = vector.broadcast %143 : vector<1x32xf32> to vector<16x32xf32>
    %165 = arith.mulf %163, %164 : vector<16x32xf32>
    %166 = vector.broadcast %144 : vector<1x32xf32> to vector<16x32xf32>
    %167 = arith.addf %165, %166 : vector<16x32xf32>
    %168 = vector.shape_cast %167 : vector<16x32xf32> to vector<2x8x32xf32>
    %c0_71 = arith.constant 0 : index
    %c0_72 = arith.constant 0 : index
    %c0_73 = arith.constant 0 : index
    %169 = vector.load %arg15[%c0_71, %c0_72, %c0_73] : memref<2x8x32xf32, #tpu.memory_space<vmem>>, vector<2x8x32xf32>
    tpu.vector_store %arg15[%c0_71, %c0_72, %c0_73], %168 {strides = array<i32>} : memref<2x8x32xf32, #tpu.memory_space<vmem>>, vector<2x8x32xf32>,
    return
  }
}

module attributes {stable_mosaic.version = 11 : i64} {
  func.func @_decoder_block_kernel(%arg0: memref<2x8x32xf32, #tpu.memory_space<vmem>>, %arg1: memref<2x8x32xf32, #tpu.memory_space<vmem>>, %arg2: memref<2x8xf32, #tpu.memory_space<vmem>>, %arg3: memref<32x32xf32, #tpu.memory_space<vmem>>, %arg4: memref<32x32xf32, #tpu.memory_space<vmem>>, %arg5: memref<32x32xf32, #tpu.memory_space<vmem>>, %arg6: memref<32x32xf32, #tpu.memory_space<vmem>>, %arg7: memref<1x32xf32, #tpu.memory_space<vmem>>, %arg8: memref<1x32xf32, #tpu.memory_space<vmem>>, %arg9: memref<1x32xf32, #tpu.memory_space<vmem>>, %arg10: memref<32x32xf32, #tpu.memory_space<vmem>>, %arg11: memref<32x32xf32, #tpu.memory_space<vmem>>, %arg12: memref<32x32xf32, #tpu.memory_space<vmem>>, %arg13: memref<32x32xf32, #tpu.memory_space<vmem>>, %arg14: memref<1x32xf32, #tpu.memory_space<vmem>>, %arg15: memref<1x32xf32, #tpu.memory_space<vmem>>, %arg16: memref<1x32xf32, #tpu.memory_space<vmem>>, %arg17: memref<32x128xf32, #tpu.memory_space<vmem>>, %arg18: memref<1x128xf32, #tpu.memory_space<vmem>>, %arg19: memref<128x32xf32, #tpu.memory_space<vmem>>, %arg20: memref<1x32xf32, #tpu.memory_space<vmem>>, %arg21: memref<1x32xf32, #tpu.memory_space<vmem>>, %arg22: memref<1x32xf32, #tpu.memory_space<vmem>>, %arg23: memref<2x8x32xf32, #tpu.memory_space<vmem>>) attributes {dimension_semantics = [], scalar_prefetch = 0 : i64, scratch_operands = 0 : i64, tpu.core_type = #tpu.core_type<tc>} {
    %c0 = arith.constant 0 : index
    %c0_0 = arith.constant 0 : index
    %c0_1 = arith.constant 0 : index
    %0 = vector.load %arg0[%c0, %c0_0, %c0_1] : memref<2x8x32xf32, #tpu.memory_space<vmem>>, vector<2x8x32xf32>
    %1 = vector.shape_cast %0 : vector<2x8x32xf32> to vector<16x32xf32>
    %c0_2 = arith.constant 0 : index
    %c0_3 = arith.constant 0 : index
    %c0_4 = arith.constant 0 : index
    %2 = vector.load %arg1[%c0_2, %c0_3, %c0_4] : memref<2x8x32xf32, #tpu.memory_space<vmem>>, vector<2x8x32xf32>
    %3 = vector.shape_cast %2 : vector<2x8x32xf32> to vector<16x32xf32>
    %c0_5 = arith.constant 0 : index
    %c0_6 = arith.constant 0 : index
    %4 = vector.load %arg3[%c0_5, %c0_6] : memref<32x32xf32, #tpu.memory_space<vmem>>, vector<32x32xf32>
    %c0_7 = arith.constant 0 : index
    %c0_8 = arith.constant 0 : index
    %5 = vector.load %arg4[%c0_7, %c0_8] : memref<32x32xf32, #tpu.memory_space<vmem>>, vector<32x32xf32>
    %c0_9 = arith.constant 0 : index
    %c0_10 = arith.constant 0 : index
    %6 = vector.load %arg5[%c0_9, %c0_10] : memref<32x32xf32, #tpu.memory_space<vmem>>, vector<32x32xf32>
    %c0_11 = arith.constant 0 : index
    %c0_12 = arith.constant 0 : index
    %7 = vector.load %arg6[%c0_11, %c0_12] : memref<32x32xf32, #tpu.memory_space<vmem>>, vector<32x32xf32>
    %c0_13 = arith.constant 0 : index
    %c0_14 = arith.constant 0 : index
    %8 = vector.load %arg7[%c0_13, %c0_14] : memref<1x32xf32, #tpu.memory_space<vmem>>, vector<1x32xf32>
    %cst = arith.constant dense<0.000000e+00> : vector<16x32xf32>
    %9 = tpu.matmul %1, %4, %cst {dimension_numbers = #tpu.dot_dimension_numbers<[1], [0], [0], [1], [0, 0, 1, 1], [], []>} : vector<16x32xf32>, vector<32x32xf32>, vector<16x32xf32> -> vector<16x32xf32>
    %10 = vector.shape_cast %9 : vector<16x32xf32> to vector<2x8x32xf32>
    %cst_15 = arith.constant dense<0.000000e+00> : vector<16x32xf32>
    %11 = tpu.matmul %1, %5, %cst_15 {dimension_numbers = #tpu.dot_dimension_numbers<[1], [0], [0], [1], [0, 0, 1, 1], [], []>} : vector<16x32xf32>, vector<32x32xf32>, vector<16x32xf32> -> vector<16x32xf32>
    %12 = vector.shape_cast %11 : vector<16x32xf32> to vector<2x8x32xf32>
    %cst_16 = arith.constant dense<0.000000e+00> : vector<16x32xf32>
    %13 = tpu.matmul %1, %6, %cst_16 {dimension_numbers = #tpu.dot_dimension_numbers<[1], [0], [0], [1], [0, 0, 1, 1], [], []>} : vector<16x32xf32>, vector<32x32xf32>, vector<16x32xf32> -> vector<16x32xf32>
    %14 = vector.shape_cast %13 : vector<16x32xf32> to vector<2x8x32xf32>
    %15 = tpu.iota {dimensions = array<i32: 0>} : vector<8x8xi32>
    %16 = tpu.iota {dimensions = array<i32: 1>} : vector<8x8xi32>
    %17 = arith.cmpi sle, %16, %15 : vector<8x8xi32>
    %18 = vector.shape_cast %17 : vector<8x8xi1> to vector<1x8x8xi1>
    %19 = vector.extract_strided_slice %10 {offsets = [0, 0, 0], sizes = [2, 8, 8], strides = [1, 1, 1]} : vector<2x8x32xf32> to vector<2x8x8xf32>
    %20 = vector.extract_strided_slice %12 {offsets = [0, 0, 0], sizes = [2, 8, 8], strides = [1, 1, 1]} : vector<2x8x32xf32> to vector<2x8x8xf32>
    "tpu.trace_start"() <{level = 10 : i32, message = "nqd,nkd->nqk"}> : () -> ()
    %cst_17 = arith.constant dense<0.000000e+00> : vector<2x8x8xf32>
    %21 = tpu.matmul %19, %20, %cst_17 {dimension_numbers = #tpu.dot_dimension_numbers<[2], [2], [1], [1], [0, 0, 0, 1, 1, 1], [0], [0]>} : vector<2x8x8xf32>, vector<2x8x8xf32>, vector<2x8x8xf32> -> vector<2x8x8xf32>
    %cst_18 = arith.constant -1.000000e+20 : f32
    "tpu.trace_stop"() : () -> ()
    %22 = vector.shape_cast %18 : vector<1x8x8xi1> to vector<1x8x8xi1>
    %23 = vector.broadcast %22 : vector<1x8x8xi1> to vector<2x8x8xi1>
    %24 = vector.broadcast %cst_18 : f32 to vector<2x8x8xf32>
    %25 = arith.select %23, %21, %24 : vector<2x8x8xi1>, vector<2x8x8xf32>
    %cst_19 = arith.constant 0.176776692 : f32
    %26 = vector.broadcast %cst_19 : f32 to vector<2x8x8xf32>
    %27 = arith.mulf %25, %26 : vector<2x8x8xf32>
    %cst_20 = arith.constant dense<0xFF800000> : vector<2x8xf32>
    %28 = vector.multi_reduction <maximumf>, %27, %cst_20 [2] : vector<2x8x8xf32> to vector<2x8xf32>
    %29 = vector.shape_cast %28 : vector<2x8xf32> to vector<2x8x1xf32>
    %30 = vector.broadcast %29 : vector<2x8x1xf32> to vector<2x8x8xf32>
    %31 = arith.subf %27, %30 : vector<2x8x8xf32>
    %32 = math.exp %31 : vector<2x8x8xf32>
    %cst_21 = arith.constant dense<0.000000e+00> : vector<2x8xf32>
    %33 = vector.multi_reduction <add>, %32, %cst_21 [2] : vector<2x8x8xf32> to vector<2x8xf32>
    %34 = vector.shape_cast %33 : vector<2x8xf32> to vector<2x8x1xf32>
    %35 = tpu.reciprocal %34 {approx = true} : vector<2x8x1xf32> -> vector<2x8x1xf32>
    %36 = vector.broadcast %35 : vector<2x8x1xf32> to vector<2x8x8xf32>
    %37 = arith.mulf %32, %36 : vector<2x8x8xf32>
    %38 = vector.extract_strided_slice %14 {offsets = [0, 0, 0], sizes = [2, 8, 8], strides = [1, 1, 1]} : vector<2x8x32xf32> to vector<2x8x8xf32>
    "tpu.trace_start"() <{level = 10 : i32, message = "nqk,nkd->nqd"}> : () -> ()
    %cst_22 = arith.constant dense<0.000000e+00> : vector<2x8x8xf32>
    %39 = tpu.matmul %37, %38, %cst_22 {dimension_numbers = #tpu.dot_dimension_numbers<[2], [1], [1], [2], [0, 0, 0, 1, 1, 2], [0], [0]>} : vector<2x8x8xf32>, vector<2x8x8xf32>, vector<2x8x8xf32> -> vector<2x8x8xf32>
    "tpu.trace_stop"() : () -> ()
    %40 = vector.extract_strided_slice %10 {offsets = [0, 0, 8], sizes = [2, 8, 8], strides = [1, 1, 1]} : vector<2x8x32xf32> to vector<2x8x8xf32>
    %41 = vector.extract_strided_slice %12 {offsets = [0, 0, 8], sizes = [2, 8, 8], strides = [1, 1, 1]} : vector<2x8x32xf32> to vector<2x8x8xf32>
    "tpu.trace_start"() <{level = 10 : i32, message = "nqd,nkd->nqk"}> : () -> ()
    %cst_23 = arith.constant dense<0.000000e+00> : vector<2x8x8xf32>
    %42 = tpu.matmul %40, %41, %cst_23 {dimension_numbers = #tpu.dot_dimension_numbers<[2], [2], [1], [1], [0, 0, 0, 1, 1, 1], [0], [0]>} : vector<2x8x8xf32>, vector<2x8x8xf32>, vector<2x8x8xf32> -> vector<2x8x8xf32>
    %cst_24 = arith.constant -1.000000e+20 : f32
    "tpu.trace_stop"() : () -> ()
    %43 = vector.shape_cast %18 : vector<1x8x8xi1> to vector<1x8x8xi1>
    %44 = vector.broadcast %43 : vector<1x8x8xi1> to vector<2x8x8xi1>
    %45 = vector.broadcast %cst_24 : f32 to vector<2x8x8xf32>
    %46 = arith.select %44, %42, %45 : vector<2x8x8xi1>, vector<2x8x8xf32>
    %cst_25 = arith.constant 0.176776692 : f32
    %47 = vector.broadcast %cst_25 : f32 to vector<2x8x8xf32>
    %48 = arith.mulf %46, %47 : vector<2x8x8xf32>
    %cst_26 = arith.constant dense<0xFF800000> : vector<2x8xf32>
    %49 = vector.multi_reduction <maximumf>, %48, %cst_26 [2] : vector<2x8x8xf32> to vector<2x8xf32>
    %50 = vector.shape_cast %49 : vector<2x8xf32> to vector<2x8x1xf32>
    %51 = vector.broadcast %50 : vector<2x8x1xf32> to vector<2x8x8xf32>
    %52 = arith.subf %48, %51 : vector<2x8x8xf32>
    %53 = math.exp %52 : vector<2x8x8xf32>
    %cst_27 = arith.constant dense<0.000000e+00> : vector<2x8xf32>
    %54 = vector.multi_reduction <add>, %53, %cst_27 [2] : vector<2x8x8xf32> to vector<2x8xf32>
    %55 = vector.shape_cast %54 : vector<2x8xf32> to vector<2x8x1xf32>
    %56 = tpu.reciprocal %55 {approx = true} : vector<2x8x1xf32> -> vector<2x8x1xf32>
    %57 = vector.broadcast %56 : vector<2x8x1xf32> to vector<2x8x8xf32>
    %58 = arith.mulf %53, %57 : vector<2x8x8xf32>
    %59 = vector.extract_strided_slice %14 {offsets = [0, 0, 8], sizes = [2, 8, 8], strides = [1, 1, 1]} : vector<2x8x32xf32> to vector<2x8x8xf32>
    "tpu.trace_start"() <{level = 10 : i32, message = "nqk,nkd->nqd"}> : () -> ()
    %cst_28 = arith.constant dense<0.000000e+00> : vector<2x8x8xf32>
    %60 = tpu.matmul %58, %59, %cst_28 {dimension_numbers = #tpu.dot_dimension_numbers<[2], [1], [1], [2], [0, 0, 0, 1, 1, 2], [0], [0]>} : vector<2x8x8xf32>, vector<2x8x8xf32>, vector<2x8x8xf32> -> vector<2x8x8xf32>
    "tpu.trace_stop"() : () -> ()
    %61 = vector.extract_strided_slice %10 {offsets = [0, 0, 16], sizes = [2, 8, 8], strides = [1, 1, 1]} : vector<2x8x32xf32> to vector<2x8x8xf32>
    %62 = vector.extract_strided_slice %12 {offsets = [0, 0, 16], sizes = [2, 8, 8], strides = [1, 1, 1]} : vector<2x8x32xf32> to vector<2x8x8xf32>
    "tpu.trace_start"() <{level = 10 : i32, message = "nqd,nkd->nqk"}> : () -> ()
    %cst_29 = arith.constant dense<0.000000e+00> : vector<2x8x8xf32>
    %63 = tpu.matmul %61, %62, %cst_29 {dimension_numbers = #tpu.dot_dimension_numbers<[2], [2], [1], [1], [0, 0, 0, 1, 1, 1], [0], [0]>} : vector<2x8x8xf32>, vector<2x8x8xf32>, vector<2x8x8xf32> -> vector<2x8x8xf32>
    %cst_30 = arith.constant -1.000000e+20 : f32
    "tpu.trace_stop"() : () -> ()
    %64 = vector.shape_cast %18 : vector<1x8x8xi1> to vector<1x8x8xi1>
    %65 = vector.broadcast %64 : vector<1x8x8xi1> to vector<2x8x8xi1>
    %66 = vector.broadcast %cst_30 : f32 to vector<2x8x8xf32>
    %67 = arith.select %65, %63, %66 : vector<2x8x8xi1>, vector<2x8x8xf32>
    %cst_31 = arith.constant 0.176776692 : f32
    %68 = vector.broadcast %cst_31 : f32 to vector<2x8x8xf32>
    %69 = arith.mulf %67, %68 : vector<2x8x8xf32>
    %cst_32 = arith.constant dense<0xFF800000> : vector<2x8xf32>
    %70 = vector.multi_reduction <maximumf>, %69, %cst_32 [2] : vector<2x8x8xf32> to vector<2x8xf32>
    %71 = vector.shape_cast %70 : vector<2x8xf32> to vector<2x8x1xf32>
    %72 = vector.broadcast %71 : vector<2x8x1xf32> to vector<2x8x8xf32>
    %73 = arith.subf %69, %72 : vector<2x8x8xf32>
    %74 = math.exp %73 : vector<2x8x8xf32>
    %cst_33 = arith.constant dense<0.000000e+00> : vector<2x8xf32>
    %75 = vector.multi_reduction <add>, %74, %cst_33 [2] : vector<2x8x8xf32> to vector<2x8xf32>
    %76 = vector.shape_cast %75 : vector<2x8xf32> to vector<2x8x1xf32>
    %77 = tpu.reciprocal %76 {approx = true} : vector<2x8x1xf32> -> vector<2x8x1xf32>
    %78 = vector.broadcast %77 : vector<2x8x1xf32> to vector<2x8x8xf32>
    %79 = arith.mulf %74, %78 : vector<2x8x8xf32>
    %80 = vector.extract_strided_slice %14 {offsets = [0, 0, 16], sizes = [2, 8, 8], strides = [1, 1, 1]} : vector<2x8x32xf32> to vector<2x8x8xf32>
    "tpu.trace_start"() <{level = 10 : i32, message = "nqk,nkd->nqd"}> : () -> ()
    %cst_34 = arith.constant dense<0.000000e+00> : vector<2x8x8xf32>
    %81 = tpu.matmul %79, %80, %cst_34 {dimension_numbers = #tpu.dot_dimension_numbers<[2], [1], [1], [2], [0, 0, 0, 1, 1, 2], [0], [0]>} : vector<2x8x8xf32>, vector<2x8x8xf32>, vector<2x8x8xf32> -> vector<2x8x8xf32>
    "tpu.trace_stop"() : () -> ()
    %82 = vector.extract_strided_slice %10 {offsets = [0, 0, 24], sizes = [2, 8, 8], strides = [1, 1, 1]} : vector<2x8x32xf32> to vector<2x8x8xf32>
    %83 = vector.extract_strided_slice %12 {offsets = [0, 0, 24], sizes = [2, 8, 8], strides = [1, 1, 1]} : vector<2x8x32xf32> to vector<2x8x8xf32>
    "tpu.trace_start"() <{level = 10 : i32, message = "nqd,nkd->nqk"}> : () -> ()
    %cst_35 = arith.constant dense<0.000000e+00> : vector<2x8x8xf32>
    %84 = tpu.matmul %82, %83, %cst_35 {dimension_numbers = #tpu.dot_dimension_numbers<[2], [2], [1], [1], [0, 0, 0, 1, 1, 1], [0], [0]>} : vector<2x8x8xf32>, vector<2x8x8xf32>, vector<2x8x8xf32> -> vector<2x8x8xf32>
    %cst_36 = arith.constant -1.000000e+20 : f32
    "tpu.trace_stop"() : () -> ()
    %85 = vector.shape_cast %18 : vector<1x8x8xi1> to vector<1x8x8xi1>
    %86 = vector.broadcast %85 : vector<1x8x8xi1> to vector<2x8x8xi1>
    %87 = vector.broadcast %cst_36 : f32 to vector<2x8x8xf32>
    %88 = arith.select %86, %84, %87 : vector<2x8x8xi1>, vector<2x8x8xf32>
    %cst_37 = arith.constant 0.176776692 : f32
    %89 = vector.broadcast %cst_37 : f32 to vector<2x8x8xf32>
    %90 = arith.mulf %88, %89 : vector<2x8x8xf32>
    %cst_38 = arith.constant dense<0xFF800000> : vector<2x8xf32>
    %91 = vector.multi_reduction <maximumf>, %90, %cst_38 [2] : vector<2x8x8xf32> to vector<2x8xf32>
    %92 = vector.shape_cast %91 : vector<2x8xf32> to vector<2x8x1xf32>
    %93 = vector.broadcast %92 : vector<2x8x1xf32> to vector<2x8x8xf32>
    %94 = arith.subf %90, %93 : vector<2x8x8xf32>
    %95 = math.exp %94 : vector<2x8x8xf32>
    %cst_39 = arith.constant dense<0.000000e+00> : vector<2x8xf32>
    %96 = vector.multi_reduction <add>, %95, %cst_39 [2] : vector<2x8x8xf32> to vector<2x8xf32>
    %97 = vector.shape_cast %96 : vector<2x8xf32> to vector<2x8x1xf32>
    %98 = tpu.reciprocal %97 {approx = true} : vector<2x8x1xf32> -> vector<2x8x1xf32>
    %99 = vector.broadcast %98 : vector<2x8x1xf32> to vector<2x8x8xf32>
    %100 = arith.mulf %95, %99 : vector<2x8x8xf32>
    %101 = vector.extract_strided_slice %14 {offsets = [0, 0, 24], sizes = [2, 8, 8], strides = [1, 1, 1]} : vector<2x8x32xf32> to vector<2x8x8xf32>
    "tpu.trace_start"() <{level = 10 : i32, message = "nqk,nkd->nqd"}> : () -> ()
    %cst_40 = arith.constant dense<0.000000e+00> : vector<2x8x8xf32>
    %102 = tpu.matmul %100, %101, %cst_40 {dimension_numbers = #tpu.dot_dimension_numbers<[2], [1], [1], [2], [0, 0, 0, 1, 1, 2], [0], [0]>} : vector<2x8x8xf32>, vector<2x8x8xf32>, vector<2x8x8xf32> -> vector<2x8x8xf32>
    "tpu.trace_stop"() : () -> ()
    %103 = tpu.concatenate %39, %60, %81, %102 in 2 : vector<2x8x8xf32>, vector<2x8x8xf32>, vector<2x8x8xf32>, vector<2x8x8xf32> -> vector<2x8x32xf32>
    %104 = vector.shape_cast %103 : vector<2x8x32xf32> to vector<16x32xf32>
    %cst_41 = arith.constant dense<0.000000e+00> : vector<16x32xf32>
    %105 = tpu.matmul %104, %7, %cst_41 {dimension_numbers = #tpu.dot_dimension_numbers<[1], [0], [0], [1], [0, 0, 1, 1], [], []>} : vector<16x32xf32>, vector<32x32xf32>, vector<16x32xf32> -> vector<16x32xf32>
    %106 = vector.broadcast %8 : vector<1x32xf32> to vector<16x32xf32>
    %107 = arith.addf %105, %106 : vector<16x32xf32>
    %c0_42 = arith.constant 0 : index
    %c0_43 = arith.constant 0 : index
    %108 = vector.load %arg8[%c0_42, %c0_43] : memref<1x32xf32, #tpu.memory_space<vmem>>, vector<1x32xf32>
    %c0_44 = arith.constant 0 : index
    %c0_45 = arith.constant 0 : index
    %109 = vector.load %arg9[%c0_44, %c0_45] : memref<1x32xf32, #tpu.memory_space<vmem>>, vector<1x32xf32>
    %110 = arith.addf %107, %1 : vector<16x32xf32>
    %cst_46 = arith.constant dense<0.000000e+00> : vector<16xf32>
    %111 = vector.multi_reduction <add>, %110, %cst_46 [1] : vector<16x32xf32> to vector<16xf32>
    %112 = vector.shape_cast %111 : vector<16xf32> to vector<16x1xf32>
    %cst_47 = arith.constant 3.200000e+01 : f32
    %113 = vector.broadcast %cst_47 : f32 to vector<16x1xf32>
    %114 = arith.divf %112, %113 : vector<16x1xf32>
    %115 = vector.broadcast %114 : vector<16x1xf32> to vector<16x32xf32>
    %116 = arith.subf %110, %115 : vector<16x32xf32>
    %117 = arith.mulf %116, %116 : vector<16x32xf32>
    %cst_48 = arith.constant dense<0.000000e+00> : vector<16xf32>
    %118 = vector.multi_reduction <add>, %117, %cst_48 [1] : vector<16x32xf32> to vector<16xf32>
    %119 = vector.shape_cast %118 : vector<16xf32> to vector<16x1xf32>
    %cst_49 = arith.constant 3.200000e+01 : f32
    %120 = vector.broadcast %cst_49 : f32 to vector<16x1xf32>
    %121 = arith.divf %119, %120 : vector<16x1xf32>
    %122 = vector.broadcast %114 : vector<16x1xf32> to vector<16x32xf32>
    %123 = arith.subf %110, %122 : vector<16x32xf32>
    %cst_50 = arith.constant 9.99999974E-6 : f32
    %124 = vector.broadcast %cst_50 : f32 to vector<16x1xf32>
    %125 = arith.addf %121, %124 : vector<16x1xf32>
    %126 = math.rsqrt %125 : vector<16x1xf32>
    %127 = vector.broadcast %126 : vector<16x1xf32> to vector<16x32xf32>
    %128 = arith.mulf %123, %127 : vector<16x32xf32>
    %129 = vector.broadcast %108 : vector<1x32xf32> to vector<16x32xf32>
    %130 = arith.mulf %128, %129 : vector<16x32xf32>
    %131 = vector.broadcast %109 : vector<1x32xf32> to vector<16x32xf32>
    %132 = arith.addf %130, %131 : vector<16x32xf32>
    %c0_51 = arith.constant 0 : index
    %c0_52 = arith.constant 0 : index
    %133 = vector.load %arg2[%c0_51, %c0_52] : memref<2x8xf32, #tpu.memory_space<vmem>>, vector<2x8xf32>
    %c0_53 = arith.constant 0 : index
    %c0_54 = arith.constant 0 : index
    %134 = vector.load %arg10[%c0_53, %c0_54] : memref<32x32xf32, #tpu.memory_space<vmem>>, vector<32x32xf32>
    %c0_55 = arith.constant 0 : index
    %c0_56 = arith.constant 0 : index
    %135 = vector.load %arg11[%c0_55, %c0_56] : memref<32x32xf32, #tpu.memory_space<vmem>>, vector<32x32xf32>
    %c0_57 = arith.constant 0 : index
    %c0_58 = arith.constant 0 : index
    %136 = vector.load %arg12[%c0_57, %c0_58] : memref<32x32xf32, #tpu.memory_space<vmem>>, vector<32x32xf32>
    %c0_59 = arith.constant 0 : index
    %c0_60 = arith.constant 0 : index
    %137 = vector.load %arg13[%c0_59, %c0_60] : memref<32x32xf32, #tpu.memory_space<vmem>>, vector<32x32xf32>
    %c0_61 = arith.constant 0 : index
    %c0_62 = arith.constant 0 : index
    %138 = vector.load %arg14[%c0_61, %c0_62] : memref<1x32xf32, #tpu.memory_space<vmem>>, vector<1x32xf32>
    %cst_63 = arith.constant dense<0.000000e+00> : vector<16x32xf32>
    %139 = tpu.matmul %132, %134, %cst_63 {dimension_numbers = #tpu.dot_dimension_numbers<[1], [0], [0], [1], [0, 0, 1, 1], [], []>} : vector<16x32xf32>, vector<32x32xf32>, vector<16x32xf32> -> vector<16x32xf32>
    %140 = vector.shape_cast %139 : vector<16x32xf32> to vector<2x8x32xf32>
    %cst_64 = arith.constant dense<0.000000e+00> : vector<16x32xf32>
    %141 = tpu.matmul %3, %135, %cst_64 {dimension_numbers = #tpu.dot_dimension_numbers<[1], [0], [0], [1], [0, 0, 1, 1], [], []>} : vector<16x32xf32>, vector<32x32xf32>, vector<16x32xf32> -> vector<16x32xf32>
    %142 = vector.shape_cast %141 : vector<16x32xf32> to vector<2x8x32xf32>
    %cst_65 = arith.constant dense<0.000000e+00> : vector<16x32xf32>
    %143 = tpu.matmul %3, %136, %cst_65 {dimension_numbers = #tpu.dot_dimension_numbers<[1], [0], [0], [1], [0, 0, 1, 1], [], []>} : vector<16x32xf32>, vector<32x32xf32>, vector<16x32xf32> -> vector<16x32xf32>
    %144 = vector.shape_cast %143 : vector<16x32xf32> to vector<2x8x32xf32>
    %cst_66 = arith.constant 0.000000e+00 : f32
    %145 = vector.broadcast %cst_66 : f32 to vector<2x8xf32>
    %146 = arith.cmpf one, %133, %145 : vector<2x8xf32>
    %147 = vector.shape_cast %146 : vector<2x8xi1> to vector<2x1x8xi1>
    %148 = vector.extract_strided_slice %140 {offsets = [0, 0, 0], sizes = [2, 8, 8], strides = [1, 1, 1]} : vector<2x8x32xf32> to vector<2x8x8xf32>
    %149 = vector.extract_strided_slice %142 {offsets = [0, 0, 0], sizes = [2, 8, 8], strides = [1, 1, 1]} : vector<2x8x32xf32> to vector<2x8x8xf32>
    "tpu.trace_start"() <{level = 10 : i32, message = "nqd,nkd->nqk"}> : () -> ()
    %cst_67 = arith.constant dense<0.000000e+00> : vector<2x8x8xf32>
    %150 = tpu.matmul %148, %149, %cst_67 {dimension_numbers = #tpu.dot_dimension_numbers<[2], [2], [1], [1], [0, 0, 0, 1, 1, 1], [0], [0]>} : vector<2x8x8xf32>, vector<2x8x8xf32>, vector<2x8x8xf32> -> vector<2x8x8xf32>
    %cst_68 = arith.constant -1.000000e+20 : f32
    "tpu.trace_stop"() : () -> ()
    %151 = vector.shape_cast %147 : vector<2x1x8xi1> to vector<2x1x8xi1>
    %152 = vector.broadcast %151 : vector<2x1x8xi1> to vector<2x8x8xi1>
    %153 = vector.broadcast %cst_68 : f32 to vector<2x8x8xf32>
    %154 = arith.select %152, %150, %153 : vector<2x8x8xi1>, vector<2x8x8xf32>
    %cst_69 = arith.constant 0.176776692 : f32
    %155 = vector.broadcast %cst_69 : f32 to vector<2x8x8xf32>
    %156 = arith.mulf %154, %155 : vector<2x8x8xf32>
    %cst_70 = arith.constant dense<0xFF800000> : vector<2x8xf32>
    %157 = vector.multi_reduction <maximumf>, %156, %cst_70 [2] : vector<2x8x8xf32> to vector<2x8xf32>
    %158 = vector.shape_cast %157 : vector<2x8xf32> to vector<2x8x1xf32>
    %159 = vector.broadcast %158 : vector<2x8x1xf32> to vector<2x8x8xf32>
    %160 = arith.subf %156, %159 : vector<2x8x8xf32>
    %161 = math.exp %160 : vector<2x8x8xf32>
    %cst_71 = arith.constant dense<0.000000e+00> : vector<2x8xf32>
    %162 = vector.multi_reduction <add>, %161, %cst_71 [2] : vector<2x8x8xf32> to vector<2x8xf32>
    %163 = vector.shape_cast %162 : vector<2x8xf32> to vector<2x8x1xf32>
    %164 = tpu.reciprocal %163 {approx = true} : vector<2x8x1xf32> -> vector<2x8x1xf32>
    %165 = vector.broadcast %164 : vector<2x8x1xf32> to vector<2x8x8xf32>
    %166 = arith.mulf %161, %165 : vector<2x8x8xf32>
    %167 = vector.extract_strided_slice %144 {offsets = [0, 0, 0], sizes = [2, 8, 8], strides = [1, 1, 1]} : vector<2x8x32xf32> to vector<2x8x8xf32>
    "tpu.trace_start"() <{level = 10 : i32, message = "nqk,nkd->nqd"}> : () -> ()
    %cst_72 = arith.constant dense<0.000000e+00> : vector<2x8x8xf32>
    %168 = tpu.matmul %166, %167, %cst_72 {dimension_numbers = #tpu.dot_dimension_numbers<[2], [1], [1], [2], [0, 0, 0, 1, 1, 2], [0], [0]>} : vector<2x8x8xf32>, vector<2x8x8xf32>, vector<2x8x8xf32> -> vector<2x8x8xf32>
    "tpu.trace_stop"() : () -> ()
    %169 = vector.extract_strided_slice %140 {offsets = [0, 0, 8], sizes = [2, 8, 8], strides = [1, 1, 1]} : vector<2x8x32xf32> to vector<2x8x8xf32>
    %170 = vector.extract_strided_slice %142 {offsets = [0, 0, 8], sizes = [2, 8, 8], strides = [1, 1, 1]} : vector<2x8x32xf32> to vector<2x8x8xf32>
    "tpu.trace_start"() <{level = 10 : i32, message = "nqd,nkd->nqk"}> : () -> ()
    %cst_73 = arith.constant dense<0.000000e+00> : vector<2x8x8xf32>
    %171 = tpu.matmul %169, %170, %cst_73 {dimension_numbers = #tpu.dot_dimension_numbers<[2], [2], [1], [1], [0, 0, 0, 1, 1, 1], [0], [0]>} : vector<2x8x8xf32>, vector<2x8x8xf32>, vector<2x8x8xf32> -> vector<2x8x8xf32>
    %cst_74 = arith.constant -1.000000e+20 : f32
    "tpu.trace_stop"() : () -> ()
    %172 = vector.shape_cast %147 : vector<2x1x8xi1> to vector<2x1x8xi1>
    %173 = vector.broadcast %172 : vector<2x1x8xi1> to vector<2x8x8xi1>
    %174 = vector.broadcast %cst_74 : f32 to vector<2x8x8xf32>
    %175 = arith.select %173, %171, %174 : vector<2x8x8xi1>, vector<2x8x8xf32>
    %cst_75 = arith.constant 0.176776692 : f32
    %176 = vector.broadcast %cst_75 : f32 to vector<2x8x8xf32>
    %177 = arith.mulf %175, %176 : vector<2x8x8xf32>
    %cst_76 = arith.constant dense<0xFF800000> : vector<2x8xf32>
    %178 = vector.multi_reduction <maximumf>, %177, %cst_76 [2] : vector<2x8x8xf32> to vector<2x8xf32>
    %179 = vector.shape_cast %178 : vector<2x8xf32> to vector<2x8x1xf32>
    %180 = vector.broadcast %179 : vector<2x8x1xf32> to vector<2x8x8xf32>
    %181 = arith.subf %177, %180 : vector<2x8x8xf32>
    %182 = math.exp %181 : vector<2x8x8xf32>
    %cst_77 = arith.constant dense<0.000000e+00> : vector<2x8xf32>
    %183 = vector.multi_reduction <add>, %182, %cst_77 [2] : vector<2x8x8xf32> to vector<2x8xf32>
    %184 = vector.shape_cast %183 : vector<2x8xf32> to vector<2x8x1xf32>
    %185 = tpu.reciprocal %184 {approx = true} : vector<2x8x1xf32> -> vector<2x8x1xf32>
    %186 = vector.broadcast %185 : vector<2x8x1xf32> to vector<2x8x8xf32>
    %187 = arith.mulf %182, %186 : vector<2x8x8xf32>
    %188 = vector.extract_strided_slice %144 {offsets = [0, 0, 8], sizes = [2, 8, 8], strides = [1, 1, 1]} : vector<2x8x32xf32> to vector<2x8x8xf32>
    "tpu.trace_start"() <{level = 10 : i32, message = "nqk,nkd->nqd"}> : () -> ()
    %cst_78 = arith.constant dense<0.000000e+00> : vector<2x8x8xf32>
    %189 = tpu.matmul %187, %188, %cst_78 {dimension_numbers = #tpu.dot_dimension_numbers<[2], [1], [1], [2], [0, 0, 0, 1, 1, 2], [0], [0]>} : vector<2x8x8xf32>, vector<2x8x8xf32>, vector<2x8x8xf32> -> vector<2x8x8xf32>
    "tpu.trace_stop"() : () -> ()
    %190 = vector.extract_strided_slice %140 {offsets = [0, 0, 16], sizes = [2, 8, 8], strides = [1, 1, 1]} : vector<2x8x32xf32> to vector<2x8x8xf32>
    %191 = vector.extract_strided_slice %142 {offsets = [0, 0, 16], sizes = [2, 8, 8], strides = [1, 1, 1]} : vector<2x8x32xf32> to vector<2x8x8xf32>
    "tpu.trace_start"() <{level = 10 : i32, message = "nqd,nkd->nqk"}> : () -> ()
    %cst_79 = arith.constant dense<0.000000e+00> : vector<2x8x8xf32>
    %192 = tpu.matmul %190, %191, %cst_79 {dimension_numbers = #tpu.dot_dimension_numbers<[2], [2], [1], [1], [0, 0, 0, 1, 1, 1], [0], [0]>} : vector<2x8x8xf32>, vector<2x8x8xf32>, vector<2x8x8xf32> -> vector<2x8x8xf32>
    %cst_80 = arith.constant -1.000000e+20 : f32
    "tpu.trace_stop"() : () -> ()
    %193 = vector.shape_cast %147 : vector<2x1x8xi1> to vector<2x1x8xi1>
    %194 = vector.broadcast %193 : vector<2x1x8xi1> to vector<2x8x8xi1>
    %195 = vector.broadcast %cst_80 : f32 to vector<2x8x8xf32>
    %196 = arith.select %194, %192, %195 : vector<2x8x8xi1>, vector<2x8x8xf32>
    %cst_81 = arith.constant 0.176776692 : f32
    %197 = vector.broadcast %cst_81 : f32 to vector<2x8x8xf32>
    %198 = arith.mulf %196, %197 : vector<2x8x8xf32>
    %cst_82 = arith.constant dense<0xFF800000> : vector<2x8xf32>
    %199 = vector.multi_reduction <maximumf>, %198, %cst_82 [2] : vector<2x8x8xf32> to vector<2x8xf32>
    %200 = vector.shape_cast %199 : vector<2x8xf32> to vector<2x8x1xf32>
    %201 = vector.broadcast %200 : vector<2x8x1xf32> to vector<2x8x8xf32>
    %202 = arith.subf %198, %201 : vector<2x8x8xf32>
    %203 = math.exp %202 : vector<2x8x8xf32>
    %cst_83 = arith.constant dense<0.000000e+00> : vector<2x8xf32>
    %204 = vector.multi_reduction <add>, %203, %cst_83 [2] : vector<2x8x8xf32> to vector<2x8xf32>
    %205 = vector.shape_cast %204 : vector<2x8xf32> to vector<2x8x1xf32>
    %206 = tpu.reciprocal %205 {approx = true} : vector<2x8x1xf32> -> vector<2x8x1xf32>
    %207 = vector.broadcast %206 : vector<2x8x1xf32> to vector<2x8x8xf32>
    %208 = arith.mulf %203, %207 : vector<2x8x8xf32>
    %209 = vector.extract_strided_slice %144 {offsets = [0, 0, 16], sizes = [2, 8, 8], strides = [1, 1, 1]} : vector<2x8x32xf32> to vector<2x8x8xf32>
    "tpu.trace_start"() <{level = 10 : i32, message = "nqk,nkd->nqd"}> : () -> ()
    %cst_84 = arith.constant dense<0.000000e+00> : vector<2x8x8xf32>
    %210 = tpu.matmul %208, %209, %cst_84 {dimension_numbers = #tpu.dot_dimension_numbers<[2], [1], [1], [2], [0, 0, 0, 1, 1, 2], [0], [0]>} : vector<2x8x8xf32>, vector<2x8x8xf32>, vector<2x8x8xf32> -> vector<2x8x8xf32>
    "tpu.trace_stop"() : () -> ()
    %211 = vector.extract_strided_slice %140 {offsets = [0, 0, 24], sizes = [2, 8, 8], strides = [1, 1, 1]} : vector<2x8x32xf32> to vector<2x8x8xf32>
    %212 = vector.extract_strided_slice %142 {offsets = [0, 0, 24], sizes = [2, 8, 8], strides = [1, 1, 1]} : vector<2x8x32xf32> to vector<2x8x8xf32>
    "tpu.trace_start"() <{level = 10 : i32, message = "nqd,nkd->nqk"}> : () -> ()
    %cst_85 = arith.constant dense<0.000000e+00> : vector<2x8x8xf32>
    %213 = tpu.matmul %211, %212, %cst_85 {dimension_numbers = #tpu.dot_dimension_numbers<[2], [2], [1], [1], [0, 0, 0, 1, 1, 1], [0], [0]>} : vector<2x8x8xf32>, vector<2x8x8xf32>, vector<2x8x8xf32> -> vector<2x8x8xf32>
    %cst_86 = arith.constant -1.000000e+20 : f32
    "tpu.trace_stop"() : () -> ()
    %214 = vector.shape_cast %147 : vector<2x1x8xi1> to vector<2x1x8xi1>
    %215 = vector.broadcast %214 : vector<2x1x8xi1> to vector<2x8x8xi1>
    %216 = vector.broadcast %cst_86 : f32 to vector<2x8x8xf32>
    %217 = arith.select %215, %213, %216 : vector<2x8x8xi1>, vector<2x8x8xf32>
    %cst_87 = arith.constant 0.176776692 : f32
    %218 = vector.broadcast %cst_87 : f32 to vector<2x8x8xf32>
    %219 = arith.mulf %217, %218 : vector<2x8x8xf32>
    %cst_88 = arith.constant dense<0xFF800000> : vector<2x8xf32>
    %220 = vector.multi_reduction <maximumf>, %219, %cst_88 [2] : vector<2x8x8xf32> to vector<2x8xf32>
    %221 = vector.shape_cast %220 : vector<2x8xf32> to vector<2x8x1xf32>
    %222 = vector.broadcast %221 : vector<2x8x1xf32> to vector<2x8x8xf32>
    %223 = arith.subf %219, %222 : vector<2x8x8xf32>
    %224 = math.exp %223 : vector<2x8x8xf32>
    %cst_89 = arith.constant dense<0.000000e+00> : vector<2x8xf32>
    %225 = vector.multi_reduction <add>, %224, %cst_89 [2] : vector<2x8x8xf32> to vector<2x8xf32>
    %226 = vector.shape_cast %225 : vector<2x8xf32> to vector<2x8x1xf32>
    %227 = tpu.reciprocal %226 {approx = true} : vector<2x8x1xf32> -> vector<2x8x1xf32>
    %228 = vector.broadcast %227 : vector<2x8x1xf32> to vector<2x8x8xf32>
    %229 = arith.mulf %224, %228 : vector<2x8x8xf32>
    %230 = vector.extract_strided_slice %144 {offsets = [0, 0, 24], sizes = [2, 8, 8], strides = [1, 1, 1]} : vector<2x8x32xf32> to vector<2x8x8xf32>
    "tpu.trace_start"() <{level = 10 : i32, message = "nqk,nkd->nqd"}> : () -> ()
    %cst_90 = arith.constant dense<0.000000e+00> : vector<2x8x8xf32>
    %231 = tpu.matmul %229, %230, %cst_90 {dimension_numbers = #tpu.dot_dimension_numbers<[2], [1], [1], [2], [0, 0, 0, 1, 1, 2], [0], [0]>} : vector<2x8x8xf32>, vector<2x8x8xf32>, vector<2x8x8xf32> -> vector<2x8x8xf32>
    "tpu.trace_stop"() : () -> ()
    %232 = tpu.concatenate %168, %189, %210, %231 in 2 : vector<2x8x8xf32>, vector<2x8x8xf32>, vector<2x8x8xf32>, vector<2x8x8xf32> -> vector<2x8x32xf32>
    %233 = vector.shape_cast %232 : vector<2x8x32xf32> to vector<16x32xf32>
    %cst_91 = arith.constant dense<0.000000e+00> : vector<16x32xf32>
    %234 = tpu.matmul %233, %137, %cst_91 {dimension_numbers = #tpu.dot_dimension_numbers<[1], [0], [0], [1], [0, 0, 1, 1], [], []>} : vector<16x32xf32>, vector<32x32xf32>, vector<16x32xf32> -> vector<16x32xf32>
    %235 = vector.broadcast %138 : vector<1x32xf32> to vector<16x32xf32>
    %236 = arith.addf %234, %235 : vector<16x32xf32>
    %c0_92 = arith.constant 0 : index
    %c0_93 = arith.constant 0 : index
    %237 = vector.load %arg15[%c0_92, %c0_93] : memref<1x32xf32, #tpu.memory_space<vmem>>, vector<1x32xf32>
    %c0_94 = arith.constant 0 : index
    %c0_95 = arith.constant 0 : index
    %238 = vector.load %arg16[%c0_94, %c0_95] : memref<1x32xf32, #tpu.memory_space<vmem>>, vector<1x32xf32>
    %239 = arith.addf %236, %132 : vector<16x32xf32>
    %cst_96 = arith.constant dense<0.000000e+00> : vector<16xf32>
    %240 = vector.multi_reduction <add>, %239, %cst_96 [1] : vector<16x32xf32> to vector<16xf32>
    %241 = vector.shape_cast %240 : vector<16xf32> to vector<16x1xf32>
    %cst_97 = arith.constant 3.200000e+01 : f32
    %242 = vector.broadcast %cst_97 : f32 to vector<16x1xf32>
    %243 = arith.divf %241, %242 : vector<16x1xf32>
    %244 = vector.broadcast %243 : vector<16x1xf32> to vector<16x32xf32>
    %245 = arith.subf %239, %244 : vector<16x32xf32>
    %246 = arith.mulf %245, %245 : vector<16x32xf32>
    %cst_98 = arith.constant dense<0.000000e+00> : vector<16xf32>
    %247 = vector.multi_reduction <add>, %246, %cst_98 [1] : vector<16x32xf32> to vector<16xf32>
    %248 = vector.shape_cast %247 : vector<16xf32> to vector<16x1xf32>
    %cst_99 = arith.constant 3.200000e+01 : f32
    %249 = vector.broadcast %cst_99 : f32 to vector<16x1xf32>
    %250 = arith.divf %248, %249 : vector<16x1xf32>
    %251 = vector.broadcast %243 : vector<16x1xf32> to vector<16x32xf32>
    %252 = arith.subf %239, %251 : vector<16x32xf32>
    %cst_100 = arith.constant 9.99999974E-6 : f32
    %253 = vector.broadcast %cst_100 : f32 to vector<16x1xf32>
    %254 = arith.addf %250, %253 : vector<16x1xf32>
    %255 = math.rsqrt %254 : vector<16x1xf32>
    %256 = vector.broadcast %255 : vector<16x1xf32> to vector<16x32xf32>
    %257 = arith.mulf %252, %256 : vector<16x32xf32>
    %258 = vector.broadcast %237 : vector<1x32xf32> to vector<16x32xf32>
    %259 = arith.mulf %257, %258 : vector<16x32xf32>
    %260 = vector.broadcast %238 : vector<1x32xf32> to vector<16x32xf32>
    %261 = arith.addf %259, %260 : vector<16x32xf32>
    %c0_101 = arith.constant 0 : index
    %c0_102 = arith.constant 0 : index
    %262 = vector.load %arg17[%c0_101, %c0_102] : memref<32x128xf32, #tpu.memory_space<vmem>>, vector<32x128xf32>
    %c0_103 = arith.constant 0 : index
    %c0_104 = arith.constant 0 : index
    %263 = vector.load %arg18[%c0_103, %c0_104] : memref<1x128xf32, #tpu.memory_space<vmem>>, vector<1x128xf32>
    %c0_105 = arith.constant 0 : index
    %c0_106 = arith.constant 0 : index
    %264 = vector.load %arg19[%c0_105, %c0_106] : memref<128x32xf32, #tpu.memory_space<vmem>>, vector<128x32xf32>
    %c0_107 = arith.constant 0 : index
    %c0_108 = arith.constant 0 : index
    %265 = vector.load %arg20[%c0_107, %c0_108] : memref<1x32xf32, #tpu.memory_space<vmem>>, vector<1x32xf32>
    %cst_109 = arith.constant dense<0.000000e+00> : vector<16x128xf32>
    %266 = tpu.matmul %261, %262, %cst_109 {dimension_numbers = #tpu.dot_dimension_numbers<[1], [0], [0], [1], [0, 0, 1, 1], [], []>} : vector<16x32xf32>, vector<32x128xf32>, vector<16x128xf32> -> vector<16x128xf32>
    %267 = vector.broadcast %263 : vector<1x128xf32> to vector<16x128xf32>
    %268 = arith.addf %266, %267 : vector<16x128xf32>
    %cst_110 = arith.constant 0.000000e+00 : f32
    %269 = vector.broadcast %cst_110 : f32 to vector<16x128xf32>
    %270 = arith.maximumf %268, %269 : vector<16x128xf32>
    %cst_111 = arith.constant dense<0.000000e+00> : vector<16x32xf32>
    %271 = tpu.matmul %270, %264, %cst_111 {dimension_numbers = #tpu.dot_dimension_numbers<[1], [0], [0], [1], [0, 0, 1, 1], [], []>} : vector<16x128xf32>, vector<128x32xf32>, vector<16x32xf32> -> vector<16x32xf32>
    %272 = vector.broadcast %265 : vector<1x32xf32> to vector<16x32xf32>
    %273 = arith.addf %271, %272 : vector<16x32xf32>
    %c0_112 = arith.constant 0 : index
    %c0_113 = arith.constant 0 : index
    %274 = vector.load %arg21[%c0_112, %c0_113] : memref<1x32xf32, #tpu.memory_space<vmem>>, vector<1x32xf32>
    %c0_114 = arith.constant 0 : index
    %c0_115 = arith.constant 0 : index
    %275 = vector.load %arg22[%c0_114, %c0_115] : memref<1x32xf32, #tpu.memory_space<vmem>>, vector<1x32xf32>
    %276 = arith.addf %273, %261 : vector<16x32xf32>
    %cst_116 = arith.constant dense<0.000000e+00> : vector<16xf32>
    %277 = vector.multi_reduction <add>, %276, %cst_116 [1] : vector<16x32xf32> to vector<16xf32>
    %278 = vector.shape_cast %277 : vector<16xf32> to vector<16x1xf32>
    %cst_117 = arith.constant 3.200000e+01 : f32
    %279 = vector.broadcast %cst_117 : f32 to vector<16x1xf32>
    %280 = arith.divf %278, %279 : vector<16x1xf32>
    %281 = vector.broadcast %280 : vector<16x1xf32> to vector<16x32xf32>
    %282 = arith.subf %276, %281 : vector<16x32xf32>
    %283 = arith.mulf %282, %282 : vector<16x32xf32>
    %cst_118 = arith.constant dense<0.000000e+00> : vector<16xf32>
    %284 = vector.multi_reduction <add>, %283, %cst_118 [1] : vector<16x32xf32> to vector<16xf32>
    %285 = vector.shape_cast %284 : vector<16xf32> to vector<16x1xf32>
    %cst_119 = arith.constant 3.200000e+01 : f32
    %286 = vector.broadcast %cst_119 : f32 to vector<16x1xf32>
    %287 = arith.divf %285, %286 : vector<16x1xf32>
    %288 = vector.broadcast %280 : vector<16x1xf32> to vector<16x32xf32>
    %289 = arith.subf %276, %288 : vector<16x32xf32>
    %cst_120 = arith.constant 9.99999974E-6 : f32
    %290 = vector.broadcast %cst_120 : f32 to vector<16x1xf32>
    %291 = arith.addf %287, %290 : vector<16x1xf32>
    %292 = math.rsqrt %291 : vector<16x1xf32>
    %293 = vector.broadcast %292 : vector<16x1xf32> to vector<16x32xf32>
    %294 = arith.mulf %289, %293 : vector<16x32xf32>
    %295 = vector.broadcast %274 : vector<1x32xf32> to vector<16x32xf32>
    %296 = arith.mulf %294, %295 : vector<16x32xf32>
    %297 = vector.broadcast %275 : vector<1x32xf32> to vector<16x32xf32>
    %298 = arith.addf %296, %297 : vector<16x32xf32>
    %299 = vector.shape_cast %298 : vector<16x32xf32> to vector<2x8x32xf32>
    %c0_121 = arith.constant 0 : index
    %c0_122 = arith.constant 0 : index
    %c0_123 = arith.constant 0 : index
    %300 = vector.load %arg23[%c0_121, %c0_122, %c0_123] : memref<2x8x32xf32, #tpu.memory_space<vmem>>, vector<2x8x32xf32>
    tpu.vector_store %arg23[%c0_121, %c0_122, %c0_123], %299 {strides = array<i32>} : memref<2x8x32xf32, #tpu.memory_space<vmem>>, vector<2x8x32xf32>,
    return
  }
}

module attributes {stable_mosaic.version = 11 : i64} {
  func.func @_decoder_block_kernel(%arg0: memref<2x8x32xf32, #tpu.memory_space<vmem>>, %arg1: memref<2x8x32xf32, #tpu.memory_space<vmem>>, %arg2: memref<2x8xf32, #tpu.memory_space<vmem>>, %arg3: memref<32x32xf32, #tpu.memory_space<vmem>>, %arg4: memref<32x32xf32, #tpu.memory_space<vmem>>, %arg5: memref<32x32xf32, #tpu.memory_space<vmem>>, %arg6: memref<32x32xf32, #tpu.memory_space<vmem>>, %arg7: memref<1x32xf32, #tpu.memory_space<vmem>>, %arg8: memref<1x32xf32, #tpu.memory_space<vmem>>, %arg9: memref<1x32xf32, #tpu.memory_space<vmem>>, %arg10: memref<32x32xf32, #tpu.memory_space<vmem>>, %arg11: memref<32x32xf32, #tpu.memory_space<vmem>>, %arg12: memref<32x32xf32, #tpu.memory_space<vmem>>, %arg13: memref<32x32xf32, #tpu.memory_space<vmem>>, %arg14: memref<1x32xf32, #tpu.memory_space<vmem>>, %arg15: memref<1x32xf32, #tpu.memory_space<vmem>>, %arg16: memref<1x32xf32, #tpu.memory_space<vmem>>, %arg17: memref<32x128xf32, #tpu.memory_space<vmem>>, %arg18: memref<1x128xf32, #tpu.memory_space<vmem>>, %arg19: memref<128x32xf32, #tpu.memory_space<vmem>>, %arg20: memref<1x32xf32, #tpu.memory_space<vmem>>, %arg21: memref<1x32xf32, #tpu.memory_space<vmem>>, %arg22: memref<1x32xf32, #tpu.memory_space<vmem>>, %arg23: memref<2x8x32xf32, #tpu.memory_space<vmem>>) attributes {dimension_semantics = [], scalar_prefetch = 0 : i64, scratch_operands = 0 : i64, tpu.core_type = #tpu.core_type<tc>} {
    %c0 = arith.constant 0 : index
    %c0_0 = arith.constant 0 : index
    %c0_1 = arith.constant 0 : index
    %0 = vector.load %arg0[%c0, %c0_0, %c0_1] : memref<2x8x32xf32, #tpu.memory_space<vmem>>, vector<2x8x32xf32>
    %1 = vector.shape_cast %0 : vector<2x8x32xf32> to vector<16x32xf32>
    %c0_2 = arith.constant 0 : index
    %c0_3 = arith.constant 0 : index
    %c0_4 = arith.constant 0 : index
    %2 = vector.load %arg1[%c0_2, %c0_3, %c0_4] : memref<2x8x32xf32, #tpu.memory_space<vmem>>, vector<2x8x32xf32>
    %3 = vector.shape_cast %2 : vector<2x8x32xf32> to vector<16x32xf32>
    %c0_5 = arith.constant 0 : index
    %c0_6 = arith.constant 0 : index
    %4 = vector.load %arg3[%c0_5, %c0_6] : memref<32x32xf32, #tpu.memory_space<vmem>>, vector<32x32xf32>
    %c0_7 = arith.constant 0 : index
    %c0_8 = arith.constant 0 : index
    %5 = vector.load %arg4[%c0_7, %c0_8] : memref<32x32xf32, #tpu.memory_space<vmem>>, vector<32x32xf32>
    %c0_9 = arith.constant 0 : index
    %c0_10 = arith.constant 0 : index
    %6 = vector.load %arg5[%c0_9, %c0_10] : memref<32x32xf32, #tpu.memory_space<vmem>>, vector<32x32xf32>
    %c0_11 = arith.constant 0 : index
    %c0_12 = arith.constant 0 : index
    %7 = vector.load %arg6[%c0_11, %c0_12] : memref<32x32xf32, #tpu.memory_space<vmem>>, vector<32x32xf32>
    %c0_13 = arith.constant 0 : index
    %c0_14 = arith.constant 0 : index
    %8 = vector.load %arg7[%c0_13, %c0_14] : memref<1x32xf32, #tpu.memory_space<vmem>>, vector<1x32xf32>
    %cst = arith.constant dense<0.000000e+00> : vector<16x32xf32>
    %9 = tpu.matmul %1, %4, %cst {dimension_numbers = #tpu.dot_dimension_numbers<[1], [0], [0], [1], [0, 0, 1, 1], [], []>} : vector<16x32xf32>, vector<32x32xf32>, vector<16x32xf32> -> vector<16x32xf32>
    %10 = vector.shape_cast %9 : vector<16x32xf32> to vector<2x8x32xf32>
    %cst_15 = arith.constant dense<0.000000e+00> : vector<16x32xf32>
    %11 = tpu.matmul %1, %5, %cst_15 {dimension_numbers = #tpu.dot_dimension_numbers<[1], [0], [0], [1], [0, 0, 1, 1], [], []>} : vector<16x32xf32>, vector<32x32xf32>, vector<16x32xf32> -> vector<16x32xf32>
    %12 = vector.shape_cast %11 : vector<16x32xf32> to vector<2x8x32xf32>
    %cst_16 = arith.constant dense<0.000000e+00> : vector<16x32xf32>
    %13 = tpu.matmul %1, %6, %cst_16 {dimension_numbers = #tpu.dot_dimension_numbers<[1], [0], [0], [1], [0, 0, 1, 1], [], []>} : vector<16x32xf32>, vector<32x32xf32>, vector<16x32xf32> -> vector<16x32xf32>
    %14 = vector.shape_cast %13 : vector<16x32xf32> to vector<2x8x32xf32>
    %15 = tpu.iota {dimensions = array<i32: 0>} : vector<8x8xi32>
    %16 = tpu.iota {dimensions = array<i32: 1>} : vector<8x8xi32>
    %17 = arith.cmpi sle, %16, %15 : vector<8x8xi32>
    %18 = vector.shape_cast %17 : vector<8x8xi1> to vector<1x8x8xi1>
    %19 = vector.extract_strided_slice %10 {offsets = [0, 0, 0], sizes = [2, 8, 8], strides = [1, 1, 1]} : vector<2x8x32xf32> to vector<2x8x8xf32>
    %20 = vector.extract_strided_slice %12 {offsets = [0, 0, 0], sizes = [2, 8, 8], strides = [1, 1, 1]} : vector<2x8x32xf32> to vector<2x8x8xf32>
    "tpu.trace_start"() <{level = 10 : i32, message = "nqd,nkd->nqk"}> : () -> ()
    %cst_17 = arith.constant dense<0.000000e+00> : vector<2x8x8xf32>
    %21 = tpu.matmul %19, %20, %cst_17 {dimension_numbers = #tpu.dot_dimension_numbers<[2], [2], [1], [1], [0, 0, 0, 1, 1, 1], [0], [0]>} : vector<2x8x8xf32>, vector<2x8x8xf32>, vector<2x8x8xf32> -> vector<2x8x8xf32>
    %cst_18 = arith.constant -1.000000e+20 : f32
    "tpu.trace_stop"() : () -> ()
    %22 = vector.shape_cast %18 : vector<1x8x8xi1> to vector<1x8x8xi1>
    %23 = vector.broadcast %22 : vector<1x8x8xi1> to vector<2x8x8xi1>
    %24 = vector.broadcast %cst_18 : f32 to vector<2x8x8xf32>
    %25 = arith.select %23, %21, %24 : vector<2x8x8xi1>, vector<2x8x8xf32>
    %cst_19 = arith.constant 0.176776692 : f32
    %26 = vector.broadcast %cst_19 : f32 to vector<2x8x8xf32>
    %27 = arith.mulf %25, %26 : vector<2x8x8xf32>
    %cst_20 = arith.constant dense<0xFF800000> : vector<2x8xf32>
    %28 = vector.multi_reduction <maximumf>, %27, %cst_20 [2] : vector<2x8x8xf32> to vector<2x8xf32>
    %29 = vector.shape_cast %28 : vector<2x8xf32> to vector<2x8x1xf32>
    %30 = vector.broadcast %29 : vector<2x8x1xf32> to vector<2x8x8xf32>
    %31 = arith.subf %27, %30 : vector<2x8x8xf32>
    %32 = math.exp %31 : vector<2x8x8xf32>
    %cst_21 = arith.constant dense<0.000000e+00> : vector<2x8xf32>
    %33 = vector.multi_reduction <add>, %32, %cst_21 [2] : vector<2x8x8xf32> to vector<2x8xf32>
    %34 = vector.shape_cast %33 : vector<2x8xf32> to vector<2x8x1xf32>
    %35 = tpu.reciprocal %34 {approx = true} : vector<2x8x1xf32> -> vector<2x8x1xf32>
    %36 = vector.broadcast %35 : vector<2x8x1xf32> to vector<2x8x8xf32>
    %37 = arith.mulf %32, %36 : vector<2x8x8xf32>
    %38 = vector.extract_strided_slice %14 {offsets = [0, 0, 0], sizes = [2, 8, 8], strides = [1, 1, 1]} : vector<2x8x32xf32> to vector<2x8x8xf32>
    "tpu.trace_start"() <{level = 10 : i32, message = "nqk,nkd->nqd"}> : () -> ()
    %cst_22 = arith.constant dense<0.000000e+00> : vector<2x8x8xf32>
    %39 = tpu.matmul %37, %38, %cst_22 {dimension_numbers = #tpu.dot_dimension_numbers<[2], [1], [1], [2], [0, 0, 0, 1, 1, 2], [0], [0]>} : vector<2x8x8xf32>, vector<2x8x8xf32>, vector<2x8x8xf32> -> vector<2x8x8xf32>
    "tpu.trace_stop"() : () -> ()
    %40 = vector.extract_strided_slice %10 {offsets = [0, 0, 8], sizes = [2, 8, 8], strides = [1, 1, 1]} : vector<2x8x32xf32> to vector<2x8x8xf32>
    %41 = vector.extract_strided_slice %12 {offsets = [0, 0, 8], sizes = [2, 8, 8], strides = [1, 1, 1]} : vector<2x8x32xf32> to vector<2x8x8xf32>
    "tpu.trace_start"() <{level = 10 : i32, message = "nqd,nkd->nqk"}> : () -> ()
    %cst_23 = arith.constant dense<0.000000e+00> : vector<2x8x8xf32>
    %42 = tpu.matmul %40, %41, %cst_23 {dimension_numbers = #tpu.dot_dimension_numbers<[2], [2], [1], [1], [0, 0, 0, 1, 1, 1], [0], [0]>} : vector<2x8x8xf32>, vector<2x8x8xf32>, vector<2x8x8xf32> -> vector<2x8x8xf32>
    %cst_24 = arith.constant -1.000000e+20 : f32
    "tpu.trace_stop"() : () -> ()
    %43 = vector.shape_cast %18 : vector<1x8x8xi1> to vector<1x8x8xi1>
    %44 = vector.broadcast %43 : vector<1x8x8xi1> to vector<2x8x8xi1>
    %45 = vector.broadcast %cst_24 : f32 to vector<2x8x8xf32>
    %46 = arith.select %44, %42, %45 : vector<2x8x8xi1>, vector<2x8x8xf32>
    %cst_25 = arith.constant 0.176776692 : f32
    %47 = vector.broadcast %cst_25 : f32 to vector<2x8x8xf32>
    %48 = arith.mulf %46, %47 : vector<2x8x8xf32>
    %cst_26 = arith.constant dense<0xFF800000> : vector<2x8xf32>
    %49 = vector.multi_reduction <maximumf>, %48, %cst_26 [2] : vector<2x8x8xf32> to vector<2x8xf32>
    %50 = vector.shape_cast %49 : vector<2x8xf32> to vector<2x8x1xf32>
    %51 = vector.broadcast %50 : vector<2x8x1xf32> to vector<2x8x8xf32>
    %52 = arith.subf %48, %51 : vector<2x8x8xf32>
    %53 = math.exp %52 : vector<2x8x8xf32>
    %cst_27 = arith.constant dense<0.000000e+00> : vector<2x8xf32>
    %54 = vector.multi_reduction <add>, %53, %cst_27 [2] : vector<2x8x8xf32> to vector<2x8xf32>
    %55 = vector.shape_cast %54 : vector<2x8xf32> to vector<2x8x1xf32>
    %56 = tpu.reciprocal %55 {approx = true} : vector<2x8x1xf32> -> vector<2x8x1xf32>
    %57 = vector.broadcast %56 : vector<2x8x1xf32> to vector<2x8x8xf32>
    %58 = arith.mulf %53, %57 : vector<2x8x8xf32>
    %59 = vector.extract_strided_slice %14 {offsets = [0, 0, 8], sizes = [2, 8, 8], strides = [1, 1, 1]} : vector<2x8x32xf32> to vector<2x8x8xf32>
    "tpu.trace_start"() <{level = 10 : i32, message = "nqk,nkd->nqd"}> : () -> ()
    %cst_28 = arith.constant dense<0.000000e+00> : vector<2x8x8xf32>
    %60 = tpu.matmul %58, %59, %cst_28 {dimension_numbers = #tpu.dot_dimension_numbers<[2], [1], [1], [2], [0, 0, 0, 1, 1, 2], [0], [0]>} : vector<2x8x8xf32>, vector<2x8x8xf32>, vector<2x8x8xf32> -> vector<2x8x8xf32>
    "tpu.trace_stop"() : () -> ()
    %61 = vector.extract_strided_slice %10 {offsets = [0, 0, 16], sizes = [2, 8, 8], strides = [1, 1, 1]} : vector<2x8x32xf32> to vector<2x8x8xf32>
    %62 = vector.extract_strided_slice %12 {offsets = [0, 0, 16], sizes = [2, 8, 8], strides = [1, 1, 1]} : vector<2x8x32xf32> to vector<2x8x8xf32>
    "tpu.trace_start"() <{level = 10 : i32, message = "nqd,nkd->nqk"}> : () -> ()
    %cst_29 = arith.constant dense<0.000000e+00> : vector<2x8x8xf32>
    %63 = tpu.matmul %61, %62, %cst_29 {dimension_numbers = #tpu.dot_dimension_numbers<[2], [2], [1], [1], [0, 0, 0, 1, 1, 1], [0], [0]>} : vector<2x8x8xf32>, vector<2x8x8xf32>, vector<2x8x8xf32> -> vector<2x8x8xf32>
    %cst_30 = arith.constant -1.000000e+20 : f32
    "tpu.trace_stop"() : () -> ()
    %64 = vector.shape_cast %18 : vector<1x8x8xi1> to vector<1x8x8xi1>
    %65 = vector.broadcast %64 : vector<1x8x8xi1> to vector<2x8x8xi1>
    %66 = vector.broadcast %cst_30 : f32 to vector<2x8x8xf32>
    %67 = arith.select %65, %63, %66 : vector<2x8x8xi1>, vector<2x8x8xf32>
    %cst_31 = arith.constant 0.176776692 : f32
    %68 = vector.broadcast %cst_31 : f32 to vector<2x8x8xf32>
    %69 = arith.mulf %67, %68 : vector<2x8x8xf32>
    %cst_32 = arith.constant dense<0xFF800000> : vector<2x8xf32>
    %70 = vector.multi_reduction <maximumf>, %69, %cst_32 [2] : vector<2x8x8xf32> to vector<2x8xf32>
    %71 = vector.shape_cast %70 : vector<2x8xf32> to vector<2x8x1xf32>
    %72 = vector.broadcast %71 : vector<2x8x1xf32> to vector<2x8x8xf32>
    %73 = arith.subf %69, %72 : vector<2x8x8xf32>
    %74 = math.exp %73 : vector<2x8x8xf32>
    %cst_33 = arith.constant dense<0.000000e+00> : vector<2x8xf32>
    %75 = vector.multi_reduction <add>, %74, %cst_33 [2] : vector<2x8x8xf32> to vector<2x8xf32>
    %76 = vector.shape_cast %75 : vector<2x8xf32> to vector<2x8x1xf32>
    %77 = tpu.reciprocal %76 {approx = true} : vector<2x8x1xf32> -> vector<2x8x1xf32>
    %78 = vector.broadcast %77 : vector<2x8x1xf32> to vector<2x8x8xf32>
    %79 = arith.mulf %74, %78 : vector<2x8x8xf32>
    %80 = vector.extract_strided_slice %14 {offsets = [0, 0, 16], sizes = [2, 8, 8], strides = [1, 1, 1]} : vector<2x8x32xf32> to vector<2x8x8xf32>
    "tpu.trace_start"() <{level = 10 : i32, message = "nqk,nkd->nqd"}> : () -> ()
    %cst_34 = arith.constant dense<0.000000e+00> : vector<2x8x8xf32>
    %81 = tpu.matmul %79, %80, %cst_34 {dimension_numbers = #tpu.dot_dimension_numbers<[2], [1], [1], [2], [0, 0, 0, 1, 1, 2], [0], [0]>} : vector<2x8x8xf32>, vector<2x8x8xf32>, vector<2x8x8xf32> -> vector<2x8x8xf32>
    "tpu.trace_stop"() : () -> ()
    %82 = vector.extract_strided_slice %10 {offsets = [0, 0, 24], sizes = [2, 8, 8], strides = [1, 1, 1]} : vector<2x8x32xf32> to vector<2x8x8xf32>
    %83 = vector.extract_strided_slice %12 {offsets = [0, 0, 24], sizes = [2, 8, 8], strides = [1, 1, 1]} : vector<2x8x32xf32> to vector<2x8x8xf32>
    "tpu.trace_start"() <{level = 10 : i32, message = "nqd,nkd->nqk"}> : () -> ()
    %cst_35 = arith.constant dense<0.000000e+00> : vector<2x8x8xf32>
    %84 = tpu.matmul %82, %83, %cst_35 {dimension_numbers = #tpu.dot_dimension_numbers<[2], [2], [1], [1], [0, 0, 0, 1, 1, 1], [0], [0]>} : vector<2x8x8xf32>, vector<2x8x8xf32>, vector<2x8x8xf32> -> vector<2x8x8xf32>
    %cst_36 = arith.constant -1.000000e+20 : f32
    "tpu.trace_stop"() : () -> ()
    %85 = vector.shape_cast %18 : vector<1x8x8xi1> to vector<1x8x8xi1>
    %86 = vector.broadcast %85 : vector<1x8x8xi1> to vector<2x8x8xi1>
    %87 = vector.broadcast %cst_36 : f32 to vector<2x8x8xf32>
    %88 = arith.select %86, %84, %87 : vector<2x8x8xi1>, vector<2x8x8xf32>
    %cst_37 = arith.constant 0.176776692 : f32
    %89 = vector.broadcast %cst_37 : f32 to vector<2x8x8xf32>
    %90 = arith.mulf %88, %89 : vector<2x8x8xf32>
    %cst_38 = arith.constant dense<0xFF800000> : vector<2x8xf32>
    %91 = vector.multi_reduction <maximumf>, %90, %cst_38 [2] : vector<2x8x8xf32> to vector<2x8xf32>
    %92 = vector.shape_cast %91 : vector<2x8xf32> to vector<2x8x1xf32>
    %93 = vector.broadcast %92 : vector<2x8x1xf32> to vector<2x8x8xf32>
    %94 = arith.subf %90, %93 : vector<2x8x8xf32>
    %95 = math.exp %94 : vector<2x8x8xf32>
    %cst_39 = arith.constant dense<0.000000e+00> : vector<2x8xf32>
    %96 = vector.multi_reduction <add>, %95, %cst_39 [2] : vector<2x8x8xf32> to vector<2x8xf32>
    %97 = vector.shape_cast %96 : vector<2x8xf32> to vector<2x8x1xf32>
    %98 = tpu.reciprocal %97 {approx = true} : vector<2x8x1xf32> -> vector<2x8x1xf32>
    %99 = vector.broadcast %98 : vector<2x8x1xf32> to vector<2x8x8xf32>
    %100 = arith.mulf %95, %99 : vector<2x8x8xf32>
    %101 = vector.extract_strided_slice %14 {offsets = [0, 0, 24], sizes = [2, 8, 8], strides = [1, 1, 1]} : vector<2x8x32xf32> to vector<2x8x8xf32>
    "tpu.trace_start"() <{level = 10 : i32, message = "nqk,nkd->nqd"}> : () -> ()
    %cst_40 = arith.constant dense<0.000000e+00> : vector<2x8x8xf32>
    %102 = tpu.matmul %100, %101, %cst_40 {dimension_numbers = #tpu.dot_dimension_numbers<[2], [1], [1], [2], [0, 0, 0, 1, 1, 2], [0], [0]>} : vector<2x8x8xf32>, vector<2x8x8xf32>, vector<2x8x8xf32> -> vector<2x8x8xf32>
    "tpu.trace_stop"() : () -> ()
    %103 = tpu.concatenate %39, %60, %81, %102 in 2 : vector<2x8x8xf32>, vector<2x8x8xf32>, vector<2x8x8xf32>, vector<2x8x8xf32> -> vector<2x8x32xf32>
    %104 = vector.shape_cast %103 : vector<2x8x32xf32> to vector<16x32xf32>
    %cst_41 = arith.constant dense<0.000000e+00> : vector<16x32xf32>
    %105 = tpu.matmul %104, %7, %cst_41 {dimension_numbers = #tpu.dot_dimension_numbers<[1], [0], [0], [1], [0, 0, 1, 1], [], []>} : vector<16x32xf32>, vector<32x32xf32>, vector<16x32xf32> -> vector<16x32xf32>
    %106 = vector.broadcast %8 : vector<1x32xf32> to vector<16x32xf32>
    %107 = arith.addf %105, %106 : vector<16x32xf32>
    %c0_42 = arith.constant 0 : index
    %c0_43 = arith.constant 0 : index
    %108 = vector.load %arg8[%c0_42, %c0_43] : memref<1x32xf32, #tpu.memory_space<vmem>>, vector<1x32xf32>
    %c0_44 = arith.constant 0 : index
    %c0_45 = arith.constant 0 : index
    %109 = vector.load %arg9[%c0_44, %c0_45] : memref<1x32xf32, #tpu.memory_space<vmem>>, vector<1x32xf32>
    %110 = arith.addf %107, %1 : vector<16x32xf32>
    %cst_46 = arith.constant dense<0.000000e+00> : vector<16xf32>
    %111 = vector.multi_reduction <add>, %110, %cst_46 [1] : vector<16x32xf32> to vector<16xf32>
    %112 = vector.shape_cast %111 : vector<16xf32> to vector<16x1xf32>
    %cst_47 = arith.constant 3.200000e+01 : f32
    %113 = vector.broadcast %cst_47 : f32 to vector<16x1xf32>
    %114 = arith.divf %112, %113 : vector<16x1xf32>
    %115 = vector.broadcast %114 : vector<16x1xf32> to vector<16x32xf32>
    %116 = arith.subf %110, %115 : vector<16x32xf32>
    %117 = arith.mulf %116, %116 : vector<16x32xf32>
    %cst_48 = arith.constant dense<0.000000e+00> : vector<16xf32>
    %118 = vector.multi_reduction <add>, %117, %cst_48 [1] : vector<16x32xf32> to vector<16xf32>
    %119 = vector.shape_cast %118 : vector<16xf32> to vector<16x1xf32>
    %cst_49 = arith.constant 3.200000e+01 : f32
    %120 = vector.broadcast %cst_49 : f32 to vector<16x1xf32>
    %121 = arith.divf %119, %120 : vector<16x1xf32>
    %122 = vector.broadcast %114 : vector<16x1xf32> to vector<16x32xf32>
    %123 = arith.subf %110, %122 : vector<16x32xf32>
    %cst_50 = arith.constant 9.99999974E-6 : f32
    %124 = vector.broadcast %cst_50 : f32 to vector<16x1xf32>
    %125 = arith.addf %121, %124 : vector<16x1xf32>
    %126 = math.rsqrt %125 : vector<16x1xf32>
    %127 = vector.broadcast %126 : vector<16x1xf32> to vector<16x32xf32>
    %128 = arith.mulf %123, %127 : vector<16x32xf32>
    %129 = vector.broadcast %108 : vector<1x32xf32> to vector<16x32xf32>
    %130 = arith.mulf %128, %129 : vector<16x32xf32>
    %131 = vector.broadcast %109 : vector<1x32xf32> to vector<16x32xf32>
    %132 = arith.addf %130, %131 : vector<16x32xf32>
    %c0_51 = arith.constant 0 : index
    %c0_52 = arith.constant 0 : index
    %133 = vector.load %arg2[%c0_51, %c0_52] : memref<2x8xf32, #tpu.memory_space<vmem>>, vector<2x8xf32>
    %c0_53 = arith.constant 0 : index
    %c0_54 = arith.constant 0 : index
    %134 = vector.load %arg10[%c0_53, %c0_54] : memref<32x32xf32, #tpu.memory_space<vmem>>, vector<32x32xf32>
    %c0_55 = arith.constant 0 : index
    %c0_56 = arith.constant 0 : index
    %135 = vector.load %arg11[%c0_55, %c0_56] : memref<32x32xf32, #tpu.memory_space<vmem>>, vector<32x32xf32>
    %c0_57 = arith.constant 0 : index
    %c0_58 = arith.constant 0 : index
    %136 = vector.load %arg12[%c0_57, %c0_58] : memref<32x32xf32, #tpu.memory_space<vmem>>, vector<32x32xf32>
    %c0_59 = arith.constant 0 : index
    %c0_60 = arith.constant 0 : index
    %137 = vector.load %arg13[%c0_59, %c0_60] : memref<32x32xf32, #tpu.memory_space<vmem>>, vector<32x32xf32>
    %c0_61 = arith.constant 0 : index
    %c0_62 = arith.constant 0 : index
    %138 = vector.load %arg14[%c0_61, %c0_62] : memref<1x32xf32, #tpu.memory_space<vmem>>, vector<1x32xf32>
    %cst_63 = arith.constant dense<0.000000e+00> : vector<16x32xf32>
    %139 = tpu.matmul %132, %134, %cst_63 {dimension_numbers = #tpu.dot_dimension_numbers<[1], [0], [0], [1], [0, 0, 1, 1], [], []>} : vector<16x32xf32>, vector<32x32xf32>, vector<16x32xf32> -> vector<16x32xf32>
    %140 = vector.shape_cast %139 : vector<16x32xf32> to vector<2x8x32xf32>
    %cst_64 = arith.constant dense<0.000000e+00> : vector<16x32xf32>
    %141 = tpu.matmul %3, %135, %cst_64 {dimension_numbers = #tpu.dot_dimension_numbers<[1], [0], [0], [1], [0, 0, 1, 1], [], []>} : vector<16x32xf32>, vector<32x32xf32>, vector<16x32xf32> -> vector<16x32xf32>
    %142 = vector.shape_cast %141 : vector<16x32xf32> to vector<2x8x32xf32>
    %cst_65 = arith.constant dense<0.000000e+00> : vector<16x32xf32>
    %143 = tpu.matmul %3, %136, %cst_65 {dimension_numbers = #tpu.dot_dimension_numbers<[1], [0], [0], [1], [0, 0, 1, 1], [], []>} : vector<16x32xf32>, vector<32x32xf32>, vector<16x32xf32> -> vector<16x32xf32>
    %144 = vector.shape_cast %143 : vector<16x32xf32> to vector<2x8x32xf32>
    %cst_66 = arith.constant 0.000000e+00 : f32
    %145 = vector.broadcast %cst_66 : f32 to vector<2x8xf32>
    %146 = arith.cmpf one, %133, %145 : vector<2x8xf32>
    %147 = vector.shape_cast %146 : vector<2x8xi1> to vector<2x1x8xi1>
    %148 = vector.extract_strided_slice %140 {offsets = [0, 0, 0], sizes = [2, 8, 8], strides = [1, 1, 1]} : vector<2x8x32xf32> to vector<2x8x8xf32>
    %149 = vector.extract_strided_slice %142 {offsets = [0, 0, 0], sizes = [2, 8, 8], strides = [1, 1, 1]} : vector<2x8x32xf32> to vector<2x8x8xf32>
    "tpu.trace_start"() <{level = 10 : i32, message = "nqd,nkd->nqk"}> : () -> ()
    %cst_67 = arith.constant dense<0.000000e+00> : vector<2x8x8xf32>
    %150 = tpu.matmul %148, %149, %cst_67 {dimension_numbers = #tpu.dot_dimension_numbers<[2], [2], [1], [1], [0, 0, 0, 1, 1, 1], [0], [0]>} : vector<2x8x8xf32>, vector<2x8x8xf32>, vector<2x8x8xf32> -> vector<2x8x8xf32>
    %cst_68 = arith.constant -1.000000e+20 : f32
    "tpu.trace_stop"() : () -> ()
    %151 = vector.shape_cast %147 : vector<2x1x8xi1> to vector<2x1x8xi1>
    %152 = vector.broadcast %151 : vector<2x1x8xi1> to vector<2x8x8xi1>
    %153 = vector.broadcast %cst_68 : f32 to vector<2x8x8xf32>
    %154 = arith.select %152, %150, %153 : vector<2x8x8xi1>, vector<2x8x8xf32>
    %cst_69 = arith.constant 0.176776692 : f32
    %155 = vector.broadcast %cst_69 : f32 to vector<2x8x8xf32>
    %156 = arith.mulf %154, %155 : vector<2x8x8xf32>
    %cst_70 = arith.constant dense<0xFF800000> : vector<2x8xf32>
    %157 = vector.multi_reduction <maximumf>, %156, %cst_70 [2] : vector<2x8x8xf32> to vector<2x8xf32>
    %158 = vector.shape_cast %157 : vector<2x8xf32> to vector<2x8x1xf32>
    %159 = vector.broadcast %158 : vector<2x8x1xf32> to vector<2x8x8xf32>
    %160 = arith.subf %156, %159 : vector<2x8x8xf32>
    %161 = math.exp %160 : vector<2x8x8xf32>
    %cst_71 = arith.constant dense<0.000000e+00> : vector<2x8xf32>
    %162 = vector.multi_reduction <add>, %161, %cst_71 [2] : vector<2x8x8xf32> to vector<2x8xf32>
    %163 = vector.shape_cast %162 : vector<2x8xf32> to vector<2x8x1xf32>
    %164 = tpu.reciprocal %163 {approx = true} : vector<2x8x1xf32> -> vector<2x8x1xf32>
    %165 = vector.broadcast %164 : vector<2x8x1xf32> to vector<2x8x8xf32>
    %166 = arith.mulf %161, %165 : vector<2x8x8xf32>
    %167 = vector.extract_strided_slice %144 {offsets = [0, 0, 0], sizes = [2, 8, 8], strides = [1, 1, 1]} : vector<2x8x32xf32> to vector<2x8x8xf32>
    "tpu.trace_start"() <{level = 10 : i32, message = "nqk,nkd->nqd"}> : () -> ()
    %cst_72 = arith.constant dense<0.000000e+00> : vector<2x8x8xf32>
    %168 = tpu.matmul %166, %167, %cst_72 {dimension_numbers = #tpu.dot_dimension_numbers<[2], [1], [1], [2], [0, 0, 0, 1, 1, 2], [0], [0]>} : vector<2x8x8xf32>, vector<2x8x8xf32>, vector<2x8x8xf32> -> vector<2x8x8xf32>
    "tpu.trace_stop"() : () -> ()
    %169 = vector.extract_strided_slice %140 {offsets = [0, 0, 8], sizes = [2, 8, 8], strides = [1, 1, 1]} : vector<2x8x32xf32> to vector<2x8x8xf32>
    %170 = vector.extract_strided_slice %142 {offsets = [0, 0, 8], sizes = [2, 8, 8], strides = [1, 1, 1]} : vector<2x8x32xf32> to vector<2x8x8xf32>
    "tpu.trace_start"() <{level = 10 : i32, message = "nqd,nkd->nqk"}> : () -> ()
    %cst_73 = arith.constant dense<0.000000e+00> : vector<2x8x8xf32>
    %171 = tpu.matmul %169, %170, %cst_73 {dimension_numbers = #tpu.dot_dimension_numbers<[2], [2], [1], [1], [0, 0, 0, 1, 1, 1], [0], [0]>} : vector<2x8x8xf32>, vector<2x8x8xf32>, vector<2x8x8xf32> -> vector<2x8x8xf32>
    %cst_74 = arith.constant -1.000000e+20 : f32
    "tpu.trace_stop"() : () -> ()
    %172 = vector.shape_cast %147 : vector<2x1x8xi1> to vector<2x1x8xi1>
    %173 = vector.broadcast %172 : vector<2x1x8xi1> to vector<2x8x8xi1>
    %174 = vector.broadcast %cst_74 : f32 to vector<2x8x8xf32>
    %175 = arith.select %173, %171, %174 : vector<2x8x8xi1>, vector<2x8x8xf32>
    %cst_75 = arith.constant 0.176776692 : f32
    %176 = vector.broadcast %cst_75 : f32 to vector<2x8x8xf32>
    %177 = arith.mulf %175, %176 : vector<2x8x8xf32>
    %cst_76 = arith.constant dense<0xFF800000> : vector<2x8xf32>
    %178 = vector.multi_reduction <maximumf>, %177, %cst_76 [2] : vector<2x8x8xf32> to vector<2x8xf32>
    %179 = vector.shape_cast %178 : vector<2x8xf32> to vector<2x8x1xf32>
    %180 = vector.broadcast %179 : vector<2x8x1xf32> to vector<2x8x8xf32>
    %181 = arith.subf %177, %180 : vector<2x8x8xf32>
    %182 = math.exp %181 : vector<2x8x8xf32>
    %cst_77 = arith.constant dense<0.000000e+00> : vector<2x8xf32>
    %183 = vector.multi_reduction <add>, %182, %cst_77 [2] : vector<2x8x8xf32> to vector<2x8xf32>
    %184 = vector.shape_cast %183 : vector<2x8xf32> to vector<2x8x1xf32>
    %185 = tpu.reciprocal %184 {approx = true} : vector<2x8x1xf32> -> vector<2x8x1xf32>
    %186 = vector.broadcast %185 : vector<2x8x1xf32> to vector<2x8x8xf32>
    %187 = arith.mulf %182, %186 : vector<2x8x8xf32>
    %188 = vector.extract_strided_slice %144 {offsets = [0, 0, 8], sizes = [2, 8, 8], strides = [1, 1, 1]} : vector<2x8x32xf32> to vector<2x8x8xf32>
    "tpu.trace_start"() <{level = 10 : i32, message = "nqk,nkd->nqd"}> : () -> ()
    %cst_78 = arith.constant dense<0.000000e+00> : vector<2x8x8xf32>
    %189 = tpu.matmul %187, %188, %cst_78 {dimension_numbers = #tpu.dot_dimension_numbers<[2], [1], [1], [2], [0, 0, 0, 1, 1, 2], [0], [0]>} : vector<2x8x8xf32>, vector<2x8x8xf32>, vector<2x8x8xf32> -> vector<2x8x8xf32>
    "tpu.trace_stop"() : () -> ()
    %190 = vector.extract_strided_slice %140 {offsets = [0, 0, 16], sizes = [2, 8, 8], strides = [1, 1, 1]} : vector<2x8x32xf32> to vector<2x8x8xf32>
    %191 = vector.extract_strided_slice %142 {offsets = [0, 0, 16], sizes = [2, 8, 8], strides = [1, 1, 1]} : vector<2x8x32xf32> to vector<2x8x8xf32>
    "tpu.trace_start"() <{level = 10 : i32, message = "nqd,nkd->nqk"}> : () -> ()
    %cst_79 = arith.constant dense<0.000000e+00> : vector<2x8x8xf32>
    %192 = tpu.matmul %190, %191, %cst_79 {dimension_numbers = #tpu.dot_dimension_numbers<[2], [2], [1], [1], [0, 0, 0, 1, 1, 1], [0], [0]>} : vector<2x8x8xf32>, vector<2x8x8xf32>, vector<2x8x8xf32> -> vector<2x8x8xf32>
    %cst_80 = arith.constant -1.000000e+20 : f32
    "tpu.trace_stop"() : () -> ()
    %193 = vector.shape_cast %147 : vector<2x1x8xi1> to vector<2x1x8xi1>
    %194 = vector.broadcast %193 : vector<2x1x8xi1> to vector<2x8x8xi1>
    %195 = vector.broadcast %cst_80 : f32 to vector<2x8x8xf32>
    %196 = arith.select %194, %192, %195 : vector<2x8x8xi1>, vector<2x8x8xf32>
    %cst_81 = arith.constant 0.176776692 : f32
    %197 = vector.broadcast %cst_81 : f32 to vector<2x8x8xf32>
    %198 = arith.mulf %196, %197 : vector<2x8x8xf32>
    %cst_82 = arith.constant dense<0xFF800000> : vector<2x8xf32>
    %199 = vector.multi_reduction <maximumf>, %198, %cst_82 [2] : vector<2x8x8xf32> to vector<2x8xf32>
    %200 = vector.shape_cast %199 : vector<2x8xf32> to vector<2x8x1xf32>
    %201 = vector.broadcast %200 : vector<2x8x1xf32> to vector<2x8x8xf32>
    %202 = arith.subf %198, %201 : vector<2x8x8xf32>
    %203 = math.exp %202 : vector<2x8x8xf32>
    %cst_83 = arith.constant dense<0.000000e+00> : vector<2x8xf32>
    %204 = vector.multi_reduction <add>, %203, %cst_83 [2] : vector<2x8x8xf32> to vector<2x8xf32>
    %205 = vector.shape_cast %204 : vector<2x8xf32> to vector<2x8x1xf32>
    %206 = tpu.reciprocal %205 {approx = true} : vector<2x8x1xf32> -> vector<2x8x1xf32>
    %207 = vector.broadcast %206 : vector<2x8x1xf32> to vector<2x8x8xf32>
    %208 = arith.mulf %203, %207 : vector<2x8x8xf32>
    %209 = vector.extract_strided_slice %144 {offsets = [0, 0, 16], sizes = [2, 8, 8], strides = [1, 1, 1]} : vector<2x8x32xf32> to vector<2x8x8xf32>
    "tpu.trace_start"() <{level = 10 : i32, message = "nqk,nkd->nqd"}> : () -> ()
    %cst_84 = arith.constant dense<0.000000e+00> : vector<2x8x8xf32>
    %210 = tpu.matmul %208, %209, %cst_84 {dimension_numbers = #tpu.dot_dimension_numbers<[2], [1], [1], [2], [0, 0, 0, 1, 1, 2], [0], [0]>} : vector<2x8x8xf32>, vector<2x8x8xf32>, vector<2x8x8xf32> -> vector<2x8x8xf32>
    "tpu.trace_stop"() : () -> ()
    %211 = vector.extract_strided_slice %140 {offsets = [0, 0, 24], sizes = [2, 8, 8], strides = [1, 1, 1]} : vector<2x8x32xf32> to vector<2x8x8xf32>
    %212 = vector.extract_strided_slice %142 {offsets = [0, 0, 24], sizes = [2, 8, 8], strides = [1, 1, 1]} : vector<2x8x32xf32> to vector<2x8x8xf32>
    "tpu.trace_start"() <{level = 10 : i32, message = "nqd,nkd->nqk"}> : () -> ()
    %cst_85 = arith.constant dense<0.000000e+00> : vector<2x8x8xf32>
    %213 = tpu.matmul %211, %212, %cst_85 {dimension_numbers = #tpu.dot_dimension_numbers<[2], [2], [1], [1], [0, 0, 0, 1, 1, 1], [0], [0]>} : vector<2x8x8xf32>, vector<2x8x8xf32>, vector<2x8x8xf32> -> vector<2x8x8xf32>
    %cst_86 = arith.constant -1.000000e+20 : f32
    "tpu.trace_stop"() : () -> ()
    %214 = vector.shape_cast %147 : vector<2x1x8xi1> to vector<2x1x8xi1>
    %215 = vector.broadcast %214 : vector<2x1x8xi1> to vector<2x8x8xi1>
    %216 = vector.broadcast %cst_86 : f32 to vector<2x8x8xf32>
    %217 = arith.select %215, %213, %216 : vector<2x8x8xi1>, vector<2x8x8xf32>
    %cst_87 = arith.constant 0.176776692 : f32
    %218 = vector.broadcast %cst_87 : f32 to vector<2x8x8xf32>
    %219 = arith.mulf %217, %218 : vector<2x8x8xf32>
    %cst_88 = arith.constant dense<0xFF800000> : vector<2x8xf32>
    %220 = vector.multi_reduction <maximumf>, %219, %cst_88 [2] : vector<2x8x8xf32> to vector<2x8xf32>
    %221 = vector.shape_cast %220 : vector<2x8xf32> to vector<2x8x1xf32>
    %222 = vector.broadcast %221 : vector<2x8x1xf32> to vector<2x8x8xf32>
    %223 = arith.subf %219, %222 : vector<2x8x8xf32>
    %224 = math.exp %223 : vector<2x8x8xf32>
    %cst_89 = arith.constant dense<0.000000e+00> : vector<2x8xf32>
    %225 = vector.multi_reduction <add>, %224, %cst_89 [2] : vector<2x8x8xf32> to vector<2x8xf32>
    %226 = vector.shape_cast %225 : vector<2x8xf32> to vector<2x8x1xf32>
    %227 = tpu.reciprocal %226 {approx = true} : vector<2x8x1xf32> -> vector<2x8x1xf32>
    %228 = vector.broadcast %227 : vector<2x8x1xf32> to vector<2x8x8xf32>
    %229 = arith.mulf %224, %228 : vector<2x8x8xf32>
    %230 = vector.extract_strided_slice %144 {offsets = [0, 0, 24], sizes = [2, 8, 8], strides = [1, 1, 1]} : vector<2x8x32xf32> to vector<2x8x8xf32>
    "tpu.trace_start"() <{level = 10 : i32, message = "nqk,nkd->nqd"}> : () -> ()
    %cst_90 = arith.constant dense<0.000000e+00> : vector<2x8x8xf32>
    %231 = tpu.matmul %229, %230, %cst_90 {dimension_numbers = #tpu.dot_dimension_numbers<[2], [1], [1], [2], [0, 0, 0, 1, 1, 2], [0], [0]>} : vector<2x8x8xf32>, vector<2x8x8xf32>, vector<2x8x8xf32> -> vector<2x8x8xf32>
    "tpu.trace_stop"() : () -> ()
    %232 = tpu.concatenate %168, %189, %210, %231 in 2 : vector<2x8x8xf32>, vector<2x8x8xf32>, vector<2x8x8xf32>, vector<2x8x8xf32> -> vector<2x8x32xf32>
    %233 = vector.shape_cast %232 : vector<2x8x32xf32> to vector<16x32xf32>
    %cst_91 = arith.constant dense<0.000000e+00> : vector<16x32xf32>
    %234 = tpu.matmul %233, %137, %cst_91 {dimension_numbers = #tpu.dot_dimension_numbers<[1], [0], [0], [1], [0, 0, 1, 1], [], []>} : vector<16x32xf32>, vector<32x32xf32>, vector<16x32xf32> -> vector<16x32xf32>
    %235 = vector.broadcast %138 : vector<1x32xf32> to vector<16x32xf32>
    %236 = arith.addf %234, %235 : vector<16x32xf32>
    %c0_92 = arith.constant 0 : index
    %c0_93 = arith.constant 0 : index
    %237 = vector.load %arg15[%c0_92, %c0_93] : memref<1x32xf32, #tpu.memory_space<vmem>>, vector<1x32xf32>
    %c0_94 = arith.constant 0 : index
    %c0_95 = arith.constant 0 : index
    %238 = vector.load %arg16[%c0_94, %c0_95] : memref<1x32xf32, #tpu.memory_space<vmem>>, vector<1x32xf32>
    %239 = arith.addf %236, %132 : vector<16x32xf32>
    %cst_96 = arith.constant dense<0.000000e+00> : vector<16xf32>
    %240 = vector.multi_reduction <add>, %239, %cst_96 [1] : vector<16x32xf32> to vector<16xf32>
    %241 = vector.shape_cast %240 : vector<16xf32> to vector<16x1xf32>
    %cst_97 = arith.constant 3.200000e+01 : f32
    %242 = vector.broadcast %cst_97 : f32 to vector<16x1xf32>
    %243 = arith.divf %241, %242 : vector<16x1xf32>
    %244 = vector.broadcast %243 : vector<16x1xf32> to vector<16x32xf32>
    %245 = arith.subf %239, %244 : vector<16x32xf32>
    %246 = arith.mulf %245, %245 : vector<16x32xf32>
    %cst_98 = arith.constant dense<0.000000e+00> : vector<16xf32>
    %247 = vector.multi_reduction <add>, %246, %cst_98 [1] : vector<16x32xf32> to vector<16xf32>
    %248 = vector.shape_cast %247 : vector<16xf32> to vector<16x1xf32>
    %cst_99 = arith.constant 3.200000e+01 : f32
    %249 = vector.broadcast %cst_99 : f32 to vector<16x1xf32>
    %250 = arith.divf %248, %249 : vector<16x1xf32>
    %251 = vector.broadcast %243 : vector<16x1xf32> to vector<16x32xf32>
    %252 = arith.subf %239, %251 : vector<16x32xf32>
    %cst_100 = arith.constant 9.99999974E-6 : f32
    %253 = vector.broadcast %cst_100 : f32 to vector<16x1xf32>
    %254 = arith.addf %250, %253 : vector<16x1xf32>
    %255 = math.rsqrt %254 : vector<16x1xf32>
    %256 = vector.broadcast %255 : vector<16x1xf32> to vector<16x32xf32>
    %257 = arith.mulf %252, %256 : vector<16x32xf32>
    %258 = vector.broadcast %237 : vector<1x32xf32> to vector<16x32xf32>
    %259 = arith.mulf %257, %258 : vector<16x32xf32>
    %260 = vector.broadcast %238 : vector<1x32xf32> to vector<16x32xf32>
    %261 = arith.addf %259, %260 : vector<16x32xf32>
    %c0_101 = arith.constant 0 : index
    %c0_102 = arith.constant 0 : index
    %262 = vector.load %arg17[%c0_101, %c0_102] : memref<32x128xf32, #tpu.memory_space<vmem>>, vector<32x128xf32>
    %c0_103 = arith.constant 0 : index
    %c0_104 = arith.constant 0 : index
    %263 = vector.load %arg18[%c0_103, %c0_104] : memref<1x128xf32, #tpu.memory_space<vmem>>, vector<1x128xf32>
    %c0_105 = arith.constant 0 : index
    %c0_106 = arith.constant 0 : index
    %264 = vector.load %arg19[%c0_105, %c0_106] : memref<128x32xf32, #tpu.memory_space<vmem>>, vector<128x32xf32>
    %c0_107 = arith.constant 0 : index
    %c0_108 = arith.constant 0 : index
    %265 = vector.load %arg20[%c0_107, %c0_108] : memref<1x32xf32, #tpu.memory_space<vmem>>, vector<1x32xf32>
    %cst_109 = arith.constant dense<0.000000e+00> : vector<16x128xf32>
    %266 = tpu.matmul %261, %262, %cst_109 {dimension_numbers = #tpu.dot_dimension_numbers<[1], [0], [0], [1], [0, 0, 1, 1], [], []>} : vector<16x32xf32>, vector<32x128xf32>, vector<16x128xf32> -> vector<16x128xf32>
    %267 = vector.broadcast %263 : vector<1x128xf32> to vector<16x128xf32>
    %268 = arith.addf %266, %267 : vector<16x128xf32>
    %cst_110 = arith.constant 0.000000e+00 : f32
    %269 = vector.broadcast %cst_110 : f32 to vector<16x128xf32>
    %270 = arith.maximumf %268, %269 : vector<16x128xf32>
    %cst_111 = arith.constant dense<0.000000e+00> : vector<16x32xf32>
    %271 = tpu.matmul %270, %264, %cst_111 {dimension_numbers = #tpu.dot_dimension_numbers<[1], [0], [0], [1], [0, 0, 1, 1], [], []>} : vector<16x128xf32>, vector<128x32xf32>, vector<16x32xf32> -> vector<16x32xf32>
    %272 = vector.broadcast %265 : vector<1x32xf32> to vector<16x32xf32>
    %273 = arith.addf %271, %272 : vector<16x32xf32>
    %c0_112 = arith.constant 0 : index
    %c0_113 = arith.constant 0 : index
    %274 = vector.load %arg21[%c0_112, %c0_113] : memref<1x32xf32, #tpu.memory_space<vmem>>, vector<1x32xf32>
    %c0_114 = arith.constant 0 : index
    %c0_115 = arith.constant 0 : index
    %275 = vector.load %arg22[%c0_114, %c0_115] : memref<1x32xf32, #tpu.memory_space<vmem>>, vector<1x32xf32>
    %276 = arith.addf %273, %261 : vector<16x32xf32>
    %cst_116 = arith.constant dense<0.000000e+00> : vector<16xf32>
    %277 = vector.multi_reduction <add>, %276, %cst_116 [1] : vector<16x32xf32> to vector<16xf32>
    %278 = vector.shape_cast %277 : vector<16xf32> to vector<16x1xf32>
    %cst_117 = arith.constant 3.200000e+01 : f32
    %279 = vector.broadcast %cst_117 : f32 to vector<16x1xf32>
    %280 = arith.divf %278, %279 : vector<16x1xf32>
    %281 = vector.broadcast %280 : vector<16x1xf32> to vector<16x32xf32>
    %282 = arith.subf %276, %281 : vector<16x32xf32>
    %283 = arith.mulf %282, %282 : vector<16x32xf32>
    %cst_118 = arith.constant dense<0.000000e+00> : vector<16xf32>
    %284 = vector.multi_reduction <add>, %283, %cst_118 [1] : vector<16x32xf32> to vector<16xf32>
    %285 = vector.shape_cast %284 : vector<16xf32> to vector<16x1xf32>
    %cst_119 = arith.constant 3.200000e+01 : f32
    %286 = vector.broadcast %cst_119 : f32 to vector<16x1xf32>
    %287 = arith.divf %285, %286 : vector<16x1xf32>
    %288 = vector.broadcast %280 : vector<16x1xf32> to vector<16x32xf32>
    %289 = arith.subf %276, %288 : vector<16x32xf32>
    %cst_120 = arith.constant 9.99999974E-6 : f32
    %290 = vector.broadcast %cst_120 : f32 to vector<16x1xf32>
    %291 = arith.addf %287, %290 : vector<16x1xf32>
    %292 = math.rsqrt %291 : vector<16x1xf32>
    %293 = vector.broadcast %292 : vector<16x1xf32> to vector<16x32xf32>
    %294 = arith.mulf %289, %293 : vector<16x32xf32>
    %295 = vector.broadcast %274 : vector<1x32xf32> to vector<16x32xf32>
    %296 = arith.mulf %294, %295 : vector<16x32xf32>
    %297 = vector.broadcast %275 : vector<1x32xf32> to vector<16x32xf32>
    %298 = arith.addf %296, %297 : vector<16x32xf32>
    %299 = vector.shape_cast %298 : vector<16x32xf32> to vector<2x8x32xf32>
    %c0_121 = arith.constant 0 : index
    %c0_122 = arith.constant 0 : index
    %c0_123 = arith.constant 0 : index
    %300 = vector.load %arg23[%c0_121, %c0_122, %c0_123] : memref<2x8x32xf32, #tpu.memory_space<vmem>>, vector<2x8x32xf32>
    tpu.vector_store %arg23[%c0_121, %c0_122, %c0_123], %299 {strides = array<i32>} : memref<2x8x32xf32, #tpu.memory_space<vmem>>, vector<2x8x32xf32>,
    return
  }
}

</mosaic_0001>

<bundles_post_ra>
// kernel: transformer_forward.9
= control target key start
LH: loop header
LB: loop body
LE: loop exit
PB: predicated region body
PF: predicated region fallthrough
CT: control target
= control target key end

     0   :  { %vm28_vm0 = vcmask 261120   ;;  %s220_s0 = inlined_call_operand.vmem [shape: f32[2,8,32], index: 0, kind: input, shape index: {}]   ;;  %s221_s1 = inlined_call_operand.vmem [shape: f32[32,128], index: 1, kind: input, shape index: {}]   ;;  %s222_s2 = inlined_call_operand.vmem [shape: f32[1,128], index: 2, kind: input, shape index: {}]   ;;  %s223_s3 = inlined_call_operand.hbm [shape: f32[2,8,128], index: 3, kind: output, shape index: {}]  }
   0x1   :  { %v20_v0 = vld [vmem:[%s221_s1 + $0x18] sm:$0xff]  ;;  %v19_v1 = vld [vmem:[%s221_s1 + $0x10] sm:$0xff]  ;;  %v15_v2 = vld [vmem:[%s220_s0] sm:$0xff] }
   0x2   :  { %137 = vmatprep.subr.mxu0 %v20_v0  ;;  %v18_v3 = vld [vmem:[%s221_s1 + $0x8] sm:$0xff]  ;;  %145 = vmatprep.mubr.msk.f32.mxu0 %vm28_vm0, %v15_v2 }
   0x3   :  { %138 = vmatpush3.msra.mxu0 %v20_v0 }
   0x4   :  { %8 = vsyncpa [#allocation3], 0  ;;  %139 = vmatprep.subr.mxu0 %v19_v1  ;;  %v17_v4 = vld [vmem:[%s221_s1] sm:$0xff]  ;;  %v16_v5 = vld [vmem:[%s220_s0 + $0x8] sm:$0xff]  ;;  %s173_s26 = smov [#allocation2]  }
   0x5   :  { %140 = vmatpush3.msra.mxu0 %v19_v1  ;;  %v128_v6 = vld [vmem:[%s222_s2] ss:$0 sm:$0xff]  ;;  %s117_s27 = sshll.u32 %s173_s26, 4  ;;  %s118_s27 = int_to_ptr.vmem [resolvable:$true] %s117_s27 }
   0x6   :  { %141 = vmatprep.subr.mxu0 %v18_v3  ;;  %s151_s1 = scalar_lea.vmem %s118_s27, 256  ;;  %p156_p1 = scmp.lt.s32.totalorder %s118_s27, %s118_s27 }
   0x7   :  { %142 = vmatpush3.msra.mxu0 %v18_v3  ;;  %p152_p0 = scmp.ne.s32.totalorder %s118_s27, %s151_s1  ;;  %p157_p2 = scmp.lt.s32.totalorder %s151_s1, %s151_s1 }
   0x8   :  { %143 = vmatprep.subr.mxu0 %v17_v4 }
   0x9   :  { %144 = vmatpush3.msra.mxu0 %v17_v4  ;;  %p158_p3 = por %p157_p2, %p156_p1 }
   0xa   :  { %146 = vmatmul.mubr.msk.f32.vlgmr.msra.gmra.mxu0 %vm28_vm0, %v16_v5 }
   0xb   :  { %p159_p4 = pnand %p158_p3, %p152_p0 }
  0xca   :  { %v147_v7 = vpop.f32.mrf.mxu0 }
  0xcb   :  { %v107_v8 = vadd.f32 %v147_v7, %v128_v6 }
  0xcc   :  { %v101_v9 = vpop.f32.mrf.mxu0 }
  0xcd   :  { %111 = vst [vmem:[#allocation2 + $0x8] sm:$0xff] %v107_v8  ;;  %v102_v10 = vadd.f32 %v128_v6, %v101_v9 }
  0xcf   :  { %110 = vst [vmem:[#allocation2] sm:$0xff] %v102_v10 }
  0xd0   :  { %162 = shalt.err (!%p159_p4)
}
  0xd1   :  { %s174_s0 = smov 128   ;;  %s175_s28 = smov 8  }
  0xd2   :  { %123 = dma.vmem_to_hbm [thread:$0]  %s118_s27, 256, %s223_s3, [#allocation3], %s174_s0, %s174_s0, %s175_s28  }
  0xd3   :  { %171 = dma.done.wait [#allocation3], 256  }
  0xd4   :  { %172 = vsyncadd [#allocation3], 4294967040 }
  0xd5   :  { %127 = vsyncpa [#allocation3], 1 }

// kernel: transformer_forward.5
= control target key start
LH: loop header
LB: loop body
LE: loop exit
PB: predicated region body
PF: predicated region fallthrough
CT: control target
= control target key end

     0   :  { %vm70_vm0 = vcmask 261120   ;;  %v2420_v14 = vmov 0.0   ;;  %vm2421_vm1 = vmmov 0   ;;  %vm328_vm2 = vcmask 64512   ;;  %s2426_s30 = smov 104   ;;  %s2427_s16 = smov 8   ;;  %s2874_s2 = inlined_call_operand.vmem [shape: f32[32,32], index: 2, kind: input, shape index: {}]   ;;  %s2875_s0 = inlined_call_operand.vmem [shape: f32[2,8,32], index: 0, kind: input, shape index: {}]   ;;  %s2876_s3 = inlined_call_operand.vmem [shape: f32[32,32], index: 3, kind: input, shape index: {}]   ;;  %s2877_s4 = inlined_call_operand.vmem [shape: f32[32,32], index: 4, kind: input, shape index: {}]   ;;  %s2878_s1 = inlined_call_operand.vmem [shape: f32[2,8], index: 1, kind: input, shape index: {}]   ;;  %s2879_s5 = inlined_call_operand.vmem [shape: f32[32,32], index: 5, kind: input, shape index: {}]   ;;  %s2880_s6 = inlined_call_operand.vmem [shape: f32[1,32], index: 6, kind: input, shape index: {}]   ;;  %s2881_s9 = inlined_call_operand.vmem [shape: f32[32,128], index: 9, kind: input, shape index: {}]   ;;  %s2882_s11 = inlined_call_operand.vmem [shape: f32[128,32], index: 11, kind: input, shape index: {}]   ;;  %s2883_s7 = inlined_call_operand.vmem [shape: f32[1,32], index: 7, kind: input, shape index: {}]   ;;  %s2884_s8 = inlined_call_operand.vmem [shape: f32[1,32], index: 8, kind: input, shape index: {}]   ;;  %s2885_s10 = inlined_call_operand.vmem [shape: f32[1,128], index: 10, kind: input, shape index: {}]   ;;  %s2886_s12 = inlined_call_operand.vmem [shape: f32[1,32], index: 12, kind: input, shape index: {}]   ;;  %s2887_s13 = inlined_call_operand.vmem [shape: f32[1,32], index: 13, kind: input, shape index: {}]   ;;  %s2888_s14 = inlined_call_operand.vmem [shape: f32[1,32], index: 14, kind: input, shape index: {}]   ;;  %s2889_s15 = inlined_call_operand.vmem [shape: f32[2,8,32], index: 15, kind: output, shape index: {}]  }
   0x1   :  { %v56_v0 = vld [vmem:[%s2874_s2 + $0x18] sm:$0xff]  ;;  %v55_v1 = vld [vmem:[%s2874_s2 + $0x10] sm:$0xff]  ;;  %v2519_v2 = vld [vmem:[%s2875_s0] sm:$0xff]  ;;  %2243 = vmatprep.subr.mxu0 %v2420_v14  ;;  %2245 = vmatprep.mubr.msk.f32.mxu0 %vm2421_vm1, %v2420_v14  ;;  %v2423_v21 = vmov 1966171168   ;;  %v307_v23 = vlaneseq  ;;  %v2424_v28 = vmov 0  }
   0x2   :  { %2200 = vmatprep.subr.mxu1 %v56_v0  ;;  %v54_v3 = vld [vmem:[%s2874_s2 + $0x8] sm:$0xff]  ;;  %2208 = vmatprep.mubr.msk.f32.mxu1 %vm70_vm0, %v2519_v2  ;;  %v53_v4 = vld [vmem:[%s2874_s2] sm:$0xff]  ;;  %v60_v6 = vld [vmem:[%s2876_s3 + $0x18] sm:$0xff]  ;;  %v305_v22 = vunpack.c.l.s4 %v2423_v21  ;;  %s2428_s17 = smov 16   ;;  %s2429_s24 = smov 24   ;;  %vm1698_vm8 = vcmask 195584  }
   0x3   :  { %2201 = vmatpush3.msra.mxu1 %v56_v0  ;;  %v2532_v5 = vld [vmem:[%s2875_s0 + $0x8] sm:$0xff]  ;;  %v59_v7 = vld [vmem:[%s2876_s3 + $0x10] sm:$0xff]  ;;  %v57_v9 = vld [vmem:[%s2876_s3] sm:$0xff]  ;;  %v308_v26 = vshrl.u32 %v307_v23, 7  ;;  %vm1695_vm9 = vcmask 130048  }
   0x4   :  { %2202 = vmatprep.subr.mxu1 %v55_v1  ;;  %v58_v8 = vld [vmem:[%s2876_s3 + $0x8] sm:$0xff]  ;;  %v64_v10 = vld [vmem:[%s2877_s4 + $0x18] sm:$0xff]  ;;  %v63_v11 = vld [vmem:[%s2877_s4 + $0x10] sm:$0xff]  ;;  %v306_v25 = vunpack.c.0.s8 %v305_v22 }
   0x5   :  { %2203 = vmatpush3.msra.mxu1 %v55_v1  ;;  %v62_v12 = vld [vmem:[%s2877_s4 + $0x8] sm:$0xff]  ;;  %v61_v13 = vld [vmem:[%s2877_s4] sm:$0xff]  ;;  %s2422_s4 = smov 120   ;;  %v485_v34 = vsub.s32 0, %v308_v26 }
   0x6   :  { %2204 = vmatprep.subr.mxu1 %v54_v3  ;;  %v52_v24 = vld [vmem:[%s2878_s1] sm:$0x3]  ;;  %v309_v27 = vsub.s32 %v306_v25, %v308_v26  ;;  %s2425_s1 = smov 112  }
   0x7   :  { %2205 = vmatpush3.msra.mxu1 %v54_v3  ;;  %vm302_vm3 = vcmp.ne.f32.partialorder %v52_v24, 0.0 }
   0x8   :  { %2206 = vmatprep.subr.mxu1 %v53_v4  ;;  %v303_v29 = vsel %vm302_vm3, 1, %v2424_v28 }
   0x9   :  { %2207 = vmatpush3.msra.mxu1 %v53_v4  ;;  %v310_v30 = vrot.slane %v303_v29, %v309_v27 }
   0xa   :  { %2209 = vmatmul.mubr.msk.f32.vlgmr.msra.gmra.mxu1 %vm70_vm0, %v2532_v5  ;;  %2211 = vmatprep.subr.mxu1 %v60_v6 }
   0xb   :  { %2212 = vmatpush3.msra.mxu1 %v60_v6  ;;  %2219 = vmatprep.mubr.msk.f32.mxu1 %vm70_vm0, %v2519_v2  ;;  %v318_v31 = vrot.slane %v310_v30, %v309_v27  ;;  %v311_v32 = vcombine.high %v310_v30, %v310_v30 }
   0xc   :  { %2213 = vmatprep.subr.mxu1 %v59_v7 }
   0xd   :  { %2214 = vmatpush3.msra.mxu1 %v59_v7  ;;  %vm326_vm4 = vcmp.ne.s32.totalorder %v318_v31, 0  ;;  %v325_v33 = vrot.slane %v311_v32, %v309_v27 }
   0xe   :  { %2215 = vmatprep.subr.mxu1 %v58_v8  ;;  %v481_v35 = vsel %vm326_vm4, 1, %v2424_v28 }
   0xf   :  { %2216 = vmatpush3.msra.mxu1 %v58_v8  ;;  %vm327_vm5 = vcmp.ne.s32.totalorder %v325_v33, 0  ;;  %v2611_v36 = vrot.slane %v481_v35, %v485_v34 }
  0x10   :  { %2217 = vmatprep.subr.mxu1 %v57_v9  ;;  %v482_v37 = vsel %vm327_vm5, 1, %v2424_v28 }
  0x11   :  { %2218 = vmatpush3.msra.mxu1 %v57_v9  ;;  %vm491_vm6 = vcmp.eq.s32.totalorder %v2611_v36, 1  ;;  %v2614_v38 = vrot.slane %v482_v37, %v485_v34 }
  0x12   :  { %2220 = vmatmul.mubr.msk.f32.vlgmr.msra.gmra.mxu1 %vm70_vm0, %v2532_v5  ;;  %2222 = vmatprep.subr.mxu1 %v64_v10 }
  0x13   :  { %2230 = vmatprep.mubr.msk.f32.mxu1 %vm70_vm0, %v2519_v2  ;;  %2223 = vmatpush3.msra.mxu1 %v64_v10  ;;  %vm492_vm7 = vcmp.eq.s32.totalorder %v2614_v38, 1 }
  0x14   :  { %2224 = vmatprep.subr.mxu1 %v63_v11 }
  0x15   :  { %2225 = vmatpush3.msra.mxu1 %v63_v11 }
  0x16   :  { %2226 = vmatprep.subr.mxu1 %v62_v12 }
  0x17   :  { %2227 = vmatpush3.msra.mxu1 %v62_v12 }
  0x18   :  { %2228 = vmatprep.subr.mxu1 %v61_v13 }
  0x19   :  { %2229 = vmatpush3.msra.mxu1 %v61_v13 }
  0x1a   :  { %2231 = vmatmul.mubr.msk.f32.vlgmr.msra.gmra.mxu1 %vm70_vm0, %v2532_v5  ;;  %2233 = vmatprep.subr.mxu1 %v2420_v14 }
  0x1b   :  { %2235 = vmatprep.mubr.msk.f32.mxu1 %vm2421_vm1, %v2420_v14 }
  0xca   :  { %v2574_v15 = vpop.f32.mrf.mxu1 }
  0xcc   :  { %v2576_v16 = vpop.f32.mrf.mxu1 }
  0xd2   :  { %v2578_v17 = vpop.f32.mrf.mxu1 }
  0xd3   :  { %745 = vrot.lane.b32.xlu1 %v2578_v17, %s2422_s4 }
  0xd4   :  { %v2582_v18 = vpop.f32.mrf.mxu1 }
  0xd5   :  { %2234 = vmatpush3.xpose.msk.msra.mxu1 %vm328_vm2, %v2582_v18 }
  0xd6   :  { %2238 = vmatprep.subr.mxu1 %v2420_v14 }
  0xd7   :  { %665 = vrot.lane.b32.xlu1 %v2576_v16, %s2422_s4 }
  0xd8   :  { %2236 = vmatmul.mubr.msk.f32.vlgmr.msra.gmra.mxu1 %vm328_vm2, %v2576_v16 }
  0xd9   :  { %2239 = vmatpush3.xpose.msk.msra.mxu1 %vm328_vm2, %v2578_v17  ;;  %2240 = vmatprep.mubr.msk.f32.mxu1 %vm2421_vm1, %v2420_v14 }
  0xda   :  { %2248 = vmatprep.subr.mxu1 %v2420_v14  ;;  %v2600_v19 = vpop.f32.mrf.mxu1 }
  0xdc   :  { %2241 = vmatmul.mubr.msk.f32.vlgmr.msra.gmra.mxu1 %vm328_vm2, %v2574_v15  ;;  %v2603_v20 = vpop.f32.mrf.mxu1 }
  0xdd   :  { %2250 = vmatprep.mubr.msk.f32.mxu1 %vm2421_vm1, %v2420_v14  ;;  %2249 = vmatpush3.msra.mxu1 %v2600_v19 }
  0xde   :  { %2258 = vmatprep.subr.mxu1 %v2420_v14  ;;  %2244 = vmatpush3.msra.mxu0 %v2603_v20 }
  0xdf   :  { %2253 = vmatprep.subr.mxu0 %v2420_v14 }
 0x145   :  { %v746_v59 = vpop.permute.xlu1 %745 }
 0x149   :  { %v666_v60 = vpop.permute.xlu1 %665 }
 0x198   :  { %v401_v39 = vpop.f32.mrf.mxu1 }
 0x199   :  { %v493_v40 = vsel %vm491_vm6, %v401_v39, -1e+20 }
 0x19a   :  { %v495_v41 = vmul.f32 0.17677669, %v493_v40  ;;  %v2237_v42 = vpop.f32.mrf.mxu1 }
 0x19c   :  { %v477_v43 = vpop.f32.mrf.mxu1  ;;  %v497_v44 = vsel %vm328_vm2, %v495_v41, -inf }
 0x19d   :  { %v494_v45 = vsel %vm492_vm7, %v477_v43, -1e+20  ;;  %498 = vmax.xlane.f32.xlu0 %v497_v44 }
 0x19e   :  { %v496_v46 = vmul.f32 0.17677669, %v494_v45  ;;  %v2242_v47 = vpop.f32.mrf.mxu1 }
 0x1a0   :  { %v500_v48 = vsel %vm328_vm2, %v496_v46, -inf }
 0x1a1   :  { %501 = vmax.xlane.f32.xlu0 %v500_v48 }
 0x1b7   :  { %667 = vrot.lane.b32.xlu0 %v2582_v18, %s2422_s4 }
 0x226   :  { %v499_v49 = vpop.xlane.xlu0 %498 }
 0x227   :  { %v503_v50 = vsub.f32 %v495_v41, %v499_v49 }
 0x229   :  { %v505_v51 = vmul.f32 1.442695, %v503_v50 }
 0x22a   :  { %v502_v52 = vpop.xlane.xlu0 %501 }
 0x22b   :  { %2380 = vpow2.f32 %v505_v51  ;;  %v504_v53 = vsub.f32 %v496_v46, %v502_v52 }
 0x22d   :  { %v507_v54 = vmul.f32 1.442695, %v504_v53 }
 0x22e   :  { %v668_v1 = vpop.permute.xlu0 %667 }
 0x22f   :  { %2382 = vpow2.f32 %v507_v54 }
 0x238   :  { %v2381_v55 = vpop.eup %2380 }
 0x239   :  { %v509_v56 = vsel %vm328_vm2, %v2381_v55, 0.0 }
 0x23a   :  { %510 = vadd.xlane.f32.xlu1 %v509_v56 }
 0x23c   :  { %v2383_v57 = vpop.eup %2382 }
 0x23d   :  { %v512_v58 = vsel %vm328_vm2, %v2383_v57, 0.0 }
 0x23e   :  { %513 = vadd.xlane.f32.xlu1 %v512_v58 }
 0x24f   :  { %743 = vrot.lane.b32.xlu1 %v2574_v15, %s2422_s4 }
 0x2c3   :  { %v511_v61 = vpop.xlane.xlu1 %510 }
 0x2c4   :  { %2384 = vrcp.f32 %v511_v61 }
 0x2c7   :  { %v514_v62 = vpop.xlane.xlu1 %513 }
 0x2c8   :  { %2386 = vrcp.f32 %v514_v62 }
 0x2cb   :  { %v744_v6 = vpop.permute.xlu1 %743 }
 0x2d1   :  { %v2385_v63 = vpop.eup %2384 }
 0x2d2   :  { %v517_v0 = vmul.f32 %v2385_v63, %v2381_v55 }
 0x2d4   :  { %2246 = vmatmul.mubr.msk.f32.vlgmr.msra.gmra.mxu0 %vm328_vm2, %v517_v0 }
 0x2d5   :  { %v2387_v3 = vpop.eup %2386  ;;  %2254 = vmatpush3.xpose.msk.msra.mxu0 %vm328_vm2, %v668_v1  ;;  %2255 = vmatprep.mubr.msk.f32.mxu0 %vm2421_vm1, %v2420_v14 }
 0x2d6   :  { %v518_v4 = vmul.f32 %v2387_v3, %v2383_v57  ;;  %2263 = vmatprep.subr.mxu0 %v2420_v14 }
 0x2d8   :  { %2251 = vmatmul.mubr.msk.f32.vlgmr.msra.gmra.mxu1 %vm328_vm2, %v518_v4  ;;  %2256 = vmatmul.mubr.msk.f32.vlgmr.msra.gmra.mxu0 %vm328_vm2, %v666_v60 }
 0x2d9   :  { %2259 = vmatpush3.xpose.msk.msra.mxu1 %vm328_vm2, %v746_v59  ;;  %2260 = vmatprep.mubr.msk.f32.mxu1 %vm2421_vm1, %v2420_v14 }
 0x2da   :  { %2268 = vmatprep.subr.mxu1 %v2420_v14  ;;  %2265 = vmatprep.mubr.msk.f32.mxu0 %vm2421_vm1, %v2420_v14 }
 0x2dc   :  { %2261 = vmatmul.mubr.msk.f32.vlgmr.msra.gmra.mxu1 %vm328_vm2, %v744_v6 }
 0x2dd   :  { %2270 = vmatprep.mubr.msk.f32.mxu1 %vm2421_vm1, %v2420_v14 }
 0x394   :  { %v2645_v7 = vpop.f32.mrf.mxu0 }
 0x396   :  { %v2247_v8 = vpop.f32.mrf.mxu0 }
 0x398   :  { %v2647_v9 = vpop.f32.mrf.mxu1  ;;  %v739_v10 = vpop.f32.mrf.mxu0 }
 0x399   :  { %v821_v11 = vsel %vm491_vm6, %v739_v10, -1e+20 }
 0x39a   :  { %v823_v12 = vmul.f32 0.17677669, %v821_v11  ;;  %v2252_v13 = vpop.f32.mrf.mxu1  ;;  %v2257_v21 = vpop.f32.mrf.mxu0 }
 0x39c   :  { %v817_v22 = vpop.f32.mrf.mxu1  ;;  %v825_v23 = vsel %vm328_vm2, %v823_v12, -inf }
 0x39d   :  { %v822_v24 = vsel %vm492_vm7, %v817_v22, -1e+20  ;;  %826 = vmax.xlane.f32.xlu0 %v825_v23 }
 0x39e   :  { %v824_v25 = vmul.f32 0.17677669, %v822_v24  ;;  %v2262_v26 = vpop.f32.mrf.mxu1 }
 0x3a0   :  { %v828_v27 = vsel %vm328_vm2, %v824_v25, -inf }
 0x3a1   :  { %829 = vmax.xlane.f32.xlu1 %v828_v27 }
 0x3b2   :  { %925 = vrot.lane.b32.xlu1 %v2600_v19, %s2422_s4 }
 0x3b3   :  { %848 = vrot.lane.b32.xlu0 %v2603_v20, %s2422_s4 }
 0x3b6   :  { %1003 = vrot.lane.b32.xlu1 %v2582_v18, %s2425_s1 }
 0x3ba   :  { %1081 = vrot.lane.b32.xlu1 %v2578_v17, %s2425_s1 }
 0x3be   :  { %1079 = vrot.lane.b32.xlu1 %v2574_v15, %s2425_s1 }
 0x426   :  { %v827_v28 = vpop.xlane.xlu0 %826 }
 0x427   :  { %v831_v29 = vsub.f32 %v823_v12, %v827_v28 }
 0x429   :  { %v833_v30 = vmul.f32 1.442695, %v831_v29 }
 0x42a   :  { %v849_v31 = vpop.permute.xlu0 %848  ;;  %v830_v32 = vpop.xlane.xlu1 %829 }
 0x42b   :  { %2388 = vpow2.f32 %v833_v30  ;;  %v832_v33 = vsub.f32 %v824_v25, %v830_v32  ;;  %2264 = vmatpush3.msra.mxu0 %v849_v31 }
 0x42c   :  { %2273 = vmatprep.subr.mxu0 %v2420_v14 }
 0x42d   :  { %v835_v34 = vmul.f32 1.442695, %v832_v33 }
 0x42e   :  { %v926_v35 = vpop.permute.xlu1 %925 }
 0x42f   :  { %2390 = vpow2.f32 %v835_v34  ;;  %2269 = vmatpush3.msra.mxu1 %v926_v35 }
 0x430   :  { %2278 = vmatprep.subr.mxu1 %v2420_v14 }
 0x432   :  { %v1004_v44 = vpop.permute.xlu1 %1003 }
 0x436   :  { %v1082_v48 = vpop.permute.xlu1 %1081 }
 0x438   :  { %v2389_v37 = vpop.eup %2388 }
 0x439   :  { %v837_v39 = vsel %vm328_vm2, %v2389_v37, 0.0 }
 0x43a   :  { %838 = vadd.xlane.f32.xlu0 %v837_v39  ;;  %v1080_v51 = vpop.permute.xlu1 %1079 }
 0x43c   :  { %v2391_v40 = vpop.eup %2390 }
 0x43d   :  { %v840_v41 = vsel %vm328_vm2, %v2391_v40, 0.0 }
 0x43e   :  { %841 = vadd.xlane.f32.xlu0 %v840_v41 }
 0x454   :  { %1001 = vrot.lane.b32.xlu0 %v2576_v16, %s2425_s1 }
 0x4c3   :  { %v839_v42 = vpop.xlane.xlu0 %838 }
 0x4c4   :  { %2392 = vrcp.f32 %v839_v42 }
 0x4c7   :  { %v842_v43 = vpop.xlane.xlu0 %841 }
 0x4c8   :  { %2394 = vrcp.f32 %v842_v43 }
 0x4cb   :  { %v1002_v50 = vpop.permute.xlu0 %1001 }
 0x4d1   :  { %v2393_v45 = vpop.eup %2392 }
 0x4d2   :  { %v845_v46 = vmul.f32 %v2393_v45, %v2389_v37 }
 0x4d4   :  { %2266 = vmatmul.mubr.msk.f32.vlgmr.msra.gmra.mxu0 %vm328_vm2, %v845_v46 }
 0x4d5   :  { %v2395_v47 = vpop.eup %2394  ;;  %2274 = vmatpush3.xpose.msk.msra.mxu0 %vm328_vm2, %v1004_v44  ;;  %2275 = vmatprep.mubr.msk.f32.mxu0 %vm2421_vm1, %v2420_v14 }
 0x4d6   :  { %v846_v49 = vmul.f32 %v2395_v47, %v2391_v40  ;;  %2283 = vmatprep.subr.mxu0 %v2420_v14 }
 0x4d8   :  { %2271 = vmatmul.mubr.msk.f32.vlgmr.msra.gmra.mxu1 %vm328_vm2, %v846_v49  ;;  %2276 = vmatmul.mubr.msk.f32.vlgmr.msra.gmra.mxu0 %vm328_vm2, %v1002_v50 }
 0x4d9   :  { %2279 = vmatpush3.xpose.msk.msra.mxu1 %vm328_vm2, %v1082_v48  ;;  %2280 = vmatprep.mubr.msk.f32.mxu1 %vm2421_vm1, %v2420_v14 }
 0x4da   :  { %2288 = vmatprep.subr.mxu1 %v2420_v14  ;;  %2285 = vmatprep.mubr.msk.f32.mxu0 %vm2421_vm1, %v2420_v14 }
 0x4dc   :  { %2281 = vmatmul.mubr.msk.f32.vlgmr.msra.gmra.mxu1 %vm328_vm2, %v1080_v51 }
 0x4dd   :  { %2290 = vmatprep.mubr.msk.f32.mxu1 %vm2421_vm1, %v2420_v14 }
 0x594   :  { %v2687_v52 = vpop.f32.mrf.mxu0 }
 0x596   :  { %v2267_v53 = vpop.f32.mrf.mxu0 }
 0x598   :  { %v2689_v54 = vpop.f32.mrf.mxu1  ;;  %v1075_v55 = vpop.f32.mrf.mxu0 }
 0x599   :  { %v1157_v56 = vsel %vm491_vm6, %v1075_v55, -1e+20 }
 0x59a   :  { %v1159_v57 = vmul.f32 0.17677669, %v1157_v56  ;;  %v2272_v58 = vpop.f32.mrf.mxu1  ;;  %v2277_v59 = vpop.f32.mrf.mxu0 }
 0x59c   :  { %v1153_v60 = vpop.f32.mrf.mxu1  ;;  %v1161_v61 = vsel %vm328_vm2, %v1159_v57, -inf }
 0x59d   :  { %v1158_v62 = vsel %vm492_vm7, %v1153_v60, -1e+20  ;;  %1162 = vmax.xlane.f32.xlu0 %v1161_v61  ;;  %v68_v61 = vld [vmem:[%s2879_s5 + $0x18] sm:$0xff] }
 0x59e   :  { %v1160_v63 = vmul.f32 0.17677669, %v1158_v62  ;;  %v2282_v0 = vpop.f32.mrf.mxu1  ;;  %v66_v62 = vld [vmem:[%s2879_s5 + $0x8] sm:$0xff] }
 0x5a0   :  { %v1164_v1 = vsel %vm328_vm2, %v1160_v63, -inf }
 0x5a1   :  { %1165 = vmax.xlane.f32.xlu1 %v1164_v1 }
 0x5b2   :  { %1259 = vrot.lane.b32.xlu1 %v2600_v19, %s2425_s1 }
 0x5b3   :  { %1183 = vrot.lane.b32.xlu0 %v2603_v20, %s2425_s1 }
 0x5b6   :  { %1337 = vrot.lane.b32.xlu1 %v2582_v18, %s2426_s30 }
 0x5ba   :  { %1415 = vrot.lane.b32.xlu1 %v2578_v17, %s2426_s30 }
 0x5be   :  { %1413 = vrot.lane.b32.xlu1 %v2574_v15, %s2426_s30 }
 0x626   :  { %v1163_v3 = vpop.xlane.xlu0 %1162 }
 0x627   :  { %v1167_v4 = vsub.f32 %v1159_v57, %v1163_v3 }
 0x629   :  { %v1169_v6 = vmul.f32 1.442695, %v1167_v4 }
 0x62a   :  { %v1184_v8 = vpop.permute.xlu0 %1183  ;;  %v1166_v10 = vpop.xlane.xlu1 %1165 }
 0x62b   :  { %2396 = vpow2.f32 %v1169_v6  ;;  %v1168_v11 = vsub.f32 %v1160_v63, %v1166_v10  ;;  %2284 = vmatpush3.msra.mxu0 %v1184_v8  ;;  %v65_v63 = vld [vmem:[%s2879_s5] sm:$0xff] }
 0x62c   :  { %2293 = vmatprep.subr.mxu0 %v2420_v14 }
 0x62d   :  { %v1171_v12 = vmul.f32 1.442695, %v1168_v11 }
 0x62e   :  { %v1260_v13 = vpop.permute.xlu1 %1259 }
 0x62f   :  { %2398 = vpow2.f32 %v1171_v12  ;;  %2289 = vmatpush3.msra.mxu1 %v1260_v13 }
 0x630   :  { %2298 = vmatprep.subr.mxu1 %v2420_v14 }
 0x632   :  { %v1338_v24 = vpop.permute.xlu1 %1337 }
 0x636   :  { %v1416_v28 = vpop.permute.xlu1 %1415 }
 0x638   :  { %v2397_v17 = vpop.eup %2396 }
 0x639   :  { %v1173_v18 = vsel %vm328_vm2, %v2397_v17, 0.0 }
 0x63a   :  { %1174 = vadd.xlane.f32.xlu0 %v1173_v18  ;;  %v1414_v30 = vpop.permute.xlu1 %1413 }
 0x63c   :  { %v2399_v15 = vpop.eup %2398 }
 0x63d   :  { %v1176_v21 = vsel %vm328_vm2, %v2399_v15, 0.0 }
 0x63e   :  { %1177 = vadd.xlane.f32.xlu0 %v1176_v21 }
 0x654   :  { %1335 = vrot.lane.b32.xlu0 %v2576_v16, %s2426_s30 }
 0x6c3   :  { %v1175_v22 = vpop.xlane.xlu0 %1174 }
 0x6c4   :  { %2400 = vrcp.f32 %v1175_v22 }
 0x6c7   :  { %v1178_v23 = vpop.xlane.xlu0 %1177 }
 0x6c8   :  { %2402 = vrcp.f32 %v1178_v23 }
 0x6cb   :  { %v1336_v16 = vpop.permute.xlu0 %1335 }
 0x6d1   :  { %v2401_v25 = vpop.eup %2400 }
 0x6d2   :  { %v1181_v26 = vmul.f32 %v2401_v25, %v2397_v17 }
 0x6d4   :  { %2286 = vmatmul.mubr.msk.f32.vlgmr.msra.gmra.mxu0 %vm328_vm2, %v1181_v26 }
 0x6d5   :  { %v2403_v27 = vpop.eup %2402  ;;  %2294 = vmatpush3.xpose.msk.msra.mxu0 %vm328_vm2, %v1338_v24  ;;  %2295 = vmatprep.mubr.msk.f32.mxu0 %vm2421_vm1, %v2420_v14  ;;  %v2109_v24 = vld [vmem:[%s2880_s6] ss:$0 sm:$0xff] }
 0x6d6   :  { %v1182_v29 = vmul.f32 %v2403_v27, %v2399_v15  ;;  %2303 = vmatprep.subr.mxu0 %v2420_v14 }
 0x6d8   :  { %2291 = vmatmul.mubr.msk.f32.vlgmr.msra.gmra.mxu1 %vm328_vm2, %v1182_v29  ;;  %2296 = vmatmul.mubr.msk.f32.vlgmr.msra.gmra.mxu0 %vm328_vm2, %v1336_v16 }
 0x6d9   :  { %2299 = vmatpush3.xpose.msk.msra.mxu1 %vm328_vm2, %v1416_v28  ;;  %2300 = vmatprep.mubr.msk.f32.mxu1 %vm2421_vm1, %v2420_v14 }
 0x6da   :  { %2308 = vmatprep.subr.mxu1 %v2420_v14  ;;  %2305 = vmatprep.mubr.msk.f32.mxu0 %vm2421_vm1, %v2420_v14 }
 0x6dc   :  { %2301 = vmatmul.mubr.msk.f32.vlgmr.msra.gmra.mxu1 %vm328_vm2, %v1414_v30 }
 0x6dd   :  { %2310 = vmatprep.mubr.msk.f32.mxu1 %vm2421_vm1, %v2420_v14 }
 0x794   :  { %v1255_v31 = vpop.f32.mrf.mxu0 }
 0x796   :  { %v2287_v32 = vpop.f32.mrf.mxu0 }
 0x798   :  { %v1331_v33 = vpop.f32.mrf.mxu1  ;;  %v1409_v34 = vpop.f32.mrf.mxu0 }
 0x799   :  { %v1491_v35 = vsel %vm491_vm6, %v1409_v34, -1e+20 }
 0x79a   :  { %v1493_v37 = vmul.f32 0.17677669, %v1491_v35  ;;  %v2292_v39 = vpop.f32.mrf.mxu1  ;;  %v2297_v40 = vpop.f32.mrf.mxu0 }
 0x79b   :  { %v1838_v40 = vld [vmem:[%s2881_s9 + $0x18] sm:$0xff] }
 0x79c   :  { %v1487_v41 = vpop.f32.mrf.mxu1  ;;  %v1495_v42 = vsel %vm328_vm2, %v1493_v37, -inf }
 0x79d   :  { %v1492_v43 = vsel %vm492_vm7, %v1487_v41, -1e+20  ;;  %1496 = vmax.xlane.f32.xlu0 %v1495_v42  ;;  %v1837_v41 = vld [vmem:[%s2881_s9 + $0x10] sm:$0xff]  ;;  %v1836_v42 = vld [vmem:[%s2881_s9 + $0x8] sm:$0xff] }
 0x79e   :  { %v1494_v44 = vmul.f32 0.17677669, %v1492_v43  ;;  %v2302_v45 = vpop.f32.mrf.mxu1  ;;  %v1835_v43 = vld [vmem:[%s2881_s9] sm:$0xff] }
 0x79f   :  { %v1854_v45 = vld [vmem:[%s2882_s11 + $0x70] sm:$0xff] }
 0x7a0   :  { %v1498_v14 = vsel %vm328_vm2, %v1494_v44, -inf }
 0x7a1   :  { %1499 = vmax.xlane.f32.xlu1 %v1498_v14  ;;  %v1853_v14 = vld [vmem:[%s2882_s11 + $0x68] sm:$0xff] }
 0x7b2   :  { %1593 = vrot.lane.b32.xlu1 %v2600_v19, %s2426_s30 }
 0x7b6   :  { %1671 = vrot.lane.b32.xlu1 %v2687_v52, %s2427_s16 }
 0x7ba   :  { %1673 = vrot.lane.b32.xlu1 %v2689_v54, %s2427_s16 }
 0x7be   :  { %1681 = vrot.lane.b32.xlu1 %v1331_v33, %s2428_s17 }
 0x826   :  { %v1497_v36 = vpop.xlane.xlu0 %1496 }
 0x827   :  { %v1501_v46 = vsub.f32 %v1493_v37, %v1497_v36  ;;  %v1852_v36 = vld [vmem:[%s2882_s11 + $0x60] sm:$0xff] }
 0x829   :  { %v1503_v38 = vmul.f32 1.442695, %v1501_v46  ;;  %v1851_v46 = vld [vmem:[%s2882_s11 + $0x58] sm:$0xff] }
 0x82a   :  { %v1500_v47 = vpop.xlane.xlu1 %1499 }
 0x82b   :  { %2404 = vpow2.f32 %v1503_v38  ;;  %v1502_v48 = vsub.f32 %v1494_v44, %v1500_v47  ;;  %v1855_v44 = vld [vmem:[%s2882_s11 + $0x78] sm:$0xff]  ;;  %v1850_v38 = vld [vmem:[%s2882_s11 + $0x50] sm:$0xff]  ;;  %v1849_v47 = vld [vmem:[%s2882_s11 + $0x48] sm:$0xff] }
 0x82d   :  { %v1505_v49 = vmul.f32 1.442695, %v1502_v48  ;;  %v1848_v48 = vld [vmem:[%s2882_s11 + $0x40] sm:$0xff] }
 0x82e   :  { %v1594_v50 = vpop.permute.xlu1 %1593 }
 0x82f   :  { %2406 = vpow2.f32 %v1505_v49  ;;  %2309 = vmatpush3.msra.mxu1 %v1594_v50  ;;  %v1847_v49 = vld [vmem:[%s2882_s11 + $0x38] sm:$0xff]  ;;  %v1846_v50 = vld [vmem:[%s2882_s11 + $0x30] sm:$0xff] }
 0x830   :  { %2324 = vmatprep.subr.mxu1 %v1838_v40 }
 0x832   :  { %v1672_v6 = vpop.permute.xlu1 %1671 }
 0x833   :  { %v1693_v11 = vsel %vm328_vm2, %v2645_v7, %v1672_v6  ;;  %v1842_v6 = vld [vmem:[%s2882_s11 + $0x10] sm:$0xff] }
 0x836   :  { %v1674_v8 = vpop.permute.xlu1 %1673 }
 0x837   :  { %v1694_v15 = vsel %vm328_vm2, %v2647_v9, %v1674_v8  ;;  %v1841_v8 = vld [vmem:[%s2882_s11 + $0x8] sm:$0xff] }
 0x838   :  { %v2405_v51 = vpop.eup %2404 }
 0x839   :  { %v1507_v19 = vsel %vm328_vm2, %v2405_v51, 0.0 }
 0x83a   :  { %1508 = vadd.xlane.f32.xlu0 %v1507_v19  ;;  %v1682_v12 = vpop.permute.xlu1 %1681  ;;  %v1844_v19 = vld [vmem:[%s2882_s11 + $0x20] sm:$0xff] }
 0x83b   :  { %v1697_v21 = vsel %vm1695_vm9, %v1694_v15, %v1682_v12 }
 0x83c   :  { %v2407_v53 = vpop.eup %2406 }
 0x83d   :  { %v1510_v52 = vsel %vm328_vm2, %v2407_v53, 0.0 }
 0x83e   :  { %1511 = vadd.xlane.f32.xlu0 %v1510_v52 }
 0x854   :  { %1517 = vrot.lane.b32.xlu0 %v2603_v20, %s2426_s30  ;;  %v67_v20 = vld [vmem:[%s2879_s5 + $0x10] sm:$0xff] }
 0x858   :  { %1679 = vrot.lane.b32.xlu0 %v1255_v31, %s2428_s17 }
 0x8c3   :  { %v1509_v54 = vpop.xlane.xlu0 %1508 }
 0x8c4   :  { %2408 = vrcp.f32 %v1509_v54 }
 0x8c7   :  { %v1512_v55 = vpop.xlane.xlu0 %1511 }
 0x8c8   :  { %2410 = vrcp.f32 %v1512_v55 }
 0x8cb   :  { %v1518_v56 = vpop.permute.xlu0 %1517 }
 0x8cc   :  { %2304 = vmatpush3.msra.mxu0 %v1518_v56 }
 0x8cd   :  { %2313 = vmatprep.subr.mxu0 %v68_v61 }
 0x8cf   :  { %v1680_v10 = vpop.permute.xlu0 %1679 }
 0x8d0   :  { %v1696_v13 = vsel %vm1695_vm9, %v1693_v11, %v1680_v10  ;;  %v1840_v10 = vld [vmem:[%s2882_s11] sm:$0xff] }
 0x8d1   :  { %v2409_v57 = vpop.eup %2408  ;;  %v2114_v11 = vld [vmem:[%s2885_s10] ss:$0 sm:$0xff] }
 0x8d2   :  { %v1515_v58 = vmul.f32 %v2409_v57, %v2405_v51  ;;  %v1845_v51 = vld [vmem:[%s2882_s11 + $0x28] sm:$0xff] }
 0x8d4   :  { %2306 = vmatmul.mubr.msk.f32.vlgmr.msra.gmra.mxu0 %vm328_vm2, %v1515_v58 }
 0x8d5   :  { %v2411_v59 = vpop.eup %2410  ;;  %2314 = vmatpush3.msra.mxu0 %v68_v61  ;;  %v2113_v61 = vld [vmem:[%s2884_s8] ss:$0 sm:$0xff] }
 0x8d6   :  { %v1516_v60 = vmul.f32 %v2411_v59, %v2407_v53  ;;  %2315 = vmatprep.subr.mxu0 %v67_v20  ;;  %v2112_v59 = vld [vmem:[%s2883_s7] ss:$0 sm:$0xff] }
 0x8d7   :  { %2316 = vmatpush3.msra.mxu0 %v67_v20 }
 0x8d8   :  { %2311 = vmatmul.mubr.msk.f32.vlgmr.msra.gmra.mxu1 %vm328_vm2, %v1516_v60  ;;  %2317 = vmatprep.subr.mxu0 %v66_v62 }
 0x8d9   :  { %2318 = vmatpush3.msra.mxu0 %v66_v62  ;;  %2325 = vmatpush3.msra.mxu1 %v1838_v40 }
 0x8da   :  { %2319 = vmatprep.subr.mxu0 %v65_v63  ;;  %2326 = vmatprep.subr.mxu1 %v1837_v41 }
 0x8db   :  { %2320 = vmatpush3.msra.mxu0 %v65_v63  ;;  %2327 = vmatpush3.msra.mxu1 %v1837_v41 }
 0x8dc   :  { %2328 = vmatprep.subr.mxu1 %v1836_v42  ;;  %2335 = vmatprep.subr.mxu0 %v1855_v44 }
 0x8dd   :  { %2329 = vmatpush3.msra.mxu1 %v1836_v42 }
 0x8de   :  { %2330 = vmatprep.subr.mxu1 %v1835_v43 }
 0x8df   :  { %2331 = vmatpush3.msra.mxu1 %v1835_v43 }
 0x994   :  { %v1589_v0 = vpop.f32.mrf.mxu0 }
 0x995   :  { %1687 = vrot.lane.b32.xlu0 %v1589_v0, %s2429_s24 }
 0x996   :  { %v2307_v1 = vpop.f32.mrf.mxu0 }
 0x998   :  { %v1665_v3 = vpop.f32.mrf.mxu1 }
 0x999   :  { %1689 = vrot.lane.b32.xlu1 %v1665_v3, %s2429_s24 }
 0x99a   :  { %v2312_v4 = vpop.f32.mrf.mxu1 }
 0x99b   :  { %v1843_v4 = vld [vmem:[%s2882_s11 + $0x18] sm:$0xff] }
 0xa07   :  { %v1688_v17 = vpop.permute.xlu0 %1687 }
 0xa08   :  { %v1699_v18 = vsel %vm1698_vm8, %v1696_v13, %v1688_v17 }
 0xa09   :  { %2321 = vmatprep.mubr.msk.f32.mxu0 %vm70_vm0, %v1699_v18 }
 0xa0b   :  { %v1690_v22 = vpop.permute.xlu1 %1689 }
 0xa0c   :  { %v1700_v23 = vsel %vm1698_vm8, %v1697_v21, %v1690_v22  ;;  %v2117_v22 = vld [vmem:[%s2886_s12] ss:$0 sm:$0xff] }
 0xa0d   :  { %2322 = vmatmul.mubr.msk.f32.vlgmr.msra.gmra.mxu0 %vm70_vm0, %v1700_v23 }
 0xa0e   :  { %2336 = vmatpush3.msra.mxu0 %v1855_v44 }
 0xa0f   :  { %2337 = vmatprep.subr.mxu0 %v1854_v45 }
 0xa10   :  { %2338 = vmatpush3.msra.mxu0 %v1854_v45  ;;  %v2118_v45 = vld [vmem:[%s2887_s13] ss:$0 sm:$0xff] }
 0xa11   :  { %2339 = vmatprep.subr.mxu0 %v1853_v14 }
 0xa12   :  { %2340 = vmatpush3.msra.mxu0 %v1853_v14 }
 0xa13   :  { %2341 = vmatprep.subr.mxu0 %v1852_v36 }
 0xa14   :  { %2342 = vmatpush3.msra.mxu0 %v1852_v36 }
 0xa15   :  { %2343 = vmatprep.subr.mxu0 %v1851_v46 }
 0xa16   :  { %2344 = vmatpush3.msra.mxu0 %v1851_v46  ;;  %v2119_v46 = vld [vmem:[%s2888_s14] ss:$0 sm:$0xff] }
 0xa17   :  { %2345 = vmatprep.subr.mxu0 %v1850_v38 }
 0xa18   :  { %2346 = vmatpush3.msra.mxu0 %v1850_v38 }
 0xa19   :  { %2347 = vmatprep.subr.mxu0 %v1849_v47 }
 0xa1a   :  { %2348 = vmatpush3.msra.mxu0 %v1849_v47 }
 0xa1b   :  { %2349 = vmatprep.subr.mxu0 %v1848_v48 }
 0xa1c   :  { %2350 = vmatpush3.msra.mxu0 %v1848_v48 }
 0xa1d   :  { %2351 = vmatprep.subr.mxu0 %v1847_v49 }
 0xa1e   :  { %2352 = vmatpush3.msra.mxu0 %v1847_v49 }
 0xa1f   :  { %2353 = vmatprep.subr.mxu0 %v1846_v50 }
 0xa20   :  { %2354 = vmatpush3.msra.mxu0 %v1846_v50 }
 0xa21   :  { %2355 = vmatprep.subr.mxu0 %v1845_v51 }
 0xa22   :  { %2356 = vmatpush3.msra.mxu0 %v1845_v51 }
 0xa23   :  { %2357 = vmatprep.subr.mxu0 %v1844_v19 }
 0xa24   :  { %2358 = vmatpush3.msra.mxu0 %v1844_v19 }
 0xa25   :  { %2359 = vmatprep.subr.mxu0 %v1843_v4 }
 0xa26   :  { %2360 = vmatpush3.msra.mxu0 %v1843_v4 }
 0xa27   :  { %2361 = vmatprep.subr.mxu0 %v1842_v6 }
 0xa28   :  { %2362 = vmatpush3.msra.mxu0 %v1842_v6 }
 0xa29   :  { %2363 = vmatprep.subr.mxu0 %v1841_v8 }
 0xa2a   :  { %2364 = vmatpush3.msra.mxu0 %v1841_v8 }
 0xa2b   :  { %2365 = vmatprep.subr.mxu0 %v1840_v10 }
 0xa2c   :  { %2366 = vmatpush3.msra.mxu0 %v1840_v10 }
 0xacd   :  { %v2323_v7 = vpop.f32.mrf.mxu0 }
 0xace   :  { %v1785_v25 = vadd.f32 %v2323_v7, %v2109_v24 }
 0xacf   :  { %v1779_v26 = vpop.f32.mrf.mxu0 }
 0xad0   :  { %v1780_v27 = vadd.f32 %v2109_v24, %v1779_v26  ;;  %v1791_v28 = vadd.f32 %v1785_v25, %v2532_v5 }
 0xad2   :  { %v1795_v29 = vsel %vm70_vm0, %v1791_v28, 0.0  ;;  %v1790_v16 = vadd.f32 %v1780_v27, %v2519_v2 }
 0xad3   :  { %1796 = vadd.xlane.f32.xlu1 %v1795_v29 }
 0xad4   :  { %v1792_v9 = vsel %vm70_vm0, %v1790_v16, 0.0 }
 0xad5   :  { %1793 = vadd.xlane.f32.xlu0 %v1792_v9 }
 0xb5c   :  { %v1797_v30 = vpop.xlane.xlu1 %1796 }
 0xb5d   :  { %v1800_v31 = vmul.f32 0.03125, %v1797_v30 }
 0xb5e   :  { %v1794_v32 = vpop.xlane.xlu0 %1793 }
 0xb5f   :  { %v1799_v33 = vmul.f32 0.03125, %v1794_v32  ;;  %v2770_v34 = vsub.f32 %v1791_v28, %v1800_v31 }
 0xb61   :  { %v2772_v35 = vsub.f32 %v1790_v16, %v1799_v33  ;;  %v1804_v2 = vmul.f32 %v2770_v34, %v2770_v34 }
 0xb63   :  { %v1803_v37 = vmul.f32 %v2772_v35, %v2772_v35  ;;  %v1808_v39 = vsel %vm70_vm0, %v1804_v2, 0.0 }
 0xb65   :  { %v1805_v5 = vsel %vm70_vm0, %v1803_v37, 0.0 }
 0xb66   :  { %1806 = vadd.xlane.f32.xlu0 %v1805_v5 }
 0xb6a   :  { %1809 = vadd.xlane.f32.xlu0 %v1808_v39 }
 0xbef   :  { %v1807_v53 = vpop.xlane.xlu0 %1806 }
 0xbf0   :  { %v1811_v52 = vmul.f32 0.03125, %v1807_v53 }
 0xbf2   :  { %v1813_v54 = vadd.f32 1e-05, %v1811_v52 }
 0xbf3   :  { %v1810_v55 = vpop.xlane.xlu0 %1809 }
 0xbf4   :  { %2412 = vrsqrt.f32 %v1813_v54  ;;  %v1812_v56 = vmul.f32 0.03125, %v1810_v55 }
 0xbf6   :  { %v1814_v57 = vadd.f32 1e-05, %v1812_v56 }
 0xbf8   :  { %2414 = vrsqrt.f32 %v1814_v57 }
 0xc01   :  { %v2413_v58 = vpop.eup %2412 }
 0xc02   :  { %v1817_v60 = vmul.f32 %v2413_v58, %v2772_v35 }
 0xc04   :  { %v1825_v20 = vmul.f32 %v2112_v59, %v1817_v60 }
 0xc05   :  { %v2415_v62 = vpop.eup %2414 }
 0xc06   :  { %v1818_v63 = vmul.f32 %v2415_v62, %v2770_v34  ;;  %v1833_v0 = vadd.f32 %v2113_v61, %v1825_v20 }
 0xc08   :  { %v1826_v1 = vmul.f32 %v2112_v59, %v1818_v63  ;;  %2332 = vmatprep.mubr.msk.f32.mxu1 %vm70_vm0, %v1833_v0 }
 0xc0a   :  { %v1834_v3 = vadd.f32 %v2113_v61, %v1826_v1 }
 0xc0c   :  { %2333 = vmatmul.mubr.msk.f32.vlgmr.msra.gmra.mxu1 %vm70_vm0, %v1834_v3 }
 0xccc   :  { %v2334_v12 = vpop.f32.mrf.mxu1 }
 0xccd   :  { %v1941_v13 = vadd.f32 %v2334_v12, %v2114_v11 }
 0xcce   :  { %v1935_v17 = vpop.f32.mrf.mxu1 }
 0xccf   :  { %v1936_v18 = vadd.f32 %v2114_v11, %v1935_v17  ;;  %v1945_v21 = vmax.f32 %v1941_v13, 0.0 }
 0xcd1   :  { %v1944_v15 = vmax.f32 %v1936_v18, 0.0 }
 0xcd3   :  { %2367 = vmatprep.mubr.f32.mxu0 %v1944_v15 }
 0xcd4   :  { %2368 = vmatmul.mubr.f32.vlgmr.msra.gmra.mxu0 %v1945_v21 }
 0xd94   :  { %v2369_v23 = vpop.f32.mrf.mxu0 }
 0xd95   :  { %v2024_v24 = vadd.f32 %v2369_v23, %v2117_v22 }
 0xd96   :  { %v2018_v7 = vpop.f32.mrf.mxu0 }
 0xd97   :  { %v2019_v25 = vadd.f32 %v2117_v22, %v2018_v7  ;;  %v2030_v26 = vadd.f32 %v2024_v24, %v1834_v3 }
 0xd99   :  { %v2034_v27 = vsel %vm70_vm0, %v2030_v26, 0.0  ;;  %v2029_v28 = vadd.f32 %v2019_v25, %v1833_v0 }
 0xd9a   :  { %2035 = vadd.xlane.f32.xlu1 %v2034_v27 }
 0xd9b   :  { %v2031_v29 = vsel %vm70_vm0, %v2029_v28, 0.0 }
 0xd9c   :  { %2032 = vadd.xlane.f32.xlu0 %v2031_v29 }
 0xe23   :  { %v2036_v16 = vpop.xlane.xlu1 %2035 }
 0xe24   :  { %v2038_v9 = vmul.f32 0.03125, %v2036_v16 }
 0xe25   :  { %v2033_v30 = vpop.xlane.xlu0 %2032 }
 0xe26   :  { %v2040_v31 = vsub.f32 %v2030_v26, %v2038_v9  ;;  %v2037_v32 = vmul.f32 0.03125, %v2033_v30 }
 0xe28   :  { %v2039_v33 = vsub.f32 %v2029_v28, %v2037_v32  ;;  %v2042_v34 = vmul.f32 %v2040_v31, %v2040_v31 }
 0xe2a   :  { %v2046_v35 = vsel %vm70_vm0, %v2042_v34, 0.0  ;;  %v2041_v37 = vmul.f32 %v2039_v33, %v2039_v33 }
 0xe2b   :  { %2047 = vadd.xlane.f32.xlu1 %v2046_v35 }
 0xe2c   :  { %v2043_v5 = vsel %vm70_vm0, %v2041_v37, 0.0 }
 0xe2d   :  { %2044 = vadd.xlane.f32.xlu0 %v2043_v5 }
 0xeb4   :  { %v2048_v2 = vpop.xlane.xlu1 %2047 }
 0xeb5   :  { %v2050_v39 = vmul.f32 0.03125, %v2048_v2 }
 0xeb6   :  { %v2045_v40 = vpop.xlane.xlu0 %2044 }
 0xeb7   :  { %v2052_v41 = vadd.f32 1e-05, %v2050_v39  ;;  %v2049_v42 = vmul.f32 0.03125, %v2045_v40 }
 0xeb9   :  { %2416 = vrsqrt.f32 %v2052_v41  ;;  %v2051_v43 = vadd.f32 1e-05, %v2049_v42 }
 0xebb   :  { %2418 = vrsqrt.f32 %v2051_v43 }
 0xec6   :  { %v2417_v44 = vpop.eup %2416 }
 0xec7   :  { %v2056_v14 = vmul.f32 %v2417_v44, %v2040_v31 }
 0xec8   :  { %v2419_v36 = vpop.eup %2418 }
 0xec9   :  { %v2064_v38 = vmul.f32 %v2118_v45, %v2056_v14  ;;  %v2055_v47 = vmul.f32 %v2419_v36, %v2039_v33 }
 0xecb   :  { %v2072_v48 = vadd.f32 %v2119_v46, %v2064_v38  ;;  %v2063_v49 = vmul.f32 %v2118_v45, %v2055_v47 }
 0xecd   :  { %2074 = vst.msk [vmem:[%s2889_s15 + $0x8] sm:$0xff] %vm70_vm0, %v2072_v48  ;;  %v2071_v50 = vadd.f32 %v2119_v46, %v2063_v49 }
 0xecf   :  { %2073 = vst.msk [vmem:[%s2889_s15] sm:$0xff] %vm70_vm0, %v2071_v50 }

// kernel: transformer_forward.7
= control target key start
LH: loop header
LB: loop body
LE: loop exit
PB: predicated region body
PF: predicated region fallthrough
CT: control target
= control target key end

     0   :  { %vm95_vm0 = vcmask 261120   ;;  %v4449_v14 = vmov 0.0   ;;  %vm4450_vm1 = vmmov 0   ;;  %vm332_vm2 = vcmask 64512   ;;  %s4451_s25 = smov 120   ;;  %s5260_s26 = smov 16   ;;  %s5227_s3 = inlined_call_operand.vmem [shape: f32[32,32], index: 3, kind: input, shape index: {}]   ;;  %s5228_s0 = inlined_call_operand.vmem [shape: f32[2,8,32], index: 0, kind: input, shape index: {}]   ;;  %s5229_s4 = inlined_call_operand.vmem [shape: f32[32,32], index: 4, kind: input, shape index: {}]   ;;  %s5230_s5 = inlined_call_operand.vmem [shape: f32[32,32], index: 5, kind: input, shape index: {}]   ;;  %s5231_s6 = inlined_call_operand.vmem [shape: f32[32,32], index: 6, kind: input, shape index: {}]   ;;  %s5232_s7 = inlined_call_operand.vmem [shape: f32[1,32], index: 7, kind: input, shape index: {}]   ;;  %s5233_s11 = inlined_call_operand.vmem [shape: f32[32,32], index: 11, kind: input, shape index: {}]   ;;  %s5234_s10 = inlined_call_operand.vmem [shape: f32[32,32], index: 10, kind: input, shape index: {}]   ;;  %s5235_s1 = inlined_call_operand.vmem [shape: f32[2,8,32], index: 1, kind: input, shape index: {}]   ;;  %s5236_s12 = inlined_call_operand.vmem [shape: f32[32,32], index: 12, kind: input, shape index: {}]   ;;  %s5237_s8 = inlined_call_operand.vmem [shape: f32[1,32], index: 8, kind: input, shape index: {}]   ;;  %s5238_s9 = inlined_call_operand.vmem [shape: f32[1,32], index: 9, kind: input, shape index: {}]   ;;  %s5239_s2 = inlined_call_operand.vmem [shape: f32[2,8], index: 2, kind: input, shape index: {}]   ;;  %s5240_s13 = inlined_call_operand.vmem [shape: f32[32,32], index: 13, kind: input, shape index: {}]   ;;  %s5241_s14 = inlined_call_operand.vmem [shape: f32[1,32], index: 14, kind: input, shape index: {}]   ;;  %s5242_s17 = inlined_call_operand.vmem [shape: f32[32,128], index: 17, kind: input, shape index: {}]   ;;  %s5243_s19 = inlined_call_operand.vmem [shape: f32[128,32], index: 19, kind: input, shape index: {}]   ;;  %s5244_s15 = inlined_call_operand.vmem [shape: f32[1,32], index: 15, kind: input, shape index: {}]   ;;  %s5245_s16 = inlined_call_operand.vmem [shape: f32[1,32], index: 16, kind: input, shape index: {}]   ;;  %s5246_s18 = inlined_call_operand.vmem [shape: f32[1,128], index: 18, kind: input, shape index: {}]   ;;  %s5247_s20 = inlined_call_operand.vmem [shape: f32[1,32], index: 20, kind: input, shape index: {}]   ;;  %s5248_s21 = inlined_call_operand.vmem [shape: f32[1,32], index: 21, kind: input, shape index: {}]   ;;  %s5249_s22 = inlined_call_operand.vmem [shape: f32[1,32], index: 22, kind: input, shape index: {}]   ;;  %s5250_s23 = inlined_call_operand.vmem [shape: f32[2,8,32], index: 23, kind: output, shape index: {}]  }
   0x1   :  { %5264 = sst [smem:[#allocation2_spill]] %s5227_s3  ;;  %4112 = vmatprep.subr.mxu0 %v4449_v14  ;;  %4114 = vmatprep.mubr.msk.f32.mxu0 %vm4450_vm1, %v4449_v14  ;;  %v327_v21 = vlaneseq  ;;  %vm1692_vm4 = vcmask 195584   ;;  %vm1689_vm5 = vcmask 130048  }
   0x2   :  { %5265 = sst [smem:[#allocation3_spill]] %s5228_s0  ;;  %s5262_s0 = smov 8  }
   0x3   :  { %5266 = sst [smem:[#allocation4_spill]] %s5229_s4  ;;  %v4677_v22 = vshrl.u32 %v327_v21, 7  ;;  %v330_v23 = vand.u32 127, %v327_v21 }
   0x4   :  { %5267 = sst [smem:[#allocation5_spill]] %s5230_s5 }
   0x5   :  { %5268 = sst [smem:[#allocation6_spill]] %s5231_s6  ;;  %vm4680_vm3 = vcmp.le.s32.totalorder %v330_v23, %v4677_v22 }
   0x6   :  { %5269 = sst [smem:[#allocation7_spill]] %s5232_s7  ;;  %s4452_s7 = smov 112  }
   0x7   :  { %5270 = sst [smem:[#allocation8_spill]] %s5233_s11 }
   0x8   :  { %5271 = sst [smem:[#allocation9_spill]] %s5234_s10 }
   0x9   :  { %s5272_s24 = sld [smem:[#allocation2_spill]] }
   0xa   :  { %s5273_s4 = sld [smem:[#allocation3_spill]] }
   0xb   :  { %s5274_s30 = sld [smem:[#allocation4_spill]] }
   0xc   :  { %s5275_s10 = sld [smem:[#allocation5_spill]] }
   0xd   :  { %s5278_s27 = sld [smem:[#allocation6_spill]] }
   0xe   :  { %s5280_s29 = sld [smem:[#allocation8_spill]] }
   0xf   :  { %v81_v0 = vld [vmem:[%s5272_s24 + $0x18] sm:$0xff]  ;;  %v80_v1 = vld [vmem:[%s5272_s24 + $0x10] sm:$0xff]  ;;  %v79_v3 = vld [vmem:[%s5272_s24 + $0x8] sm:$0xff]  ;;  %s5281_s11 = sld [smem:[#allocation9_spill]] }
  0x10   :  { %4069 = vmatprep.subr.mxu1 %v81_v0  ;;  %v4588_v2 = vld [vmem:[%s5273_s4] sm:$0xff]  ;;  %v4601_v5 = vld [vmem:[%s5273_s4 + $0x8] sm:$0xff] }
  0x11   :  { %4070 = vmatpush3.msra.mxu1 %v81_v0  ;;  %4077 = vmatprep.mubr.msk.f32.mxu1 %vm95_vm0, %v4588_v2  ;;  %v78_v4 = vld [vmem:[%s5272_s24] sm:$0xff]  ;;  %v85_v6 = vld [vmem:[%s5274_s30 + $0x18] sm:$0xff]  ;;  %v84_v7 = vld [vmem:[%s5274_s30 + $0x10] sm:$0xff]  ;;  %s4453_s24 = smov 104  }
  0x12   :  { %4071 = vmatprep.subr.mxu1 %v80_v1  ;;  %v83_v8 = vld [vmem:[%s5274_s30 + $0x8] sm:$0xff]  ;;  %v82_v9 = vld [vmem:[%s5274_s30] sm:$0xff]  ;;  %v89_v10 = vld [vmem:[%s5275_s10 + $0x18] sm:$0xff]  ;;  %s5258_s30 = smov 24  }
  0x13   :  { %4072 = vmatpush3.msra.mxu1 %v80_v1  ;;  %v88_v11 = vld [vmem:[%s5275_s10 + $0x10] sm:$0xff]  ;;  %v87_v12 = vld [vmem:[%s5275_s10 + $0x8] sm:$0xff]  ;;  %v86_v13 = vld [vmem:[%s5275_s10] sm:$0xff] }
  0x14   :  { %4073 = vmatprep.subr.mxu1 %v79_v3 }
  0x15   :  { %4074 = vmatpush3.msra.mxu1 %v79_v3 }
  0x16   :  { %4075 = vmatprep.subr.mxu1 %v78_v4 }
  0x17   :  { %4076 = vmatpush3.msra.mxu1 %v78_v4 }
  0x18   :  { %4078 = vmatmul.mubr.msk.f32.vlgmr.msra.gmra.mxu1 %vm95_vm0, %v4601_v5  ;;  %4080 = vmatprep.subr.mxu1 %v85_v6 }
  0x19   :  { %4081 = vmatpush3.msra.mxu1 %v85_v6  ;;  %4088 = vmatprep.mubr.msk.f32.mxu1 %vm95_vm0, %v4588_v2 }
  0x1a   :  { %4082 = vmatprep.subr.mxu1 %v84_v7 }
  0x1b   :  { %4083 = vmatpush3.msra.mxu1 %v84_v7 }
  0x1c   :  { %4084 = vmatprep.subr.mxu1 %v83_v8 }
  0x1d   :  { %4085 = vmatpush3.msra.mxu1 %v83_v8 }
  0x1e   :  { %4086 = vmatprep.subr.mxu1 %v82_v9 }
  0x1f   :  { %4087 = vmatpush3.msra.mxu1 %v82_v9 }
  0x20   :  { %4089 = vmatmul.mubr.msk.f32.vlgmr.msra.gmra.mxu1 %vm95_vm0, %v4601_v5  ;;  %4091 = vmatprep.subr.mxu1 %v89_v10 }
  0x21   :  { %4099 = vmatprep.mubr.msk.f32.mxu1 %vm95_vm0, %v4588_v2  ;;  %4092 = vmatpush3.msra.mxu1 %v89_v10 }
  0x22   :  { %4093 = vmatprep.subr.mxu1 %v88_v11 }
  0x23   :  { %4094 = vmatpush3.msra.mxu1 %v88_v11 }
  0x24   :  { %4095 = vmatprep.subr.mxu1 %v87_v12 }
  0x25   :  { %4096 = vmatpush3.msra.mxu1 %v87_v12 }
  0x26   :  { %4097 = vmatprep.subr.mxu1 %v86_v13 }
  0x27   :  { %4098 = vmatpush3.msra.mxu1 %v86_v13 }
  0x28   :  { %4100 = vmatmul.mubr.msk.f32.vlgmr.msra.gmra.mxu1 %vm95_vm0, %v4601_v5  ;;  %4102 = vmatprep.subr.mxu1 %v4449_v14 }
  0x29   :  { %4104 = vmatprep.mubr.msk.f32.mxu1 %vm4450_vm1, %v4449_v14 }
  0xd8   :  { %v4643_v15 = vpop.f32.mrf.mxu1 }
  0xda   :  { %v4645_v16 = vpop.f32.mrf.mxu1 }
  0xe0   :  { %v4647_v17 = vpop.f32.mrf.mxu1 }
  0xe1   :  { %739 = vrot.lane.b32.xlu1 %v4647_v17, %s4451_s25 }
  0xe2   :  { %v4651_v18 = vpop.f32.mrf.mxu1 }
  0xe3   :  { %4103 = vmatpush3.xpose.msk.msra.mxu1 %vm332_vm2, %v4651_v18 }
  0xe4   :  { %4107 = vmatprep.subr.mxu1 %v4449_v14 }
  0xe5   :  { %659 = vrot.lane.b32.xlu1 %v4645_v16, %s4451_s25 }
  0xe6   :  { %4105 = vmatmul.mubr.msk.f32.vlgmr.msra.gmra.mxu1 %vm332_vm2, %v4645_v16 }
  0xe7   :  { %4108 = vmatpush3.xpose.msk.msra.mxu1 %vm332_vm2, %v4647_v17  ;;  %4109 = vmatprep.mubr.msk.f32.mxu1 %vm4450_vm1, %v4449_v14 }
  0xe8   :  { %4117 = vmatprep.subr.mxu1 %v4449_v14  ;;  %v4669_v19 = vpop.f32.mrf.mxu1 }
  0xea   :  { %4110 = vmatmul.mubr.msk.f32.vlgmr.msra.gmra.mxu1 %vm332_vm2, %v4643_v15  ;;  %v4672_v20 = vpop.f32.mrf.mxu1 }
  0xeb   :  { %4119 = vmatprep.mubr.msk.f32.mxu1 %vm4450_vm1, %v4449_v14  ;;  %4118 = vmatpush3.msra.mxu1 %v4669_v19 }
  0xec   :  { %4127 = vmatprep.subr.mxu1 %v4449_v14  ;;  %4113 = vmatpush3.msra.mxu0 %v4672_v20 }
  0xed   :  { %4122 = vmatprep.subr.mxu0 %v4449_v14 }
 0x153   :  { %v740_v45 = vpop.permute.xlu1 %739 }
 0x157   :  { %v660_v46 = vpop.permute.xlu1 %659 }
 0x1a6   :  { %v405_v25 = vpop.f32.mrf.mxu1 }
 0x1a7   :  { %v487_v26 = vsel %vm4680_vm3, %v405_v25, -1e+20 }
 0x1a8   :  { %v489_v27 = vmul.f32 0.17677669, %v487_v26  ;;  %v4106_v28 = vpop.f32.mrf.mxu1 }
 0x1aa   :  { %v481_v29 = vpop.f32.mrf.mxu1  ;;  %v491_v30 = vsel %vm332_vm2, %v489_v27, -inf }
 0x1ab   :  { %v488_v31 = vsel %vm4680_vm3, %v481_v29, -1e+20  ;;  %492 = vmax.xlane.f32.xlu0 %v491_v30 }
 0x1ac   :  { %v490_v32 = vmul.f32 0.17677669, %v488_v31  ;;  %v4111_v33 = vpop.f32.mrf.mxu1 }
 0x1ae   :  { %v494_v34 = vsel %vm332_vm2, %v490_v32, -inf }
 0x1af   :  { %495 = vmax.xlane.f32.xlu0 %v494_v34 }
 0x1c5   :  { %661 = vrot.lane.b32.xlu0 %v4651_v18, %s4451_s25 }
 0x234   :  { %v493_v35 = vpop.xlane.xlu0 %492 }
 0x235   :  { %v497_v36 = vsub.f32 %v489_v27, %v493_v35 }
 0x237   :  { %v499_v37 = vmul.f32 1.442695, %v497_v36 }
 0x238   :  { %v496_v38 = vpop.xlane.xlu0 %495 }
 0x239   :  { %4373 = vpow2.f32 %v499_v37  ;;  %v498_v39 = vsub.f32 %v490_v32, %v496_v38 }
 0x23b   :  { %v501_v40 = vmul.f32 1.442695, %v498_v39 }
 0x23c   :  { %v662_v51 = vpop.permute.xlu0 %661 }
 0x23d   :  { %4375 = vpow2.f32 %v501_v40 }
 0x246   :  { %v4374_v41 = vpop.eup %4373 }
 0x247   :  { %v503_v42 = vsel %vm332_vm2, %v4374_v41, 0.0 }
 0x248   :  { %504 = vadd.xlane.f32.xlu1 %v503_v42 }
 0x24a   :  { %v4376_v43 = vpop.eup %4375 }
 0x24b   :  { %v506_v44 = vsel %vm332_vm2, %v4376_v43, 0.0 }
 0x24c   :  { %507 = vadd.xlane.f32.xlu1 %v506_v44 }
 0x25d   :  { %737 = vrot.lane.b32.xlu1 %v4643_v15, %s4451_s25 }
 0x2d1   :  { %v505_v47 = vpop.xlane.xlu1 %504 }
 0x2d2   :  { %4377 = vrcp.f32 %v505_v47 }
 0x2d5   :  { %v508_v48 = vpop.xlane.xlu1 %507 }
 0x2d6   :  { %4379 = vrcp.f32 %v508_v48 }
 0x2d9   :  { %v738_v54 = vpop.permute.xlu1 %737 }
 0x2df   :  { %v4378_v49 = vpop.eup %4377 }
 0x2e0   :  { %v511_v50 = vmul.f32 %v4378_v49, %v4374_v41 }
 0x2e2   :  { %4115 = vmatmul.mubr.msk.f32.vlgmr.msra.gmra.mxu0 %vm332_vm2, %v511_v50 }
 0x2e3   :  { %v4380_v52 = vpop.eup %4379  ;;  %4123 = vmatpush3.xpose.msk.msra.mxu0 %vm332_vm2, %v662_v51  ;;  %4124 = vmatprep.mubr.msk.f32.mxu0 %vm4450_vm1, %v4449_v14 }
 0x2e4   :  { %v512_v53 = vmul.f32 %v4380_v52, %v4376_v43  ;;  %4132 = vmatprep.subr.mxu0 %v4449_v14 }
 0x2e6   :  { %4120 = vmatmul.mubr.msk.f32.vlgmr.msra.gmra.mxu1 %vm332_vm2, %v512_v53  ;;  %4125 = vmatmul.mubr.msk.f32.vlgmr.msra.gmra.mxu0 %vm332_vm2, %v660_v46 }
 0x2e7   :  { %4128 = vmatpush3.xpose.msk.msra.mxu1 %vm332_vm2, %v740_v45  ;;  %4129 = vmatprep.mubr.msk.f32.mxu1 %vm4450_vm1, %v4449_v14 }
 0x2e8   :  { %4137 = vmatprep.subr.mxu1 %v4449_v14  ;;  %4134 = vmatprep.mubr.msk.f32.mxu0 %vm4450_vm1, %v4449_v14 }
 0x2ea   :  { %4130 = vmatmul.mubr.msk.f32.vlgmr.msra.gmra.mxu1 %vm332_vm2, %v738_v54 }
 0x2eb   :  { %4139 = vmatprep.mubr.msk.f32.mxu1 %vm4450_vm1, %v4449_v14 }
 0x3a2   :  { %v4712_v55 = vpop.f32.mrf.mxu0 }
 0x3a4   :  { %v4116_v56 = vpop.f32.mrf.mxu0 }
 0x3a6   :  { %v4714_v57 = vpop.f32.mrf.mxu1  ;;  %v733_v58 = vpop.f32.mrf.mxu0 }
 0x3a7   :  { %v815_v59 = vsel %vm4680_vm3, %v733_v58, -1e+20 }
 0x3a8   :  { %v817_v60 = vmul.f32 0.17677669, %v815_v59  ;;  %v4121_v61 = vpop.f32.mrf.mxu1  ;;  %v4126_v62 = vpop.f32.mrf.mxu0 }
 0x3aa   :  { %v811_v63 = vpop.f32.mrf.mxu1  ;;  %v819_v0 = vsel %vm332_vm2, %v817_v60, -inf }
 0x3ab   :  { %v816_v1 = vsel %vm4680_vm3, %v811_v63, -1e+20  ;;  %820 = vmax.xlane.f32.xlu0 %v819_v0 }
 0x3ac   :  { %v818_v3 = vmul.f32 0.17677669, %v816_v1  ;;  %v4131_v4 = vpop.f32.mrf.mxu1 }
 0x3ae   :  { %v822_v6 = vsel %vm332_vm2, %v818_v3, -inf }
 0x3af   :  { %823 = vmax.xlane.f32.xlu1 %v822_v6 }
 0x3c0   :  { %919 = vrot.lane.b32.xlu1 %v4669_v19, %s4451_s25 }
 0x3c1   :  { %842 = vrot.lane.b32.xlu0 %v4672_v20, %s4451_s25 }
 0x3c4   :  { %997 = vrot.lane.b32.xlu1 %v4651_v18, %s4452_s7 }
 0x3c8   :  { %1075 = vrot.lane.b32.xlu1 %v4647_v17, %s4452_s7 }
 0x3cc   :  { %1073 = vrot.lane.b32.xlu1 %v4643_v15, %s4452_s7 }
 0x434   :  { %v821_v7 = vpop.xlane.xlu0 %820 }
 0x435   :  { %v825_v8 = vsub.f32 %v817_v60, %v821_v7 }
 0x437   :  { %v827_v9 = vmul.f32 1.442695, %v825_v8 }
 0x438   :  { %v843_v10 = vpop.permute.xlu0 %842  ;;  %v824_v11 = vpop.xlane.xlu1 %823 }
 0x439   :  { %4381 = vpow2.f32 %v827_v9  ;;  %v826_v12 = vsub.f32 %v818_v3, %v824_v11  ;;  %4133 = vmatpush3.msra.mxu0 %v843_v10 }
 0x43a   :  { %4142 = vmatprep.subr.mxu0 %v4449_v14 }
 0x43b   :  { %v829_v13 = vmul.f32 1.442695, %v826_v12 }
 0x43c   :  { %v920_v21 = vpop.permute.xlu1 %919 }
 0x43d   :  { %4383 = vpow2.f32 %v829_v13  ;;  %4138 = vmatpush3.msra.mxu1 %v920_v21 }
 0x43e   :  { %4147 = vmatprep.subr.mxu1 %v4449_v14 }
 0x440   :  { %v998_v30 = vpop.permute.xlu1 %997 }
 0x444   :  { %v1076_v34 = vpop.permute.xlu1 %1075 }
 0x446   :  { %v4382_v23 = vpop.eup %4381 }
 0x447   :  { %v831_v25 = vsel %vm332_vm2, %v4382_v23, 0.0 }
 0x448   :  { %832 = vadd.xlane.f32.xlu0 %v831_v25  ;;  %v1074_v37 = vpop.permute.xlu1 %1073 }
 0x44a   :  { %v4384_v26 = vpop.eup %4383 }
 0x44b   :  { %v834_v27 = vsel %vm332_vm2, %v4384_v26, 0.0 }
 0x44c   :  { %835 = vadd.xlane.f32.xlu0 %v834_v27 }
 0x462   :  { %995 = vrot.lane.b32.xlu0 %v4645_v16, %s4452_s7 }
 0x4d1   :  { %v833_v28 = vpop.xlane.xlu0 %832 }
 0x4d2   :  { %4385 = vrcp.f32 %v833_v28 }
 0x4d5   :  { %v836_v29 = vpop.xlane.xlu0 %835 }
 0x4d6   :  { %4387 = vrcp.f32 %v836_v29 }
 0x4d9   :  { %v996_v36 = vpop.permute.xlu0 %995 }
 0x4df   :  { %v4386_v31 = vpop.eup %4385 }
 0x4e0   :  { %v839_v32 = vmul.f32 %v4386_v31, %v4382_v23 }
 0x4e2   :  { %4135 = vmatmul.mubr.msk.f32.vlgmr.msra.gmra.mxu0 %vm332_vm2, %v839_v32 }
 0x4e3   :  { %v4388_v33 = vpop.eup %4387  ;;  %4143 = vmatpush3.xpose.msk.msra.mxu0 %vm332_vm2, %v998_v30  ;;  %4144 = vmatprep.mubr.msk.f32.mxu0 %vm4450_vm1, %v4449_v14 }
 0x4e4   :  { %v840_v35 = vmul.f32 %v4388_v33, %v4384_v26  ;;  %4152 = vmatprep.subr.mxu0 %v4449_v14 }
 0x4e6   :  { %4140 = vmatmul.mubr.msk.f32.vlgmr.msra.gmra.mxu1 %vm332_vm2, %v840_v35  ;;  %4145 = vmatmul.mubr.msk.f32.vlgmr.msra.gmra.mxu0 %vm332_vm2, %v996_v36 }
 0x4e7   :  { %4148 = vmatpush3.xpose.msk.msra.mxu1 %vm332_vm2, %v1076_v34  ;;  %4149 = vmatprep.mubr.msk.f32.mxu1 %vm4450_vm1, %v4449_v14 }
 0x4e8   :  { %4157 = vmatprep.subr.mxu1 %v4449_v14  ;;  %4154 = vmatprep.mubr.msk.f32.mxu0 %vm4450_vm1, %v4449_v14 }
 0x4ea   :  { %4150 = vmatmul.mubr.msk.f32.vlgmr.msra.gmra.mxu1 %vm332_vm2, %v1074_v37 }
 0x4eb   :  { %4159 = vmatprep.mubr.msk.f32.mxu1 %vm4450_vm1, %v4449_v14 }
 0x5a2   :  { %v4754_v38 = vpop.f32.mrf.mxu0 }
 0x5a4   :  { %v4136_v39 = vpop.f32.mrf.mxu0 }
 0x5a6   :  { %v4756_v40 = vpop.f32.mrf.mxu1  ;;  %v1069_v41 = vpop.f32.mrf.mxu0 }
 0x5a7   :  { %v1151_v42 = vsel %vm4680_vm3, %v1069_v41, -1e+20 }
 0x5a8   :  { %v1153_v43 = vmul.f32 0.17677669, %v1151_v42  ;;  %v4141_v44 = vpop.f32.mrf.mxu1  ;;  %v4146_v45 = vpop.f32.mrf.mxu0 }
 0x5aa   :  { %v1147_v46 = vpop.f32.mrf.mxu1  ;;  %v1155_v47 = vsel %vm332_vm2, %v1153_v43, -inf }
 0x5ab   :  { %v1152_v48 = vsel %vm4680_vm3, %v1147_v46, -1e+20  ;;  %1156 = vmax.xlane.f32.xlu0 %v1155_v47 }
 0x5ac   :  { %v1154_v49 = vmul.f32 0.17677669, %v1152_v48  ;;  %v4151_v50 = vpop.f32.mrf.mxu1 }
 0x5ad   :  { %v91_v50 = vld [vmem:[%s5278_s27 + $0x8] sm:$0xff] }
 0x5ae   :  { %v1158_v51 = vsel %vm332_vm2, %v1154_v49, -inf }
 0x5af   :  { %1159 = vmax.xlane.f32.xlu1 %v1158_v51  ;;  %v90_v51 = vld [vmem:[%s5278_s27] sm:$0xff] }
 0x5c0   :  { %1253 = vrot.lane.b32.xlu1 %v4669_v19, %s4452_s7 }
 0x5c1   :  { %1177 = vrot.lane.b32.xlu0 %v4672_v20, %s4452_s7 }
 0x5c4   :  { %1331 = vrot.lane.b32.xlu1 %v4651_v18, %s4453_s24 }
 0x5c8   :  { %1409 = vrot.lane.b32.xlu1 %v4647_v17, %s4453_s24 }
 0x5cc   :  { %1407 = vrot.lane.b32.xlu1 %v4643_v15, %s4453_s24 }
 0x634   :  { %v1157_v52 = vpop.xlane.xlu0 %1156 }
 0x635   :  { %v1161_v53 = vsub.f32 %v1153_v43, %v1157_v52 }
 0x637   :  { %v1163_v54 = vmul.f32 1.442695, %v1161_v53 }
 0x638   :  { %v1178_v56 = vpop.permute.xlu0 %1177  ;;  %v1160_v58 = vpop.xlane.xlu1 %1159 }
 0x639   :  { %4389 = vpow2.f32 %v1163_v54  ;;  %v1162_v59 = vsub.f32 %v1154_v49, %v1160_v58  ;;  %4153 = vmatpush3.msra.mxu0 %v1178_v56  ;;  %v92_v49 = vld [vmem:[%s5278_s27 + $0x10] sm:$0xff] }
 0x63a   :  { %4162 = vmatprep.subr.mxu0 %v4449_v14 }
 0x63b   :  { %v1165_v60 = vmul.f32 1.442695, %v1162_v59 }
 0x63c   :  { %v1254_v61 = vpop.permute.xlu1 %1253 }
 0x63d   :  { %4391 = vpow2.f32 %v1165_v60  ;;  %4158 = vmatpush3.msra.mxu1 %v1254_v61 }
 0x63e   :  { %4167 = vmatprep.subr.mxu1 %v4449_v14 }
 0x640   :  { %v1332_v1 = vpop.permute.xlu1 %1331 }
 0x644   :  { %v1410_v7 = vpop.permute.xlu1 %1409 }
 0x646   :  { %v4390_v17 = vpop.eup %4389 }
 0x647   :  { %v1167_v18 = vsel %vm332_vm2, %v4390_v17, 0.0 }
 0x648   :  { %1168 = vadd.xlane.f32.xlu0 %v1167_v18  ;;  %v1408_v9 = vpop.permute.xlu1 %1407 }
 0x64a   :  { %v4392_v15 = vpop.eup %4391 }
 0x64b   :  { %v1170_v62 = vsel %vm332_vm2, %v4392_v15, 0.0 }
 0x64c   :  { %1171 = vadd.xlane.f32.xlu0 %v1170_v62 }
 0x662   :  { %1329 = vrot.lane.b32.xlu0 %v4645_v16, %s4453_s24 }
 0x6d1   :  { %v1169_v63 = vpop.xlane.xlu0 %1168 }
 0x6d2   :  { %4393 = vrcp.f32 %v1169_v63 }
 0x6d5   :  { %v1172_v0 = vpop.xlane.xlu0 %1171 }
 0x6d6   :  { %4395 = vrcp.f32 %v1172_v0 }
 0x6d9   :  { %v1330_v16 = vpop.permute.xlu0 %1329 }
 0x6df   :  { %v4394_v3 = vpop.eup %4393 }
 0x6e0   :  { %v1175_v4 = vmul.f32 %v4394_v3, %v4390_v17 }
 0x6e2   :  { %4155 = vmatmul.mubr.msk.f32.vlgmr.msra.gmra.mxu0 %vm332_vm2, %v1175_v4 }
 0x6e3   :  { %v4396_v6 = vpop.eup %4395  ;;  %4163 = vmatpush3.xpose.msk.msra.mxu0 %vm332_vm2, %v1332_v1  ;;  %4164 = vmatprep.mubr.msk.f32.mxu0 %vm4450_vm1, %v4449_v14 }
 0x6e4   :  { %v1176_v8 = vmul.f32 %v4396_v6, %v4392_v15  ;;  %4172 = vmatprep.subr.mxu0 %v4449_v14 }
 0x6e6   :  { %4160 = vmatmul.mubr.msk.f32.vlgmr.msra.gmra.mxu1 %vm332_vm2, %v1176_v8  ;;  %4165 = vmatmul.mubr.msk.f32.vlgmr.msra.gmra.mxu0 %vm332_vm2, %v1330_v16 }
 0x6e7   :  { %4168 = vmatpush3.xpose.msk.msra.mxu1 %vm332_vm2, %v1410_v7  ;;  %4169 = vmatprep.mubr.msk.f32.mxu1 %vm4450_vm1, %v4449_v14 }
 0x6e8   :  { %4177 = vmatprep.subr.mxu1 %v4449_v14  ;;  %4174 = vmatprep.mubr.msk.f32.mxu0 %vm4450_vm1, %v4449_v14 }
 0x6ea   :  { %4170 = vmatmul.mubr.msk.f32.vlgmr.msra.gmra.mxu1 %vm332_vm2, %v1408_v9 }
 0x6eb   :  { %4179 = vmatprep.mubr.msk.f32.mxu1 %vm4450_vm1, %v4449_v14 }
 0x7a2   :  { %v1249_v10 = vpop.f32.mrf.mxu0 }
 0x7a4   :  { %v4156_v11 = vpop.f32.mrf.mxu0 }
 0x7a6   :  { %v1325_v12 = vpop.f32.mrf.mxu1  ;;  %v1403_v13 = vpop.f32.mrf.mxu0 }
 0x7a7   :  { %v1485_v21 = vsel %vm4680_vm3, %v1403_v13, -1e+20 }
 0x7a8   :  { %v1487_v23 = vmul.f32 0.17677669, %v1485_v21  ;;  %v4161_v25 = vpop.f32.mrf.mxu1  ;;  %v4166_v26 = vpop.f32.mrf.mxu0 }
 0x7aa   :  { %v1481_v27 = vpop.f32.mrf.mxu1  ;;  %v1489_v28 = vsel %vm332_vm2, %v1487_v23, -inf }
 0x7ab   :  { %v1486_v29 = vsel %vm4680_vm3, %v1481_v27, -1e+20  ;;  %1490 = vmax.xlane.f32.xlu0 %v1489_v28 }
 0x7ac   :  { %v1488_v30 = vmul.f32 0.17677669, %v1486_v29  ;;  %v4171_v31 = vpop.f32.mrf.mxu1  ;;  %v1836_v29 = vld [vmem:[%s5280_s29 + $0x10] sm:$0xff] }
 0x7ad   :  { %v1832_v31 = vld [vmem:[%s5281_s11 + $0x10] sm:$0xff] }
 0x7ae   :  { %v1492_v32 = vsel %vm332_vm2, %v1488_v30, -inf }
 0x7af   :  { %1493 = vmax.xlane.f32.xlu1 %v1492_v32  ;;  %v1835_v32 = vld [vmem:[%s5280_s29 + $0x8] sm:$0xff] }
 0x7c0   :  { %1587 = vrot.lane.b32.xlu1 %v4669_v19, %s4453_s24 }
 0x7c4   :  { %1665 = vrot.lane.b32.xlu1 %v4754_v38, %s5262_s0 }
 0x7c8   :  { %1667 = vrot.lane.b32.xlu1 %v4756_v40, %s5262_s0 }
 0x7cc   :  { %1675 = vrot.lane.b32.xlu1 %v1325_v12, %s5260_s26 }
 0x834   :  { %v1491_v24 = vpop.xlane.xlu0 %1490 }
 0x835   :  { %v1495_v33 = vsub.f32 %v1487_v23, %v1491_v24  ;;  %v76_v24 = vld [vmem:[%s5235_s1] sm:$0xff] }
 0x837   :  { %v1497_v34 = vmul.f32 1.442695, %v1495_v33  ;;  %v1834_v33 = vld [vmem:[%s5280_s29] sm:$0xff] }
 0x838   :  { %v1494_v35 = vpop.xlane.xlu1 %1493 }
 0x839   :  { %4397 = vpow2.f32 %v1497_v34  ;;  %v1496_v36 = vsub.f32 %v1488_v30, %v1494_v35  ;;  %v1833_v30 = vld [vmem:[%s5281_s11 + $0x18] sm:$0xff]  ;;  %v1831_v34 = vld [vmem:[%s5281_s11 + $0x8] sm:$0xff] }
 0x83a   :  { %v77_v35 = vld [vmem:[%s5235_s1 + $0x8] sm:$0xff] }
 0x83b   :  { %v1499_v37 = vmul.f32 1.442695, %v1496_v36  ;;  %v1830_v36 = vld [vmem:[%s5281_s11] sm:$0xff]  ;;  %s5284_s11 = smov 24  }
 0x83c   :  { %v1588_v39 = vpop.permute.xlu1 %1587 }
 0x83d   :  { %4399 = vpow2.f32 %v1499_v37  ;;  %4178 = vmatpush3.msra.mxu1 %v1588_v39  ;;  %v1841_v37 = vld [vmem:[%s5236_s12 + $0x18] sm:$0xff] }
 0x83e   :  { %4193 = vmatprep.subr.mxu1 %v1833_v30 }
 0x840   :  { %v1666_v58 = vpop.permute.xlu1 %1665 }
 0x841   :  { %v1687_v61 = vsel %vm332_vm2, %v4712_v55, %v1666_v58 }
 0x844   :  { %v1668_v59 = vpop.permute.xlu1 %1667 }
 0x845   :  { %v1688_v63 = vsel %vm332_vm2, %v4714_v57, %v1668_v59 }
 0x846   :  { %v4398_v19 = vpop.eup %4397 }
 0x847   :  { %v1501_v41 = vsel %vm332_vm2, %v4398_v19, 0.0 }
 0x848   :  { %1502 = vadd.xlane.f32.xlu0 %v1501_v41  ;;  %v1676_v17 = vpop.permute.xlu1 %1675 }
 0x849   :  { %v1691_v0 = vsel %vm1689_vm5, %v1688_v63, %v1676_v17 }
 0x84a   :  { %v4400_v38 = vpop.eup %4399 }
 0x84b   :  { %v1504_v40 = vsel %vm332_vm2, %v4400_v38, 0.0 }
 0x84c   :  { %1505 = vadd.xlane.f32.xlu0 %v1504_v40 }
 0x862   :  { %1511 = vrot.lane.b32.xlu0 %v4672_v20, %s4453_s24  ;;  %v93_v20 = vld [vmem:[%s5278_s27 + $0x18] sm:$0xff]  ;;  %s5279_s27 = sld [smem:[#allocation7_spill]] }
 0x866   :  { %1673 = vrot.lane.b32.xlu0 %v1249_v10, %s5260_s26 }
 0x868   :  { %v3887_v55 = vld [vmem:[%s5279_s27] ss:$0 sm:$0xff] }
 0x8d1   :  { %v1503_v42 = vpop.xlane.xlu0 %1502 }
 0x8d2   :  { %4401 = vrcp.f32 %v1503_v42 }
 0x8d5   :  { %v1506_v43 = vpop.xlane.xlu0 %1505 }
 0x8d6   :  { %4403 = vrcp.f32 %v1506_v43 }
 0x8d9   :  { %v1512_v44 = vpop.permute.xlu0 %1511 }
 0x8da   :  { %4173 = vmatpush3.msra.mxu0 %v1512_v44  ;;  %v3890_v44 = vld [vmem:[%s5237_s8] ss:$0 sm:$0xff] }
 0x8db   :  { %4182 = vmatprep.subr.mxu0 %v93_v20 }
 0x8dd   :  { %v1674_v60 = vpop.permute.xlu0 %1673 }
 0x8de   :  { %v1690_v18 = vsel %vm1689_vm5, %v1687_v61, %v1674_v60 }
 0x8df   :  { %v4402_v45 = vpop.eup %4401 }
 0x8e0   :  { %v1509_v46 = vmul.f32 %v4402_v45, %v4398_v19 }
 0x8e2   :  { %4175 = vmatmul.mubr.msk.f32.vlgmr.msra.gmra.mxu0 %vm332_vm2, %v1509_v46  ;;  %v3891_v46 = vld [vmem:[%s5238_s9] ss:$0 sm:$0xff] }
 0x8e3   :  { %v4404_v47 = vpop.eup %4403  ;;  %4183 = vmatpush3.msra.mxu0 %v93_v20 }
 0x8e4   :  { %v1510_v48 = vmul.f32 %v4404_v47, %v4400_v38  ;;  %4184 = vmatprep.subr.mxu0 %v92_v49 }
 0x8e5   :  { %4185 = vmatpush3.msra.mxu0 %v92_v49 }
 0x8e6   :  { %4180 = vmatmul.mubr.msk.f32.vlgmr.msra.gmra.mxu1 %vm332_vm2, %v1510_v48  ;;  %4186 = vmatprep.subr.mxu0 %v91_v50 }
 0x8e7   :  { %4187 = vmatpush3.msra.mxu0 %v91_v50  ;;  %4194 = vmatpush3.msra.mxu1 %v1833_v30 }
 0x8e8   :  { %4188 = vmatprep.subr.mxu0 %v90_v51  ;;  %4195 = vmatprep.subr.mxu1 %v1832_v31 }
 0x8e9   :  { %4189 = vmatpush3.msra.mxu0 %v90_v51  ;;  %4196 = vmatpush3.msra.mxu1 %v1832_v31 }
 0x8ea   :  { %4197 = vmatprep.subr.mxu1 %v1831_v34 }
 0x8eb   :  { %4198 = vmatpush3.msra.mxu1 %v1831_v34 }
 0x8ec   :  { %4199 = vmatprep.subr.mxu1 %v1830_v36 }
 0x8ed   :  { %4200 = vmatpush3.msra.mxu1 %v1830_v36 }
 0x8ee   :  { %4215 = vmatprep.subr.mxu1 %v1841_v37 }
 0x9a2   :  { %v1583_v52 = vpop.f32.mrf.mxu0 }
 0x9a3   :  { %1681 = vrot.lane.b32.xlu0 %v1583_v52, %s5258_s30  ;;  %v1840_v52 = vld [vmem:[%s5236_s12 + $0x10] sm:$0xff] }
 0x9a4   :  { %v4176_v53 = vpop.f32.mrf.mxu0 }
 0x9a5   :  { %v1839_v53 = vld [vmem:[%s5236_s12 + $0x8] sm:$0xff] }
 0x9a6   :  { %v1659_v54 = vpop.f32.mrf.mxu1 }
 0x9a7   :  { %1683 = vrot.lane.b32.xlu1 %v1659_v54, %s5258_s30  ;;  %v1838_v54 = vld [vmem:[%s5236_s12] sm:$0xff] }
 0x9a8   :  { %v4181_v56 = vpop.f32.mrf.mxu1 }
 0xa15   :  { %v1682_v15 = vpop.permute.xlu0 %1681 }
 0xa16   :  { %v1693_v62 = vsel %vm1692_vm4, %v1690_v18, %v1682_v15  ;;  %v4457_v18 = vmov 1966171168  }
 0xa17   :  { %4190 = vmatprep.mubr.msk.f32.mxu0 %vm95_vm0, %v1693_v62  ;;  %v2087_v15 = vunpack.c.l.s4 %v4457_v18  ;;  %v1829_v62 = vld [vmem:[%s5239_s2] sm:$0x3]  ;;  %s5282_s2 = smov 8  }
 0xa18   :  { %vm2084_vm6 = vcmp.ne.f32.partialorder %v1829_v62, 0.0 }
 0xa19   :  { %v1684_v1 = vpop.permute.xlu1 %1683  ;;  %v2088_v63 = vunpack.c.0.s8 %v2087_v15 }
 0xa1a   :  { %v1694_v3 = vsel %vm1692_vm4, %v1691_v0, %v1684_v1  ;;  %v4458_v1 = vmov 0  }
 0xa1b   :  { %4191 = vmatmul.mubr.msk.f32.vlgmr.msra.gmra.mxu0 %vm95_vm0, %v1694_v3  ;;  %v2091_v0 = vsub.s32 %v2088_v63, %v4677_v22  ;;  %v2085_v3 = vsel %vm2084_vm6, 1, %v4458_v1 }
 0xa1c   :  { %4212 = vmatprep.mubr.msk.f32.mxu0 %vm95_vm0, %v76_v24 }
 0xadb   :  { %v4192_v4 = vpop.f32.mrf.mxu0 }
 0xadc   :  { %v1779_v6 = vadd.f32 %v4192_v4, %v3887_v55 }
 0xadd   :  { %v1773_v7 = vpop.f32.mrf.mxu0 }
 0xade   :  { %v1774_v8 = vadd.f32 %v3887_v55, %v1773_v7  ;;  %v1785_v16 = vadd.f32 %v1779_v6, %v4601_v5  ;;  %v2092_v55 = vrot.slane %v2085_v3, %v2091_v0 }
 0xae0   :  { %v1789_v9 = vsel %vm95_vm0, %v1785_v16, 0.0  ;;  %v1784_v57 = vadd.f32 %v1774_v8, %v4588_v2  ;;  %v1837_v2 = vld [vmem:[%s5280_s29 + $0x18] sm:$0xff]  ;;  %v2093_v4 = vcombine.high %v2092_v55, %v2092_v55  ;;  %v2100_v7 = vrot.slane %v2092_v55, %v2091_v0 }
 0xae1   :  { %1790 = vadd.xlane.f32.xlu1 %v1789_v9  ;;  %4204 = vmatprep.subr.mxu0 %v1837_v2  ;;  %v2266_v8 = vsub.s32 0, %v4677_v22 }
 0xae2   :  { %v1786_v10 = vsel %vm95_vm0, %v1784_v57, 0.0  ;;  %4205 = vmatpush3.msra.mxu0 %v1837_v2  ;;  %v2107_v6 = vrot.slane %v2093_v4, %v2091_v0  ;;  %vm2108_vm8 = vcmp.ne.s32.totalorder %v2100_v7, 0 }
 0xae3   :  { %1787 = vadd.xlane.f32.xlu0 %v1786_v10  ;;  %4206 = vmatprep.subr.mxu0 %v1836_v29  ;;  %v2262_v9 = vsel %vm2108_vm8, 1, %v4458_v1 }
 0xae4   :  { %4207 = vmatpush3.msra.mxu0 %v1836_v29  ;;  %vm2109_vm7 = vcmp.ne.s32.totalorder %v2107_v6, 0  ;;  %v4952_v10 = vrot.slane %v2262_v9, %v2266_v8 }
 0xae5   :  { %4208 = vmatprep.subr.mxu0 %v1835_v32 }
 0xae6   :  { %4209 = vmatpush3.msra.mxu0 %v1835_v32  ;;  %vm2272_vm10 = vcmp.eq.s32.totalorder %v4952_v10, 1 }
 0xae7   :  { %4210 = vmatprep.subr.mxu0 %v1834_v33 }
 0xae8   :  { %4211 = vmatpush3.msra.mxu0 %v1834_v33 }
 0xae9   :  { %4213 = vmatmul.mubr.msk.f32.vlgmr.msra.gmra.mxu0 %vm95_vm0, %v77_v35  ;;  %4226 = vmatprep.subr.mxu0 %v4449_v14 }
 0xaea   :  { %4228 = vmatprep.mubr.msk.f32.mxu0 %vm4450_vm1, %v4449_v14 }
 0xb6a   :  { %v1791_v11 = vpop.xlane.xlu1 %1790 }
 0xb6b   :  { %v1794_v12 = vmul.f32 0.03125, %v1791_v11 }
 0xb6c   :  { %v1788_v13 = vpop.xlane.xlu0 %1787 }
 0xb6d   :  { %v1793_v21 = vmul.f32 0.03125, %v1788_v13  ;;  %v1796_v23 = vsub.f32 %v1785_v16, %v1794_v12  ;;  %v2263_v16 = vsel %vm2109_vm7, 1, %v4458_v1 }
 0xb6f   :  { %v1795_v25 = vsub.f32 %v1784_v57, %v1793_v21  ;;  %v1798_v28 = vmul.f32 %v1796_v23, %v1796_v23  ;;  %v4950_v57 = vrot.slane %v2263_v16, %v2266_v8 }
 0xb71   :  { %v1797_v26 = vmul.f32 %v1795_v25, %v1795_v25  ;;  %v1802_v5 = vsel %vm95_vm0, %v1798_v28, 0.0  ;;  %vm2273_vm9 = vcmp.eq.s32.totalorder %v4950_v57, 1 }
 0xb73   :  { %v1799_v27 = vsel %vm95_vm0, %v1797_v26, 0.0 }
 0xb74   :  { %1800 = vadd.xlane.f32.xlu0 %v1799_v27 }
 0xb78   :  { %1803 = vadd.xlane.f32.xlu0 %v1802_v5 }
 0xba9   :  { %v4915_v56 = vpop.f32.mrf.mxu0 }
 0xbab   :  { %v4919_v58 = vpop.f32.mrf.mxu0 }
 0xbac   :  { %4227 = vmatpush3.xpose.msk.msra.mxu0 %vm332_vm2, %v4919_v58 }
 0xbad   :  { %4236 = vmatprep.subr.mxu0 %v4449_v14 }
 0xbfd   :  { %v1801_v39 = vpop.xlane.xlu0 %1800 }
 0xbfe   :  { %v1805_v19 = vmul.f32 0.03125, %v1801_v39 }
 0xc00   :  { %v1807_v41 = vadd.f32 1e-05, %v1805_v19 }
 0xc01   :  { %v1804_v38 = vpop.xlane.xlu0 %1803 }
 0xc02   :  { %4405 = vrsqrt.f32 %v1807_v41  ;;  %v1806_v40 = vmul.f32 0.03125, %v1804_v38 }
 0xc04   :  { %v1808_v42 = vadd.f32 1e-05, %v1806_v40 }
 0xc06   :  { %4407 = vrsqrt.f32 %v1808_v42 }
 0xc0f   :  { %v4406_v43 = vpop.eup %4405 }
 0xc10   :  { %v1811_v45 = vmul.f32 %v4406_v43, %v1795_v25 }
 0xc12   :  { %v1819_v47 = vmul.f32 %v3890_v44, %v1811_v45 }
 0xc13   :  { %v4408_v48 = vpop.eup %4407 }
 0xc14   :  { %v1812_v20 = vmul.f32 %v4408_v48, %v1796_v23  ;;  %v4893_v49 = vadd.f32 %v3891_v46, %v1819_v47 }
 0xc16   :  { %v1820_v50 = vmul.f32 %v3890_v44, %v1812_v20  ;;  %4201 = vmatprep.mubr.msk.f32.mxu1 %vm95_vm0, %v4893_v49 }
 0xc18   :  { %v4897_v51 = vadd.f32 %v3891_v46, %v1820_v50 }
 0xc1a   :  { %4202 = vmatmul.mubr.msk.f32.vlgmr.msra.gmra.mxu1 %vm95_vm0, %v4897_v51 }
 0xc1b   :  { %4216 = vmatpush3.msra.mxu1 %v1841_v37  ;;  %4223 = vmatprep.mubr.msk.f32.mxu1 %vm95_vm0, %v76_v24 }
 0xc1c   :  { %4217 = vmatprep.subr.mxu1 %v1840_v52 }
 0xc1d   :  { %4218 = vmatpush3.msra.mxu1 %v1840_v52 }
 0xc1e   :  { %4219 = vmatprep.subr.mxu1 %v1839_v53 }
 0xc1f   :  { %4220 = vmatpush3.msra.mxu1 %v1839_v53 }
 0xc20   :  { %4221 = vmatprep.subr.mxu1 %v1838_v54 }
 0xc21   :  { %4222 = vmatpush3.msra.mxu1 %v1838_v54 }
 0xc22   :  { %4224 = vmatmul.mubr.msk.f32.vlgmr.msra.gmra.mxu1 %vm95_vm0, %v77_v35  ;;  %4231 = vmatprep.subr.mxu1 %v4449_v14 }
 0xc23   :  { %4233 = vmatprep.mubr.msk.f32.mxu1 %vm4450_vm1, %v4449_v14  ;;  %4232 = vmatpush3.xpose.msk.msra.mxu1 %vm332_vm2, %v4915_v56 }
 0xc24   :  { %4241 = vmatprep.subr.mxu1 %v4449_v14 }
 0xcda   :  { %v4925_v59 = vpop.f32.mrf.mxu1 }
 0xcdb   :  { %4234 = vmatmul.mubr.msk.f32.vlgmr.msra.gmra.mxu1 %vm332_vm2, %v4925_v59 }
 0xcdc   :  { %v4929_v60 = vpop.f32.mrf.mxu1  ;;  %4243 = vmatprep.mubr.msk.f32.mxu1 %vm4450_vm1, %v4449_v14 }
 0xcdd   :  { %4229 = vmatmul.mubr.msk.f32.vlgmr.msra.gmra.mxu0 %vm332_vm2, %v4929_v60 }
 0xcde   :  { %4238 = vmatprep.mubr.msk.f32.mxu0 %vm4450_vm1, %v4449_v14 }
 0xce2   :  { %v4937_v61 = vpop.f32.mrf.mxu1 }
 0xce3   :  { %4242 = vmatpush3.msra.mxu1 %v4937_v61 }
 0xce4   :  { %v4940_v17 = vpop.f32.mrf.mxu1  ;;  %4251 = vmatprep.subr.mxu1 %v4449_v14 }
 0xce5   :  { %4237 = vmatpush3.msra.mxu0 %v4940_v17 }
 0xce6   :  { %4246 = vmatprep.subr.mxu0 %v4449_v14 }
 0xd9b   :  { %v2258_v11 = vpop.f32.mrf.mxu1 }
 0xd9c   :  { %v2275_v12 = vsel %vm2273_vm9, %v2258_v11, -1e+20 }
 0xd9d   :  { %v2277_v13 = vmul.f32 0.17677669, %v2275_v12  ;;  %v2182_v21 = vpop.f32.mrf.mxu0  ;;  %v4235_v23 = vpop.f32.mrf.mxu1 }
 0xd9e   :  { %v2274_v22 = vsel %vm2272_vm10, %v2182_v21, -1e+20 }
 0xd9f   :  { %v2276_v25 = vmul.f32 0.17677669, %v2274_v22  ;;  %v4230_v26 = vpop.f32.mrf.mxu0  ;;  %v2281_v27 = vsel %vm332_vm2, %v2277_v13, -inf }
 0xda0   :  { %2282 = vmax.xlane.f32.xlu1 %v2281_v27 }
 0xda1   :  { %v2278_v28 = vsel %vm332_vm2, %v2276_v25, -inf }
 0xda2   :  { %2279 = vmax.xlane.f32.xlu0 %v2278_v28 }
 0xe29   :  { %v2283_v5 = vpop.xlane.xlu1 %2282 }
 0xe2a   :  { %v2285_v2 = vsub.f32 %v2277_v13, %v2283_v5 }
 0xe2b   :  { %v2280_v29 = vpop.xlane.xlu0 %2279 }
 0xe2c   :  { %v2288_v30 = vmul.f32 1.442695, %v2285_v2  ;;  %v2284_v31 = vsub.f32 %v2276_v25, %v2280_v29 }
 0xe2e   :  { %4409 = vpow2.f32 %v2288_v30  ;;  %v2286_v32 = vmul.f32 1.442695, %v2284_v31 }
 0xe30   :  { %4411 = vpow2.f32 %v2286_v32 }
 0xe3b   :  { %v4410_v24 = vpop.eup %4409 }
 0xe3c   :  { %v2293_v33 = vsel %vm332_vm2, %v4410_v24, 0.0 }
 0xe3d   :  { %v4412_v34 = vpop.eup %4411  ;;  %2294 = vadd.xlane.f32.xlu1 %v2293_v33 }
 0xe3e   :  { %v2290_v35 = vsel %vm332_vm2, %v4412_v34, 0.0 }
 0xe3f   :  { %2291 = vadd.xlane.f32.xlu0 %v2290_v35 }
 0xe4e   :  { %2526 = vrot.lane.b32.xlu1 %v4915_v56, %s4451_s25 }
 0xe52   :  { %2446 = vrot.lane.b32.xlu1 %v4929_v60, %s4451_s25 }
 0xe55   :  { %2448 = vrot.lane.b32.xlu0 %v4919_v58, %s4451_s25 }
 0xe56   :  { %2524 = vrot.lane.b32.xlu1 %v4925_v59, %s4451_s25 }
 0xec6   :  { %v2295_v36 = vpop.xlane.xlu1 %2294 }
 0xec7   :  { %4413 = vrcp.f32 %v2295_v36 }
 0xec8   :  { %v2292_v37 = vpop.xlane.xlu0 %2291 }
 0xec9   :  { %4415 = vrcp.f32 %v2292_v37 }
 0xeca   :  { %v2527_v39 = vpop.permute.xlu1 %2526 }
 0xecc   :  { %v2449_v43 = vpop.permute.xlu0 %2448 }
 0xece   :  { %v2447_v41 = vpop.permute.xlu1 %2446 }
 0xed2   :  { %v2525_v44 = vpop.permute.xlu1 %2524 }
 0xed4   :  { %v4414_v19 = vpop.eup %4413 }
 0xed5   :  { %v2299_v38 = vmul.f32 %v4414_v19, %v4410_v24 }
 0xed6   :  { %v4416_v40 = vpop.eup %4415 }
 0xed7   :  { %4244 = vmatmul.mubr.msk.f32.vlgmr.msra.gmra.mxu1 %vm332_vm2, %v2299_v38  ;;  %v2298_v42 = vmul.f32 %v4416_v40, %v4412_v34 }
 0xed8   :  { %4252 = vmatpush3.xpose.msk.msra.mxu1 %vm332_vm2, %v2527_v39  ;;  %4253 = vmatprep.mubr.msk.f32.mxu1 %vm4450_vm1, %v4449_v14 }
 0xed9   :  { %4239 = vmatmul.mubr.msk.f32.vlgmr.msra.gmra.mxu0 %vm332_vm2, %v2298_v42  ;;  %4261 = vmatprep.subr.mxu1 %v4449_v14 }
 0xeda   :  { %4247 = vmatpush3.xpose.msk.msra.mxu0 %vm332_vm2, %v2449_v43  ;;  %4248 = vmatprep.mubr.msk.f32.mxu0 %vm4450_vm1, %v4449_v14 }
 0xedb   :  { %4254 = vmatmul.mubr.msk.f32.vlgmr.msra.gmra.mxu1 %vm332_vm2, %v2525_v44  ;;  %4256 = vmatprep.subr.mxu0 %v4449_v14 }
 0xedc   :  { %4263 = vmatprep.mubr.msk.f32.mxu1 %vm4450_vm1, %v4449_v14 }
 0xedd   :  { %4249 = vmatmul.mubr.msk.f32.vlgmr.msra.gmra.mxu0 %vm332_vm2, %v2447_v41 }
 0xede   :  { %4258 = vmatprep.mubr.msk.f32.mxu0 %vm4450_vm1, %v4449_v14 }
 0xf97   :  { %v4988_v45 = vpop.f32.mrf.mxu1 }
 0xf99   :  { %v4990_v46 = vpop.f32.mrf.mxu0  ;;  %v4245_v47 = vpop.f32.mrf.mxu1 }
 0xf9b   :  { %v4240_v48 = vpop.f32.mrf.mxu0  ;;  %v2598_v20 = vpop.f32.mrf.mxu1 }
 0xf9c   :  { %v2603_v50 = vsel %vm2273_vm9, %v2598_v20, -1e+20 }
 0xf9d   :  { %v2605_v52 = vmul.f32 0.17677669, %v2603_v50  ;;  %v2520_v53 = vpop.f32.mrf.mxu0  ;;  %v4255_v54 = vpop.f32.mrf.mxu1 }
 0xf9e   :  { %v2602_v18 = vsel %vm2272_vm10, %v2520_v53, -1e+20 }
 0xf9f   :  { %v2604_v15 = vmul.f32 0.17677669, %v2602_v18  ;;  %v4250_v62 = vpop.f32.mrf.mxu0  ;;  %v2609_v63 = vsel %vm332_vm2, %v2605_v52, -inf }
 0xfa0   :  { %2610 = vmax.xlane.f32.xlu1 %v2609_v63 }
 0xfa1   :  { %v2606_v0 = vsel %vm332_vm2, %v2604_v15, -inf }
 0xfa2   :  { %2607 = vmax.xlane.f32.xlu0 %v2606_v0 }
 0xfb1   :  { %2706 = vrot.lane.b32.xlu1 %v4937_v61, %s4451_s25 }
 0xfb5   :  { %2784 = vrot.lane.b32.xlu1 %v4919_v58, %s4452_s7 }
 0xfb9   :  { %2862 = vrot.lane.b32.xlu1 %v4915_v56, %s4452_s7 }
 0xfbd   :  { %2860 = vrot.lane.b32.xlu1 %v4925_v59, %s4452_s7 }
0x1029   :  { %v2611_v1 = vpop.xlane.xlu1 %2610 }
0x102a   :  { %v2613_v3 = vsub.f32 %v2605_v52, %v2611_v1 }
0x102b   :  { %v2608_v55 = vpop.xlane.xlu0 %2607 }
0x102c   :  { %v2616_v4 = vmul.f32 1.442695, %v2613_v3  ;;  %v2612_v6 = vsub.f32 %v2604_v15, %v2608_v55 }
0x102d   :  { %v2707_v7 = vpop.permute.xlu1 %2706 }
0x102e   :  { %4417 = vpow2.f32 %v2616_v4  ;;  %v2614_v8 = vmul.f32 1.442695, %v2612_v6  ;;  %4262 = vmatpush3.msra.mxu1 %v2707_v7 }
0x102f   :  { %4271 = vmatprep.subr.mxu1 %v4449_v14 }
0x1030   :  { %4419 = vpow2.f32 %v2614_v8 }
0x1031   :  { %v2785_v23 = vpop.permute.xlu1 %2784 }
0x1035   :  { %v2863_v26 = vpop.permute.xlu1 %2862 }
0x1039   :  { %v2861_v2 = vpop.permute.xlu1 %2860 }
0x103b   :  { %v4418_v16 = vpop.eup %4417 }
0x103c   :  { %v2621_v9 = vsel %vm332_vm2, %v4418_v16, 0.0 }
0x103d   :  { %v4420_v11 = vpop.eup %4419  ;;  %2622 = vadd.xlane.f32.xlu0 %v2621_v9 }
0x103e   :  { %v2618_v12 = vsel %vm332_vm2, %v4420_v11, 0.0 }
0x1041   :  { %2619 = vadd.xlane.f32.xlu0 %v2618_v12 }
0x1057   :  { %2629 = vrot.lane.b32.xlu0 %v4940_v17, %s4451_s25  ;;  %s5283_s25 = smov 16  }
0x105b   :  { %2782 = vrot.lane.b32.xlu0 %v4929_v60, %s4452_s7 }
0x10c6   :  { %v2623_v13 = vpop.xlane.xlu0 %2622 }
0x10c7   :  { %4421 = vrcp.f32 %v2623_v13 }
0x10ca   :  { %v2620_v21 = vpop.xlane.xlu0 %2619 }
0x10cb   :  { %4423 = vrcp.f32 %v2620_v21 }
0x10ce   :  { %v2630_v22 = vpop.permute.xlu0 %2629 }
0x10cf   :  { %4257 = vmatpush3.msra.mxu0 %v2630_v22 }
0x10d0   :  { %4266 = vmatprep.subr.mxu0 %v4449_v14 }
0x10d2   :  { %v2783_v29 = vpop.permute.xlu0 %2782 }
0x10d4   :  { %v4422_v25 = vpop.eup %4421 }
0x10d5   :  { %v2627_v27 = vmul.f32 %v4422_v25, %v4418_v16 }
0x10d7   :  { %4264 = vmatmul.mubr.msk.f32.vlgmr.msra.gmra.mxu1 %vm332_vm2, %v2627_v27 }
0x10d8   :  { %v4424_v28 = vpop.eup %4423  ;;  %4272 = vmatpush3.xpose.msk.msra.mxu1 %vm332_vm2, %v2863_v26  ;;  %4273 = vmatprep.mubr.msk.f32.mxu1 %vm4450_vm1, %v4449_v14 }
0x10d9   :  { %v2626_v5 = vmul.f32 %v4424_v28, %v4420_v11  ;;  %4281 = vmatprep.subr.mxu1 %v4449_v14 }
0x10db   :  { %4259 = vmatmul.mubr.msk.f32.vlgmr.msra.gmra.mxu0 %vm332_vm2, %v2626_v5  ;;  %4274 = vmatmul.mubr.msk.f32.vlgmr.msra.gmra.mxu1 %vm332_vm2, %v2861_v2 }
0x10dc   :  { %4267 = vmatpush3.xpose.msk.msra.mxu0 %vm332_vm2, %v2785_v23  ;;  %4268 = vmatprep.mubr.msk.f32.mxu0 %vm4450_vm1, %v4449_v14 }
0x10dd   :  { %4276 = vmatprep.subr.mxu0 %v4449_v14  ;;  %4283 = vmatprep.mubr.msk.f32.mxu1 %vm4450_vm1, %v4449_v14 }
0x10df   :  { %4269 = vmatmul.mubr.msk.f32.vlgmr.msra.gmra.mxu0 %vm332_vm2, %v2783_v29 }
0x10e0   :  { %4278 = vmatprep.mubr.msk.f32.mxu0 %vm4450_vm1, %v4449_v14 }
0x1197   :  { %v5030_v30 = vpop.f32.mrf.mxu1 }
0x1199   :  { %v4265_v31 = vpop.f32.mrf.mxu1 }
0x119b   :  { %v5032_v32 = vpop.f32.mrf.mxu0  ;;  %v2934_v24 = vpop.f32.mrf.mxu1 }
0x119c   :  { %v2939_v33 = vsel %vm2273_vm9, %v2934_v24, -1e+20 }
0x119d   :  { %v2941_v34 = vmul.f32 0.17677669, %v2939_v33  ;;  %v4260_v35 = vpop.f32.mrf.mxu0  ;;  %v4275_v36 = vpop.f32.mrf.mxu1 }
0x119f   :  { %v2856_v37 = vpop.f32.mrf.mxu0  ;;  %v2945_v39 = vsel %vm332_vm2, %v2941_v34, -inf }
0x11a0   :  { %v2938_v19 = vsel %vm2272_vm10, %v2856_v37, -1e+20  ;;  %2946 = vmax.xlane.f32.xlu1 %v2945_v39  ;;  %v1844_v39 = vld [vmem:[%s5240_s13 + $0x10] sm:$0xff] }
0x11a1   :  { %v2940_v41 = vmul.f32 0.17677669, %v2938_v19  ;;  %v4270_v38 = vpop.f32.mrf.mxu0  ;;  %v1843_v19 = vld [vmem:[%s5240_s13 + $0x8] sm:$0xff] }
0x11a3   :  { %v2942_v40 = vsel %vm332_vm2, %v2940_v41, -inf }
0x11a4   :  { %2943 = vmax.xlane.f32.xlu0 %v2942_v40 }
0x11b1   :  { %3040 = vrot.lane.b32.xlu1 %v4937_v61, %s4452_s7 }
0x11b5   :  { %3118 = vrot.lane.b32.xlu1 %v4919_v58, %s4453_s24 }
0x11b9   :  { %3196 = vrot.lane.b32.xlu1 %v4915_v56, %s4453_s24 }
0x11bd   :  { %3194 = vrot.lane.b32.xlu1 %v4925_v59, %s4453_s24 }
0x1229   :  { %v2947_v42 = vpop.xlane.xlu1 %2946 }
0x122a   :  { %v2949_v43 = vsub.f32 %v2941_v34, %v2947_v42 }
0x122c   :  { %v2952_v44 = vmul.f32 1.442695, %v2949_v43 }
0x122d   :  { %v2944_v47 = vpop.xlane.xlu0 %2943  ;;  %v3041_v48 = vpop.permute.xlu1 %3040 }
0x122e   :  { %4425 = vpow2.f32 %v2952_v44  ;;  %v2948_v20 = vsub.f32 %v2940_v41, %v2944_v47  ;;  %4282 = vmatpush3.msra.mxu1 %v3041_v48  ;;  %v1842_v41 = vld [vmem:[%s5240_s13] sm:$0xff] }
0x122f   :  { %4291 = vmatprep.subr.mxu1 %v4449_v14 }
0x1230   :  { %v2950_v50 = vmul.f32 1.442695, %v2948_v20 }
0x1231   :  { %v3119_v18 = vpop.permute.xlu1 %3118 }
0x1232   :  { %4427 = vpow2.f32 %v2950_v50 }
0x1235   :  { %v3197_v63 = vpop.permute.xlu1 %3196 }
0x1239   :  { %v3195_v3 = vpop.permute.xlu1 %3194 }
0x123b   :  { %v4426_v52 = vpop.eup %4425 }
0x123c   :  { %v2957_v58 = vsel %vm332_vm2, %v4426_v52, 0.0 }
0x123d   :  { %2958 = vadd.xlane.f32.xlu0 %v2957_v58 }
0x123f   :  { %v4428_v56 = vpop.eup %4427 }
0x1240   :  { %v2954_v53 = vsel %vm332_vm2, %v4428_v56, 0.0 }
0x1241   :  { %2955 = vadd.xlane.f32.xlu0 %v2954_v53 }
0x1257   :  { %2964 = vrot.lane.b32.xlu0 %v4940_v17, %s4452_s7 }
0x125b   :  { %3116 = vrot.lane.b32.xlu0 %v4929_v60, %s4453_s24 }
0x12c6   :  { %v2959_v59 = vpop.xlane.xlu0 %2958 }
0x12c7   :  { %4429 = vrcp.f32 %v2959_v59 }
0x12ca   :  { %v2956_v54 = vpop.xlane.xlu0 %2955 }
0x12cb   :  { %4431 = vrcp.f32 %v2956_v54 }
0x12ce   :  { %v2965_v15 = vpop.permute.xlu0 %2964 }
0x12cf   :  { %4277 = vmatpush3.msra.mxu0 %v2965_v15 }
0x12d0   :  { %4286 = vmatprep.subr.mxu0 %v4449_v14 }
0x12d2   :  { %v3117_v55 = vpop.permute.xlu0 %3116 }
0x12d4   :  { %v4430_v62 = vpop.eup %4429 }
0x12d5   :  { %v2963_v0 = vmul.f32 %v4430_v62, %v4426_v52 }
0x12d7   :  { %4284 = vmatmul.mubr.msk.f32.vlgmr.msra.gmra.mxu1 %vm332_vm2, %v2963_v0 }
0x12d8   :  { %v4432_v1 = vpop.eup %4431  ;;  %4292 = vmatpush3.xpose.msk.msra.mxu1 %vm332_vm2, %v3197_v63  ;;  %4293 = vmatprep.mubr.msk.f32.mxu1 %vm4450_vm1, %v4449_v14 }
0x12d9   :  { %v2962_v60 = vmul.f32 %v4432_v1, %v4428_v56  ;;  %4301 = vmatprep.subr.mxu1 %v4449_v14 }
0x12db   :  { %4279 = vmatmul.mubr.msk.f32.vlgmr.msra.gmra.mxu0 %vm332_vm2, %v2962_v60  ;;  %4294 = vmatmul.mubr.msk.f32.vlgmr.msra.gmra.mxu1 %vm332_vm2, %v3195_v3 }
0x12dc   :  { %4287 = vmatpush3.xpose.msk.msra.mxu0 %vm332_vm2, %v3119_v18  ;;  %4288 = vmatprep.mubr.msk.f32.mxu0 %vm4450_vm1, %v4449_v14 }
0x12dd   :  { %4296 = vmatprep.subr.mxu0 %v4449_v14  ;;  %4303 = vmatprep.mubr.msk.f32.mxu1 %vm4450_vm1, %v4449_v14 }
0x12df   :  { %4289 = vmatmul.mubr.msk.f32.vlgmr.msra.gmra.mxu0 %vm332_vm2, %v3117_v55 }
0x12e0   :  { %4298 = vmatprep.mubr.msk.f32.mxu0 %vm4450_vm1, %v4449_v14 }
0x1397   :  { %v3112_v4 = vpop.f32.mrf.mxu1 }
0x1399   :  { %v4285_v6 = vpop.f32.mrf.mxu1 }
0x139b   :  { %v3036_v7 = vpop.f32.mrf.mxu0  ;;  %v3268_v8 = vpop.f32.mrf.mxu1 }
0x139c   :  { %v3273_v16 = vsel %vm2273_vm9, %v3268_v8, -1e+20 }
0x139d   :  { %v3275_v9 = vmul.f32 0.17677669, %v3273_v16  ;;  %v4280_v11 = vpop.f32.mrf.mxu0  ;;  %v4295_v12 = vpop.f32.mrf.mxu1 }
0x139e   :  { %v3616_v12 = vld [vmem:[%s5242_s17 + $0x18] sm:$0xff] }
0x139f   :  { %v3190_v13 = vpop.f32.mrf.mxu0  ;;  %v3279_v21 = vsel %vm332_vm2, %v3275_v9, -inf }
0x13a0   :  { %v3272_v23 = vsel %vm2272_vm10, %v3190_v13, -1e+20  ;;  %3280 = vmax.xlane.f32.xlu1 %v3279_v21  ;;  %v3615_v13 = vld [vmem:[%s5242_s17 + $0x10] sm:$0xff]  ;;  %v3614_v21 = vld [vmem:[%s5242_s17 + $0x8] sm:$0xff] }
0x13a1   :  { %v3274_v22 = vmul.f32 0.17677669, %v3272_v23  ;;  %v4290_v25 = vpop.f32.mrf.mxu0  ;;  %v3613_v23 = vld [vmem:[%s5242_s17] sm:$0xff] }
0x13a2   :  { %v3632_v25 = vld [vmem:[%s5243_s19 + $0x70] sm:$0xff] }
0x13a3   :  { %v3276_v14 = vsel %vm332_vm2, %v3274_v22, -inf }
0x13a4   :  { %3277 = vmax.xlane.f32.xlu0 %v3276_v14  ;;  %v3631_v14 = vld [vmem:[%s5243_s19 + $0x68] sm:$0xff] }
0x13b1   :  { %3374 = vrot.lane.b32.xlu1 %v4937_v61, %s4453_s24 }
0x13b5   :  { %3452 = vrot.lane.b32.xlu1 %v5032_v32, %s5282_s2 }
0x13b9   :  { %3454 = vrot.lane.b32.xlu1 %v5030_v30, %s5282_s2 }
0x13bd   :  { %3462 = vrot.lane.b32.xlu1 %v3112_v4, %s5283_s25 }
0x1429   :  { %v3281_v57 = vpop.xlane.xlu1 %3280 }
0x142a   :  { %v3283_v10 = vsub.f32 %v3275_v9, %v3281_v57  ;;  %v3630_v57 = vld [vmem:[%s5243_s19 + $0x60] sm:$0xff] }
0x142c   :  { %v3286_v26 = vmul.f32 1.442695, %v3283_v10  ;;  %v3629_v10 = vld [vmem:[%s5243_s19 + $0x58] sm:$0xff] }
0x142d   :  { %v3278_v27 = vpop.xlane.xlu0 %3277  ;;  %v3375_v28 = vpop.permute.xlu1 %3374 }
0x142e   :  { %4433 = vpow2.f32 %v3286_v26  ;;  %v3282_v5 = vsub.f32 %v3274_v22, %v3278_v27  ;;  %4302 = vmatpush3.msra.mxu1 %v3375_v28  ;;  %v3633_v22 = vld [vmem:[%s5243_s19 + $0x78] sm:$0xff]  ;;  %v3628_v26 = vld [vmem:[%s5243_s19 + $0x50] sm:$0xff]  ;;  %v3627_v27 = vld [vmem:[%s5243_s19 + $0x48] sm:$0xff] }
0x142f   :  { %4317 = vmatprep.subr.mxu1 %v3616_v12  ;;  %v3626_v28 = vld [vmem:[%s5243_s19 + $0x40] sm:$0xff] }
0x1430   :  { %v3284_v2 = vmul.f32 1.442695, %v3282_v5  ;;  %v3625_v5 = vld [vmem:[%s5243_s19 + $0x38] sm:$0xff] }
0x1431   :  { %v3453_v44 = vpop.permute.xlu1 %3452 }
0x1432   :  { %4435 = vpow2.f32 %v3284_v2  ;;  %v3474_v50 = vsel %vm332_vm2, %v4990_v46, %v3453_v44  ;;  %v3922_v46 = vld [vmem:[%s5241_s14] ss:$0 sm:$0xff]  ;;  %v3624_v2 = vld [vmem:[%s5243_s19 + $0x30] sm:$0xff] }
0x1433   :  { %v3620_v44 = vld [vmem:[%s5243_s19 + $0x10] sm:$0xff] }
0x1435   :  { %v3455_v47 = vpop.permute.xlu1 %3454 }
0x1436   :  { %v3475_v58 = vsel %vm332_vm2, %v4988_v45, %v3455_v47  ;;  %v3619_v47 = vld [vmem:[%s5243_s19 + $0x8] sm:$0xff] }
0x1439   :  { %v3463_v48 = vpop.permute.xlu1 %3462 }
0x143a   :  { %v3477_v59 = vsel %vm1689_vm5, %v3475_v58, %v3463_v48  ;;  %v3618_v48 = vld [vmem:[%s5243_s19] sm:$0xff] }
0x143b   :  { %v4434_v29 = vpop.eup %4433 }
0x143c   :  { %v3291_v61 = vsel %vm332_vm2, %v4434_v29, 0.0 }
0x143d   :  { %3292 = vadd.xlane.f32.xlu0 %v3291_v61  ;;  %v3622_v61 = vld [vmem:[%s5243_s19 + $0x20] sm:$0xff] }
0x143f   :  { %v4436_v31 = vpop.eup %4435 }
0x1440   :  { %v3288_v32 = vsel %vm332_vm2, %v4436_v31, 0.0 }
0x1441   :  { %3289 = vadd.xlane.f32.xlu0 %v3288_v32 }
0x1457   :  { %3298 = vrot.lane.b32.xlu0 %v4940_v17, %s4453_s24  ;;  %v1845_v17 = vld [vmem:[%s5240_s13 + $0x18] sm:$0xff] }
0x145b   :  { %3460 = vrot.lane.b32.xlu0 %v3036_v7, %s5283_s25 }
0x14c6   :  { %v3293_v30 = vpop.xlane.xlu0 %3292 }
0x14c7   :  { %4437 = vrcp.f32 %v3293_v30 }
0x14ca   :  { %v3290_v24 = vpop.xlane.xlu0 %3289 }
0x14cb   :  { %4439 = vrcp.f32 %v3290_v24 }
0x14ce   :  { %v3299_v33 = vpop.permute.xlu0 %3298 }
0x14cf   :  { %4297 = vmatpush3.msra.mxu0 %v3299_v33 }
0x14d0   :  { %4306 = vmatprep.subr.mxu0 %v1845_v17 }
0x14d2   :  { %v3461_v20 = vpop.permute.xlu0 %3460 }
0x14d3   :  { %v3476_v56 = vsel %vm1689_vm5, %v3474_v50, %v3461_v20  ;;  %v3927_v20 = vld [vmem:[%s5246_s18] ss:$0 sm:$0xff] }
0x14d4   :  { %v4438_v34 = vpop.eup %4437 }
0x14d5   :  { %v3297_v35 = vmul.f32 %v4438_v34, %v4434_v29  ;;  %v3623_v29 = vld [vmem:[%s5243_s19 + $0x28] sm:$0xff] }
0x14d7   :  { %4304 = vmatmul.mubr.msk.f32.vlgmr.msra.gmra.mxu1 %vm332_vm2, %v3297_v35 }
0x14d8   :  { %v4440_v36 = vpop.eup %4439  ;;  %4318 = vmatpush3.msra.mxu1 %v3616_v12 }
0x14d9   :  { %v3296_v37 = vmul.f32 %v4440_v36, %v4436_v31  ;;  %4319 = vmatprep.subr.mxu1 %v3615_v13  ;;  %v3925_v36 = vld [vmem:[%s5244_s15] ss:$0 sm:$0xff] }
0x14da   :  { %4320 = vmatpush3.msra.mxu1 %v3615_v13 }
0x14db   :  { %4299 = vmatmul.mubr.msk.f32.vlgmr.msra.gmra.mxu0 %vm332_vm2, %v3296_v37  ;;  %4321 = vmatprep.subr.mxu1 %v3614_v21 }
0x14dc   :  { %4307 = vmatpush3.msra.mxu0 %v1845_v17  ;;  %4322 = vmatpush3.msra.mxu1 %v3614_v21  ;;  %v3926_v17 = vld [vmem:[%s5245_s16] ss:$0 sm:$0xff] }
0x14dd   :  { %4308 = vmatprep.subr.mxu0 %v1844_v39  ;;  %4323 = vmatprep.subr.mxu1 %v3613_v23 }
0x14de   :  { %4309 = vmatpush3.msra.mxu0 %v1844_v39  ;;  %4324 = vmatpush3.msra.mxu1 %v3613_v23 }
0x14df   :  { %4310 = vmatprep.subr.mxu0 %v1843_v19 }
0x14e0   :  { %4311 = vmatpush3.msra.mxu0 %v1843_v19 }
0x14e1   :  { %4312 = vmatprep.subr.mxu0 %v1842_v41 }
0x14e2   :  { %4313 = vmatpush3.msra.mxu0 %v1842_v41 }
0x14e3   :  { %4328 = vmatprep.subr.mxu0 %v3633_v22 }
0x1597   :  { %v3446_v38 = vpop.f32.mrf.mxu1 }
0x1598   :  { %3470 = vrot.lane.b32.xlu1 %v3446_v38, %s5284_s11 }
0x1599   :  { %v4305_v40 = vpop.f32.mrf.mxu1 }
0x159b   :  { %v3370_v42 = vpop.f32.mrf.mxu0 }
0x159c   :  { %3468 = vrot.lane.b32.xlu0 %v3370_v42, %s5284_s11 }
0x159d   :  { %v4300_v43 = vpop.f32.mrf.mxu0 }
0x159e   :  { %v3621_v43 = vld [vmem:[%s5243_s19 + $0x18] sm:$0xff] }
0x160a   :  { %v3471_v52 = vpop.permute.xlu1 %3470 }
0x160b   :  { %v3479_v18 = vsel %vm1692_vm4, %v3477_v59, %v3471_v52 }
0x160e   :  { %v3469_v53 = vpop.permute.xlu0 %3468 }
0x160f   :  { %v3478_v54 = vsel %vm1692_vm4, %v3476_v56, %v3469_v53 }
0x1610   :  { %4314 = vmatprep.mubr.msk.f32.mxu0 %vm95_vm0, %v3478_v54  ;;  %v3930_v54 = vld [vmem:[%s5247_s20] ss:$0 sm:$0xff] }
0x1611   :  { %4315 = vmatmul.mubr.msk.f32.vlgmr.msra.gmra.mxu0 %vm95_vm0, %v3479_v18 }
0x1612   :  { %4329 = vmatpush3.msra.mxu0 %v3633_v22 }
0x1613   :  { %4330 = vmatprep.subr.mxu0 %v3632_v25 }
0x1614   :  { %4331 = vmatpush3.msra.mxu0 %v3632_v25  ;;  %v3931_v25 = vld [vmem:[%s5248_s21] ss:$0 sm:$0xff] }
0x1615   :  { %4332 = vmatprep.subr.mxu0 %v3631_v14 }
0x1616   :  { %4333 = vmatpush3.msra.mxu0 %v3631_v14 }
0x1617   :  { %4334 = vmatprep.subr.mxu0 %v3630_v57 }
0x1618   :  { %4335 = vmatpush3.msra.mxu0 %v3630_v57 }
0x1619   :  { %4336 = vmatprep.subr.mxu0 %v3629_v10 }
0x161a   :  { %4337 = vmatpush3.msra.mxu0 %v3629_v10  ;;  %v3932_v10 = vld [vmem:[%s5249_s22] ss:$0 sm:$0xff] }
0x161b   :  { %4338 = vmatprep.subr.mxu0 %v3628_v26 }
0x161c   :  { %4339 = vmatpush3.msra.mxu0 %v3628_v26 }
0x161d   :  { %4340 = vmatprep.subr.mxu0 %v3627_v27 }
0x161e   :  { %4341 = vmatpush3.msra.mxu0 %v3627_v27 }
0x161f   :  { %4342 = vmatprep.subr.mxu0 %v3626_v28 }
0x1620   :  { %4343 = vmatpush3.msra.mxu0 %v3626_v28 }
0x1621   :  { %4344 = vmatprep.subr.mxu0 %v3625_v5 }
0x1622   :  { %4345 = vmatpush3.msra.mxu0 %v3625_v5 }
0x1623   :  { %4346 = vmatprep.subr.mxu0 %v3624_v2 }
0x1624   :  { %4347 = vmatpush3.msra.mxu0 %v3624_v2 }
0x1625   :  { %4348 = vmatprep.subr.mxu0 %v3623_v29 }
0x1626   :  { %4349 = vmatpush3.msra.mxu0 %v3623_v29 }
0x1627   :  { %4350 = vmatprep.subr.mxu0 %v3622_v61 }
0x1628   :  { %4351 = vmatpush3.msra.mxu0 %v3622_v61 }
0x1629   :  { %4352 = vmatprep.subr.mxu0 %v3621_v43 }
0x162a   :  { %4353 = vmatpush3.msra.mxu0 %v3621_v43 }
0x162b   :  { %4354 = vmatprep.subr.mxu0 %v3620_v44 }
0x162c   :  { %4355 = vmatpush3.msra.mxu0 %v3620_v44 }
0x162d   :  { %4356 = vmatprep.subr.mxu0 %v3619_v47 }
0x162e   :  { %4357 = vmatpush3.msra.mxu0 %v3619_v47 }
0x162f   :  { %4358 = vmatprep.subr.mxu0 %v3618_v48 }
0x1630   :  { %4359 = vmatpush3.msra.mxu0 %v3618_v48 }
0x16d1   :  { %v4316_v15 = vpop.f32.mrf.mxu0 }
0x16d2   :  { %v3564_v62 = vadd.f32 %v4316_v15, %v3922_v46 }
0x16d3   :  { %v3558_v45 = vpop.f32.mrf.mxu0 }
0x16d4   :  { %v3559_v63 = vadd.f32 %v3922_v46, %v3558_v45  ;;  %v3570_v0 = vadd.f32 %v3564_v62, %v4897_v51 }
0x16d6   :  { %v3574_v1 = vsel %vm95_vm0, %v3570_v0, 0.0  ;;  %v3569_v60 = vadd.f32 %v3559_v63, %v4893_v49 }
0x16d7   :  { %3575 = vadd.xlane.f32.xlu1 %v3574_v1 }
0x16d8   :  { %v3571_v3 = vsel %vm95_vm0, %v3569_v60, 0.0 }
0x16d9   :  { %3572 = vadd.xlane.f32.xlu0 %v3571_v3 }
0x1760   :  { %v3576_v55 = vpop.xlane.xlu1 %3575 }
0x1761   :  { %v3578_v4 = vmul.f32 0.03125, %v3576_v55 }
0x1762   :  { %v3573_v6 = vpop.xlane.xlu0 %3572 }
0x1763   :  { %v3577_v7 = vmul.f32 0.03125, %v3573_v6  ;;  %v5123_v8 = vsub.f32 %v3570_v0, %v3578_v4 }
0x1765   :  { %v5125_v16 = vsub.f32 %v3569_v60, %v3577_v7  ;;  %v3582_v49 = vmul.f32 %v5123_v8, %v5123_v8 }
0x1767   :  { %v3581_v9 = vmul.f32 %v5125_v16, %v5125_v16  ;;  %v3586_v11 = vsel %vm95_vm0, %v3582_v49, 0.0 }
0x1769   :  { %v3583_v51 = vsel %vm95_vm0, %v3581_v9, 0.0 }
0x176a   :  { %3584 = vadd.xlane.f32.xlu0 %v3583_v51 }
0x176e   :  { %3587 = vadd.xlane.f32.xlu0 %v3586_v11 }
0x17f3   :  { %v3585_v31 = vpop.xlane.xlu0 %3584 }
0x17f4   :  { %v3589_v32 = vmul.f32 0.03125, %v3585_v31 }
0x17f6   :  { %v3591_v30 = vadd.f32 1e-05, %v3589_v32 }
0x17f7   :  { %v3588_v24 = vpop.xlane.xlu0 %3587 }
0x17f8   :  { %4441 = vrsqrt.f32 %v3591_v30  ;;  %v3590_v33 = vmul.f32 0.03125, %v3588_v24 }
0x17fa   :  { %v3592_v34 = vadd.f32 1e-05, %v3590_v33 }
0x17fc   :  { %4443 = vrsqrt.f32 %v3592_v34 }
0x1805   :  { %v4442_v35 = vpop.eup %4441 }
0x1806   :  { %v3595_v37 = vmul.f32 %v4442_v35, %v5125_v16 }
0x1808   :  { %v3603_v39 = vmul.f32 %v3925_v36, %v3595_v37 }
0x1809   :  { %v4444_v19 = vpop.eup %4443 }
0x180a   :  { %v3596_v41 = vmul.f32 %v4444_v19, %v5123_v8  ;;  %v3611_v38 = vadd.f32 %v3926_v17, %v3603_v39 }
0x180c   :  { %v3604_v40 = vmul.f32 %v3925_v36, %v3596_v41  ;;  %4325 = vmatprep.mubr.msk.f32.mxu1 %vm95_vm0, %v3611_v38 }
0x180e   :  { %v3612_v42 = vadd.f32 %v3926_v17, %v3604_v40 }
0x1810   :  { %4326 = vmatmul.mubr.msk.f32.vlgmr.msra.gmra.mxu1 %vm95_vm0, %v3612_v42 }
0x18d0   :  { %v4327_v50 = vpop.f32.mrf.mxu1 }
0x18d1   :  { %v3719_v52 = vadd.f32 %v4327_v50, %v3927_v20 }
0x18d2   :  { %v3713_v58 = vpop.f32.mrf.mxu1 }
0x18d3   :  { %v3714_v56 = vadd.f32 %v3927_v20, %v3713_v58  ;;  %v3723_v59 = vmax.f32 %v3719_v52, 0.0 }
0x18d5   :  { %v3722_v53 = vmax.f32 %v3714_v56, 0.0 }
0x18d7   :  { %4360 = vmatprep.mubr.f32.mxu0 %v3722_v53 }
0x18d8   :  { %4361 = vmatmul.mubr.f32.vlgmr.msra.gmra.mxu0 %v3723_v59 }
0x1998   :  { %v4362_v18 = vpop.f32.mrf.mxu0 }
0x1999   :  { %v3802_v46 = vadd.f32 %v4362_v18, %v3930_v54 }
0x199a   :  { %v3796_v15 = vpop.f32.mrf.mxu0 }
0x199b   :  { %v3797_v62 = vadd.f32 %v3930_v54, %v3796_v15  ;;  %v3808_v45 = vadd.f32 %v3802_v46, %v3612_v42 }
0x199d   :  { %v3812_v63 = vsel %vm95_vm0, %v3808_v45, 0.0  ;;  %v3807_v0 = vadd.f32 %v3797_v62, %v3611_v38 }
0x199e   :  { %3813 = vadd.xlane.f32.xlu1 %v3812_v63 }
0x199f   :  { %v3809_v1 = vsel %vm95_vm0, %v3807_v0, 0.0 }
0x19a0   :  { %3810 = vadd.xlane.f32.xlu0 %v3809_v1 }
0x1a27   :  { %v3814_v60 = vpop.xlane.xlu1 %3813 }
0x1a28   :  { %v3816_v3 = vmul.f32 0.03125, %v3814_v60 }
0x1a29   :  { %v3811_v55 = vpop.xlane.xlu0 %3810 }
0x1a2a   :  { %v3818_v4 = vsub.f32 %v3808_v45, %v3816_v3  ;;  %v3815_v6 = vmul.f32 0.03125, %v3811_v55 }
0x1a2c   :  { %v3817_v7 = vsub.f32 %v3807_v0, %v3815_v6  ;;  %v3820_v8 = vmul.f32 %v3818_v4, %v3818_v4 }
0x1a2e   :  { %v3824_v16 = vsel %vm95_vm0, %v3820_v8, 0.0  ;;  %v3819_v9 = vmul.f32 %v3817_v7, %v3817_v7 }
0x1a2f   :  { %3825 = vadd.xlane.f32.xlu1 %v3824_v16 }
0x1a30   :  { %v3821_v51 = vsel %vm95_vm0, %v3819_v9, 0.0 }
0x1a31   :  { %3822 = vadd.xlane.f32.xlu0 %v3821_v51 }
0x1ab8   :  { %v3826_v49 = vpop.xlane.xlu1 %3825 }
0x1ab9   :  { %v3828_v11 = vmul.f32 0.03125, %v3826_v49 }
0x1aba   :  { %v3823_v12 = vpop.xlane.xlu0 %3822 }
0x1abb   :  { %v3830_v13 = vadd.f32 1e-05, %v3828_v11  ;;  %v3827_v21 = vmul.f32 0.03125, %v3823_v12 }
0x1abd   :  { %4445 = vrsqrt.f32 %v3830_v13  ;;  %v3829_v23 = vadd.f32 1e-05, %v3827_v21 }
0x1abf   :  { %4447 = vrsqrt.f32 %v3829_v23 }
0x1aca   :  { %v4446_v22 = vpop.eup %4445 }
0x1acb   :  { %v3834_v14 = vmul.f32 %v4446_v22, %v3818_v4 }
0x1acc   :  { %v4448_v57 = vpop.eup %4447 }
0x1acd   :  { %v3842_v26 = vmul.f32 %v3931_v25, %v3834_v14  ;;  %v3833_v27 = vmul.f32 %v4448_v57, %v3817_v7 }
0x1acf   :  { %v3850_v28 = vadd.f32 %v3932_v10, %v3842_v26  ;;  %v3841_v5 = vmul.f32 %v3931_v25, %v3833_v27 }
0x1ad1   :  { %3852 = vst.msk [vmem:[%s5250_s23 + $0x8] sm:$0xff] %vm95_vm0, %v3850_v28  ;;  %v3849_v2 = vadd.f32 %v3932_v10, %v3841_v5 }
0x1ad3   :  { %3851 = vst.msk [vmem:[%s5250_s23] sm:$0xff] %vm95_vm0, %v3849_v2 }

// kernel: transformer_forward.8
= control target key start
LH: loop header
LB: loop body
LE: loop exit
PB: predicated region body
PF: predicated region fallthrough
CT: control target
= control target key end

     0   :  { %s5264_s0 = inlined_call_operand.vmem [shape: f32[2,8,32], index: 0, kind: input, shape index: {}]   ;;  %s5265_s1 = inlined_call_operand.vmem [shape: f32[2,8,32], index: 1, kind: input, shape index: {}]   ;;  %s5266_s2 = inlined_call_operand.vmem [shape: f32[2,8], index: 2, kind: input, shape index: {}]   ;;  %s5267_s3 = inlined_call_operand.vmem [shape: f32[32,32], index: 3, kind: input, shape index: {}]   ;;  %s5268_s4 = inlined_call_operand.vmem [shape: f32[32,32], index: 4, kind: input, shape index: {}]   ;;  %s5269_s5 = inlined_call_operand.vmem [shape: f32[32,32], index: 5, kind: input, shape index: {}]   ;;  %s5270_s6 = inlined_call_operand.vmem [shape: f32[32,32], index: 6, kind: input, shape index: {}]   ;;  %s5271_s7 = inlined_call_operand.vmem [shape: f32[1,32], index: 7, kind: input, shape index: {}]   ;;  %s5272_s8 = inlined_call_operand.vmem [shape: f32[1,32], index: 8, kind: input, shape index: {}]   ;;  %s5273_s9 = inlined_call_operand.vmem [shape: f32[1,32], index: 9, kind: input, shape index: {}]   ;;  %s5274_s10 = inlined_call_operand.vmem [shape: f32[32,32], index: 10, kind: input, shape index: {}]   ;;  %s5275_s11 = inlined_call_operand.vmem [shape: f32[32,32], index: 11, kind: input, shape index: {}]   ;;  %s5276_s12 = inlined_call_operand.vmem [shape: f32[32,32], index: 12, kind: input, shape index: {}]   ;;  %s5277_s13 = inlined_call_operand.vmem [shape: f32[32,32], index: 13, kind: input, shape index: {}]   ;;  %s5278_s14 = inlined_call_operand.vmem [shape: f32[1,32], index: 14, kind: input, shape index: {}]   ;;  %s5279_s15 = inlined_call_operand.vmem [shape: f32[1,32], index: 15, kind: input, shape index: {}]   ;;  %s5280_s16 = inlined_call_operand.vmem [shape: f32[1,32], index: 16, kind: input, shape index: {}]   ;;  %s5281_s17 = inlined_call_operand.vmem [shape: f32[32,128], index: 17, kind: input, shape index: {}]   ;;  %s5282_s18 = inlined_call_operand.vmem [shape: f32[1,128], index: 18, kind: input, shape index: {}]   ;;  %s5283_s19 = inlined_call_operand.vmem [shape: f32[128,32], index: 19, kind: input, shape index: {}]   ;;  %s5284_s20 = inlined_call_operand.vmem [shape: f32[1,32], index: 20, kind: input, shape index: {}]   ;;  %s5285_s21 = inlined_call_operand.vmem [shape: f32[1,32], index: 21, kind: input, shape index: {}]   ;;  %s5286_s22 = inlined_call_operand.hbm [shape: f32[1,32], index: 22, kind: input, shape index: {}]   ;;  %s5287_s23 = inlined_call_operand.vmem [shape: f32[2,8,32], index: 23, kind: output, shape index: {}]  }
   0x1   :  { %5296 = sst [smem:[#allocation5_spill]] %s5264_s0 }
   0x2   :  { %5297 = sst [smem:[#allocation6_spill]] %s5265_s1 }
   0x3   :  { %5298 = sst [smem:[#allocation7_spill]] %s5266_s2 }
   0x4   :  { %5299 = sst [smem:[#allocation8_spill]] %s5267_s3 }
   0x5   :  { %5300 = sst [smem:[#allocation9_spill]] %s5268_s4 }
   0x6   :  { %5301 = sst [smem:[#allocation10_spill]] %s5269_s5 }
   0x7   :  { %5302 = sst [smem:[#allocation11_spill]] %s5270_s6 }
   0x8   :  { %5303 = sst [smem:[#allocation12_spill]] %s5271_s7 }
   0x9   :  { %28 = vsyncpa [#allocation3], 0  ;;  %s4485_s4 = smov [#allocation2]  }
   0xa   :  { %s79_s30 = sshll.u32 %s4485_s4, 4  ;;  %s80_s30 = int_to_ptr.vmem [resolvable:$true] %s79_s30 }
   0xb   :  { %s4471_s24 = scalar_lea.vmem %s80_s30, 16  ;;  %s4475_s25 = scalar_lea.vmem %s80_s30, 32 }
   0xc   :  { %p4472_p0 = scmp.ne.s32.totalorder %s80_s30, %s4471_s24  ;;  %p4476_p1 = scmp.lt.s32.totalorder %s80_s30, %s80_s30 }
   0xd   :  { %p4477_p2 = scmp.lt.s32.totalorder %s4475_s25, %s4471_s24 }
   0xf   :  { %p4478_p3 = por %p4477_p2, %p4476_p1 }
  0x11   :  { %p4479_p4 = pnand %p4478_p3, %p4472_p0 }
  0x13   :  { %4482 = shalt.err (!%p4479_p4)
}
  0x14   :  { %82 = dma.hbm_to_vmem [thread:$0]  %s5286_s22, 16, %s80_s30, [#allocation3]  }
  0x15   :  { %4483 = dma.done.wait [#allocation3], 16  }
  0x16   :  { %4484 = vsyncadd [#allocation3], 4294967280  ;;  %vm107_vm0 = vcmask 261120   ;;  %s5304_s6 = sld [smem:[#allocation8_spill]]  ;;  %v4486_v14 = vmov 0.0   ;;  %vm4487_vm1 = vmmov 0   ;;  %v339_v21 = vlaneseq }
  0x17   :  { %s5305_s3 = sld [smem:[#allocation5_spill]]  ;;  %4125 = vmatprep.subr.mxu0 %v4486_v14  ;;  %4127 = vmatprep.mubr.msk.f32.mxu0 %vm4487_vm1, %v4486_v14  ;;  %vm344_vm2 = vcmask 64512   ;;  %s4489_s2 = smov 112   ;;  %vm1704_vm4 = vcmask 195584   ;;  %vm1701_vm5 = vcmask 130048  }
  0x18   :  { %s5306_s26 = sld [smem:[#allocation9_spill]]  ;;  %v4717_v22 = vshrl.u32 %v339_v21, 7  ;;  %v342_v23 = vand.u32 127, %v339_v21  ;;  %s4490_s27 = smov 104  }
  0x19   :  { %s5307_s22 = sld [smem:[#allocation10_spill]]  ;;  %s4492_s7 = smov 16  }
  0x1a   :  { %vm4720_vm3 = vcmp.le.s32.totalorder %v342_v23, %v4717_v22  ;;  %s5294_s5 = smov 24   ;;  %s5311_s29 = sld [smem:[#allocation12_spill]] }
  0x1c   :  { %v93_v0 = vld [vmem:[%s5304_s6 + $0x18] sm:$0xff]  ;;  %v92_v1 = vld [vmem:[%s5304_s6 + $0x10] sm:$0xff]  ;;  %v91_v3 = vld [vmem:[%s5304_s6 + $0x8] sm:$0xff] }
  0x1d   :  { %4082 = vmatprep.subr.mxu1 %v93_v0  ;;  %v4628_v2 = vld [vmem:[%s5305_s3] sm:$0xff]  ;;  %v4641_v5 = vld [vmem:[%s5305_s3 + $0x8] sm:$0xff]  ;;  %s5310_s3 = sld [smem:[#allocation11_spill]] }
  0x1e   :  { %4083 = vmatpush3.msra.mxu1 %v93_v0  ;;  %4090 = vmatprep.mubr.msk.f32.mxu1 %vm107_vm0, %v4628_v2  ;;  %v90_v4 = vld [vmem:[%s5304_s6] sm:$0xff]  ;;  %v97_v6 = vld [vmem:[%s5306_s26 + $0x18] sm:$0xff]  ;;  %v96_v7 = vld [vmem:[%s5306_s26 + $0x10] sm:$0xff]  ;;  %s4491_s6 = smov 8  }
  0x1f   :  { %4084 = vmatprep.subr.mxu1 %v92_v1  ;;  %v95_v8 = vld [vmem:[%s5306_s26 + $0x8] sm:$0xff]  ;;  %v94_v9 = vld [vmem:[%s5306_s26] sm:$0xff]  ;;  %v101_v10 = vld [vmem:[%s5307_s22 + $0x18] sm:$0xff]  ;;  %s4488_s26 = smov 120  }
  0x20   :  { %4085 = vmatpush3.msra.mxu1 %v92_v1  ;;  %v100_v11 = vld [vmem:[%s5307_s22 + $0x10] sm:$0xff]  ;;  %v99_v12 = vld [vmem:[%s5307_s22 + $0x8] sm:$0xff]  ;;  %v98_v13 = vld [vmem:[%s5307_s22] sm:$0xff] }
  0x21   :  { %4086 = vmatprep.subr.mxu1 %v91_v3 }
  0x22   :  { %4087 = vmatpush3.msra.mxu1 %v91_v3 }
  0x23   :  { %4088 = vmatprep.subr.mxu1 %v90_v4 }
  0x24   :  { %4089 = vmatpush3.msra.mxu1 %v90_v4 }
  0x25   :  { %4091 = vmatmul.mubr.msk.f32.vlgmr.msra.gmra.mxu1 %vm107_vm0, %v4641_v5  ;;  %4093 = vmatprep.subr.mxu1 %v97_v6 }
  0x26   :  { %4094 = vmatpush3.msra.mxu1 %v97_v6  ;;  %4101 = vmatprep.mubr.msk.f32.mxu1 %vm107_vm0, %v4628_v2 }
  0x27   :  { %4095 = vmatprep.subr.mxu1 %v96_v7 }
  0x28   :  { %4096 = vmatpush3.msra.mxu1 %v96_v7 }
  0x29   :  { %4097 = vmatprep.subr.mxu1 %v95_v8 }
  0x2a   :  { %4098 = vmatpush3.msra.mxu1 %v95_v8 }
  0x2b   :  { %4099 = vmatprep.subr.mxu1 %v94_v9 }
  0x2c   :  { %4100 = vmatpush3.msra.mxu1 %v94_v9 }
  0x2d   :  { %4102 = vmatmul.mubr.msk.f32.vlgmr.msra.gmra.mxu1 %vm107_vm0, %v4641_v5  ;;  %4104 = vmatprep.subr.mxu1 %v101_v10 }
  0x2e   :  { %4112 = vmatprep.mubr.msk.f32.mxu1 %vm107_vm0, %v4628_v2  ;;  %4105 = vmatpush3.msra.mxu1 %v101_v10 }
  0x2f   :  { %4106 = vmatprep.subr.mxu1 %v100_v11 }
  0x30   :  { %4107 = vmatpush3.msra.mxu1 %v100_v11 }
  0x31   :  { %4108 = vmatprep.subr.mxu1 %v99_v12 }
  0x32   :  { %4109 = vmatpush3.msra.mxu1 %v99_v12 }
  0x33   :  { %4110 = vmatprep.subr.mxu1 %v98_v13 }
  0x34   :  { %4111 = vmatpush3.msra.mxu1 %v98_v13 }
  0x35   :  { %4113 = vmatmul.mubr.msk.f32.vlgmr.msra.gmra.mxu1 %vm107_vm0, %v4641_v5  ;;  %4115 = vmatprep.subr.mxu1 %v4486_v14 }
  0x36   :  { %4117 = vmatprep.mubr.msk.f32.mxu1 %vm4487_vm1, %v4486_v14 }
  0xe5   :  { %v4683_v15 = vpop.f32.mrf.mxu1 }
  0xe7   :  { %v4685_v16 = vpop.f32.mrf.mxu1 }
  0xed   :  { %v4687_v17 = vpop.f32.mrf.mxu1 }
  0xee   :  { %751 = vrot.lane.b32.xlu1 %v4687_v17, %s4488_s26 }
  0xef   :  { %v4691_v18 = vpop.f32.mrf.mxu1 }
  0xf0   :  { %4116 = vmatpush3.xpose.msk.msra.mxu1 %vm344_vm2, %v4691_v18 }
  0xf1   :  { %4120 = vmatprep.subr.mxu1 %v4486_v14 }
  0xf2   :  { %671 = vrot.lane.b32.xlu1 %v4685_v16, %s4488_s26 }
  0xf3   :  { %4118 = vmatmul.mubr.msk.f32.vlgmr.msra.gmra.mxu1 %vm344_vm2, %v4685_v16 }
  0xf4   :  { %4121 = vmatpush3.xpose.msk.msra.mxu1 %vm344_vm2, %v4687_v17  ;;  %4122 = vmatprep.mubr.msk.f32.mxu1 %vm4487_vm1, %v4486_v14 }
  0xf5   :  { %4130 = vmatprep.subr.mxu1 %v4486_v14  ;;  %v4709_v19 = vpop.f32.mrf.mxu1 }
  0xf7   :  { %4123 = vmatmul.mubr.msk.f32.vlgmr.msra.gmra.mxu1 %vm344_vm2, %v4683_v15  ;;  %v4712_v20 = vpop.f32.mrf.mxu1 }
  0xf8   :  { %4132 = vmatprep.mubr.msk.f32.mxu1 %vm4487_vm1, %v4486_v14  ;;  %4131 = vmatpush3.msra.mxu1 %v4709_v19 }
  0xf9   :  { %4140 = vmatprep.subr.mxu1 %v4486_v14  ;;  %4126 = vmatpush3.msra.mxu0 %v4712_v20 }
  0xfa   :  { %4135 = vmatprep.subr.mxu0 %v4486_v14 }
 0x160   :  { %v752_v45 = vpop.permute.xlu1 %751 }
 0x164   :  { %v672_v46 = vpop.permute.xlu1 %671 }
 0x1b3   :  { %v417_v25 = vpop.f32.mrf.mxu1 }
 0x1b4   :  { %v499_v26 = vsel %vm4720_vm3, %v417_v25, -1e+20 }
 0x1b5   :  { %v501_v27 = vmul.f32 0.17677669, %v499_v26  ;;  %v4119_v28 = vpop.f32.mrf.mxu1 }
 0x1b7   :  { %v493_v29 = vpop.f32.mrf.mxu1  ;;  %v503_v30 = vsel %vm344_vm2, %v501_v27, -inf }
 0x1b8   :  { %v500_v31 = vsel %vm4720_vm3, %v493_v29, -1e+20  ;;  %504 = vmax.xlane.f32.xlu0 %v503_v30 }
 0x1b9   :  { %v502_v32 = vmul.f32 0.17677669, %v500_v31  ;;  %v4124_v33 = vpop.f32.mrf.mxu1 }
 0x1bb   :  { %v506_v34 = vsel %vm344_vm2, %v502_v32, -inf }
 0x1bc   :  { %507 = vmax.xlane.f32.xlu0 %v506_v34 }
 0x1d2   :  { %673 = vrot.lane.b32.xlu0 %v4691_v18, %s4488_s26 }
 0x241   :  { %v505_v35 = vpop.xlane.xlu0 %504 }
 0x242   :  { %v509_v36 = vsub.f32 %v501_v27, %v505_v35 }
 0x244   :  { %v511_v37 = vmul.f32 1.442695, %v509_v36 }
 0x245   :  { %v508_v38 = vpop.xlane.xlu0 %507 }
 0x246   :  { %4387 = vpow2.f32 %v511_v37  ;;  %v510_v39 = vsub.f32 %v502_v32, %v508_v38 }
 0x248   :  { %v513_v40 = vmul.f32 1.442695, %v510_v39 }
 0x249   :  { %v674_v51 = vpop.permute.xlu0 %673 }
 0x24a   :  { %4389 = vpow2.f32 %v513_v40 }
 0x253   :  { %v4388_v41 = vpop.eup %4387 }
 0x254   :  { %v515_v42 = vsel %vm344_vm2, %v4388_v41, 0.0 }
 0x255   :  { %516 = vadd.xlane.f32.xlu1 %v515_v42 }
 0x257   :  { %v4390_v43 = vpop.eup %4389 }
 0x258   :  { %v518_v44 = vsel %vm344_vm2, %v4390_v43, 0.0 }
 0x259   :  { %519 = vadd.xlane.f32.xlu1 %v518_v44 }
 0x26a   :  { %749 = vrot.lane.b32.xlu1 %v4683_v15, %s4488_s26 }
 0x2de   :  { %v517_v47 = vpop.xlane.xlu1 %516 }
 0x2df   :  { %4391 = vrcp.f32 %v517_v47 }
 0x2e2   :  { %v520_v48 = vpop.xlane.xlu1 %519 }
 0x2e3   :  { %4393 = vrcp.f32 %v520_v48 }
 0x2e6   :  { %v750_v54 = vpop.permute.xlu1 %749 }
 0x2ec   :  { %v4392_v49 = vpop.eup %4391 }
 0x2ed   :  { %v523_v50 = vmul.f32 %v4392_v49, %v4388_v41 }
 0x2ef   :  { %4128 = vmatmul.mubr.msk.f32.vlgmr.msra.gmra.mxu0 %vm344_vm2, %v523_v50 }
 0x2f0   :  { %v4394_v52 = vpop.eup %4393  ;;  %4136 = vmatpush3.xpose.msk.msra.mxu0 %vm344_vm2, %v674_v51  ;;  %4137 = vmatprep.mubr.msk.f32.mxu0 %vm4487_vm1, %v4486_v14 }
 0x2f1   :  { %v524_v53 = vmul.f32 %v4394_v52, %v4390_v43  ;;  %4145 = vmatprep.subr.mxu0 %v4486_v14 }
 0x2f3   :  { %4133 = vmatmul.mubr.msk.f32.vlgmr.msra.gmra.mxu1 %vm344_vm2, %v524_v53  ;;  %4138 = vmatmul.mubr.msk.f32.vlgmr.msra.gmra.mxu0 %vm344_vm2, %v672_v46 }
 0x2f4   :  { %4141 = vmatpush3.xpose.msk.msra.mxu1 %vm344_vm2, %v752_v45  ;;  %4142 = vmatprep.mubr.msk.f32.mxu1 %vm4487_vm1, %v4486_v14 }
 0x2f5   :  { %4150 = vmatprep.subr.mxu1 %v4486_v14  ;;  %4147 = vmatprep.mubr.msk.f32.mxu0 %vm4487_vm1, %v4486_v14 }
 0x2f7   :  { %4143 = vmatmul.mubr.msk.f32.vlgmr.msra.gmra.mxu1 %vm344_vm2, %v750_v54 }
 0x2f8   :  { %4152 = vmatprep.mubr.msk.f32.mxu1 %vm4487_vm1, %v4486_v14 }
 0x3af   :  { %v4752_v55 = vpop.f32.mrf.mxu0 }
 0x3b1   :  { %v4129_v56 = vpop.f32.mrf.mxu0 }
 0x3b3   :  { %v4754_v57 = vpop.f32.mrf.mxu1  ;;  %v745_v58 = vpop.f32.mrf.mxu0 }
 0x3b4   :  { %v827_v59 = vsel %vm4720_vm3, %v745_v58, -1e+20 }
 0x3b5   :  { %v829_v60 = vmul.f32 0.17677669, %v827_v59  ;;  %v4134_v61 = vpop.f32.mrf.mxu1  ;;  %v4139_v62 = vpop.f32.mrf.mxu0 }
 0x3b7   :  { %v823_v63 = vpop.f32.mrf.mxu1  ;;  %v831_v0 = vsel %vm344_vm2, %v829_v60, -inf }
 0x3b8   :  { %v828_v1 = vsel %vm4720_vm3, %v823_v63, -1e+20  ;;  %832 = vmax.xlane.f32.xlu0 %v831_v0 }
 0x3b9   :  { %v830_v3 = vmul.f32 0.17677669, %v828_v1  ;;  %v4144_v4 = vpop.f32.mrf.mxu1 }
 0x3bb   :  { %v834_v6 = vsel %vm344_vm2, %v830_v3, -inf }
 0x3bc   :  { %835 = vmax.xlane.f32.xlu1 %v834_v6 }
 0x3cd   :  { %931 = vrot.lane.b32.xlu1 %v4709_v19, %s4488_s26 }
 0x3ce   :  { %854 = vrot.lane.b32.xlu0 %v4712_v20, %s4488_s26 }
 0x3d1   :  { %1009 = vrot.lane.b32.xlu1 %v4691_v18, %s4489_s2 }
 0x3d5   :  { %1087 = vrot.lane.b32.xlu1 %v4687_v17, %s4489_s2 }
 0x3d9   :  { %1085 = vrot.lane.b32.xlu1 %v4683_v15, %s4489_s2 }
 0x441   :  { %v833_v7 = vpop.xlane.xlu0 %832 }
 0x442   :  { %v837_v8 = vsub.f32 %v829_v60, %v833_v7 }
 0x444   :  { %v839_v9 = vmul.f32 1.442695, %v837_v8 }
 0x445   :  { %v855_v10 = vpop.permute.xlu0 %854  ;;  %v836_v11 = vpop.xlane.xlu1 %835 }
 0x446   :  { %4395 = vpow2.f32 %v839_v9  ;;  %v838_v12 = vsub.f32 %v830_v3, %v836_v11  ;;  %4146 = vmatpush3.msra.mxu0 %v855_v10 }
 0x447   :  { %4155 = vmatprep.subr.mxu0 %v4486_v14 }
 0x448   :  { %v841_v13 = vmul.f32 1.442695, %v838_v12 }
 0x449   :  { %v932_v21 = vpop.permute.xlu1 %931 }
 0x44a   :  { %4397 = vpow2.f32 %v841_v13  ;;  %4151 = vmatpush3.msra.mxu1 %v932_v21 }
 0x44b   :  { %4160 = vmatprep.subr.mxu1 %v4486_v14 }
 0x44d   :  { %v1010_v30 = vpop.permute.xlu1 %1009 }
 0x451   :  { %v1088_v34 = vpop.permute.xlu1 %1087 }
 0x453   :  { %v4396_v23 = vpop.eup %4395 }
 0x454   :  { %v843_v25 = vsel %vm344_vm2, %v4396_v23, 0.0 }
 0x455   :  { %844 = vadd.xlane.f32.xlu0 %v843_v25  ;;  %v1086_v37 = vpop.permute.xlu1 %1085 }
 0x457   :  { %v4398_v26 = vpop.eup %4397 }
 0x458   :  { %v846_v27 = vsel %vm344_vm2, %v4398_v26, 0.0 }
 0x459   :  { %847 = vadd.xlane.f32.xlu0 %v846_v27 }
 0x46f   :  { %1007 = vrot.lane.b32.xlu0 %v4685_v16, %s4489_s2 }
 0x4de   :  { %v845_v28 = vpop.xlane.xlu0 %844 }
 0x4df   :  { %4399 = vrcp.f32 %v845_v28 }
 0x4e2   :  { %v848_v29 = vpop.xlane.xlu0 %847 }
 0x4e3   :  { %4401 = vrcp.f32 %v848_v29 }
 0x4e6   :  { %v1008_v36 = vpop.permute.xlu0 %1007 }
 0x4ec   :  { %v4400_v31 = vpop.eup %4399 }
 0x4ed   :  { %v851_v32 = vmul.f32 %v4400_v31, %v4396_v23 }
 0x4ef   :  { %4148 = vmatmul.mubr.msk.f32.vlgmr.msra.gmra.mxu0 %vm344_vm2, %v851_v32 }
 0x4f0   :  { %v4402_v33 = vpop.eup %4401  ;;  %4156 = vmatpush3.xpose.msk.msra.mxu0 %vm344_vm2, %v1010_v30  ;;  %4157 = vmatprep.mubr.msk.f32.mxu0 %vm4487_vm1, %v4486_v14 }
 0x4f1   :  { %v852_v35 = vmul.f32 %v4402_v33, %v4398_v26  ;;  %4165 = vmatprep.subr.mxu0 %v4486_v14 }
 0x4f3   :  { %4153 = vmatmul.mubr.msk.f32.vlgmr.msra.gmra.mxu1 %vm344_vm2, %v852_v35  ;;  %4158 = vmatmul.mubr.msk.f32.vlgmr.msra.gmra.mxu0 %vm344_vm2, %v1008_v36 }
 0x4f4   :  { %4161 = vmatpush3.xpose.msk.msra.mxu1 %vm344_vm2, %v1088_v34  ;;  %4162 = vmatprep.mubr.msk.f32.mxu1 %vm4487_vm1, %v4486_v14 }
 0x4f5   :  { %4170 = vmatprep.subr.mxu1 %v4486_v14  ;;  %4167 = vmatprep.mubr.msk.f32.mxu0 %vm4487_vm1, %v4486_v14 }
 0x4f7   :  { %4163 = vmatmul.mubr.msk.f32.vlgmr.msra.gmra.mxu1 %vm344_vm2, %v1086_v37 }
 0x4f8   :  { %4172 = vmatprep.mubr.msk.f32.mxu1 %vm4487_vm1, %v4486_v14 }
 0x5af   :  { %v4794_v38 = vpop.f32.mrf.mxu0 }
 0x5b1   :  { %v4149_v39 = vpop.f32.mrf.mxu0 }
 0x5b3   :  { %v4796_v40 = vpop.f32.mrf.mxu1  ;;  %v1081_v41 = vpop.f32.mrf.mxu0 }
 0x5b4   :  { %v1163_v42 = vsel %vm4720_vm3, %v1081_v41, -1e+20 }
 0x5b5   :  { %v1165_v43 = vmul.f32 0.17677669, %v1163_v42  ;;  %v4154_v44 = vpop.f32.mrf.mxu1  ;;  %v4159_v45 = vpop.f32.mrf.mxu0 }
 0x5b7   :  { %v1159_v46 = vpop.f32.mrf.mxu1  ;;  %v1167_v47 = vsel %vm344_vm2, %v1165_v43, -inf }
 0x5b8   :  { %v1164_v48 = vsel %vm4720_vm3, %v1159_v46, -1e+20  ;;  %1168 = vmax.xlane.f32.xlu0 %v1167_v47 }
 0x5b9   :  { %v1166_v49 = vmul.f32 0.17677669, %v1164_v48  ;;  %v4164_v50 = vpop.f32.mrf.mxu1 }
 0x5ba   :  { %v103_v50 = vld [vmem:[%s5310_s3 + $0x8] sm:$0xff] }
 0x5bb   :  { %v1170_v51 = vsel %vm344_vm2, %v1166_v49, -inf }
 0x5bc   :  { %1171 = vmax.xlane.f32.xlu1 %v1170_v51  ;;  %v102_v51 = vld [vmem:[%s5310_s3] sm:$0xff] }
 0x5cd   :  { %1265 = vrot.lane.b32.xlu1 %v4709_v19, %s4489_s2 }
 0x5ce   :  { %1189 = vrot.lane.b32.xlu0 %v4712_v20, %s4489_s2 }
 0x5d1   :  { %1343 = vrot.lane.b32.xlu1 %v4691_v18, %s4490_s27 }
 0x5d5   :  { %1421 = vrot.lane.b32.xlu1 %v4687_v17, %s4490_s27 }
 0x5d9   :  { %1419 = vrot.lane.b32.xlu1 %v4683_v15, %s4490_s27 }
 0x641   :  { %v1169_v52 = vpop.xlane.xlu0 %1168 }
 0x642   :  { %v1173_v53 = vsub.f32 %v1165_v43, %v1169_v52 }
 0x644   :  { %v1175_v54 = vmul.f32 1.442695, %v1173_v53 }
 0x645   :  { %v1190_v56 = vpop.permute.xlu0 %1189  ;;  %v1172_v58 = vpop.xlane.xlu1 %1171 }
 0x646   :  { %4403 = vpow2.f32 %v1175_v54  ;;  %v1174_v59 = vsub.f32 %v1166_v49, %v1172_v58  ;;  %4166 = vmatpush3.msra.mxu0 %v1190_v56  ;;  %v104_v49 = vld [vmem:[%s5310_s3 + $0x10] sm:$0xff] }
 0x647   :  { %4175 = vmatprep.subr.mxu0 %v4486_v14 }
 0x648   :  { %v1177_v60 = vmul.f32 1.442695, %v1174_v59 }
 0x649   :  { %v1266_v61 = vpop.permute.xlu1 %1265 }
 0x64a   :  { %4405 = vpow2.f32 %v1177_v60  ;;  %4171 = vmatpush3.msra.mxu1 %v1266_v61 }
 0x64b   :  { %4180 = vmatprep.subr.mxu1 %v4486_v14 }
 0x64d   :  { %v1344_v1 = vpop.permute.xlu1 %1343 }
 0x651   :  { %v1422_v7 = vpop.permute.xlu1 %1421 }
 0x653   :  { %v4404_v17 = vpop.eup %4403 }
 0x654   :  { %v1179_v18 = vsel %vm344_vm2, %v4404_v17, 0.0 }
 0x655   :  { %1180 = vadd.xlane.f32.xlu0 %v1179_v18  ;;  %v1420_v9 = vpop.permute.xlu1 %1419 }
 0x657   :  { %v4406_v15 = vpop.eup %4405 }
 0x658   :  { %v1182_v62 = vsel %vm344_vm2, %v4406_v15, 0.0 }
 0x659   :  { %1183 = vadd.xlane.f32.xlu0 %v1182_v62 }
 0x66f   :  { %1341 = vrot.lane.b32.xlu0 %v4685_v16, %s4490_s27 }
 0x6de   :  { %v1181_v63 = vpop.xlane.xlu0 %1180 }
 0x6df   :  { %4407 = vrcp.f32 %v1181_v63 }
 0x6e2   :  { %v1184_v0 = vpop.xlane.xlu0 %1183 }
 0x6e3   :  { %4409 = vrcp.f32 %v1184_v0 }
 0x6e6   :  { %v1342_v16 = vpop.permute.xlu0 %1341 }
 0x6ec   :  { %v4408_v3 = vpop.eup %4407 }
 0x6ed   :  { %v1187_v4 = vmul.f32 %v4408_v3, %v4404_v17 }
 0x6ef   :  { %4168 = vmatmul.mubr.msk.f32.vlgmr.msra.gmra.mxu0 %vm344_vm2, %v1187_v4 }
 0x6f0   :  { %v4410_v6 = vpop.eup %4409  ;;  %4176 = vmatpush3.xpose.msk.msra.mxu0 %vm344_vm2, %v1344_v1  ;;  %4177 = vmatprep.mubr.msk.f32.mxu0 %vm4487_vm1, %v4486_v14 }
 0x6f1   :  { %v1188_v8 = vmul.f32 %v4410_v6, %v4406_v15  ;;  %4185 = vmatprep.subr.mxu0 %v4486_v14 }
 0x6f3   :  { %4173 = vmatmul.mubr.msk.f32.vlgmr.msra.gmra.mxu1 %vm344_vm2, %v1188_v8  ;;  %4178 = vmatmul.mubr.msk.f32.vlgmr.msra.gmra.mxu0 %vm344_vm2, %v1342_v16 }
 0x6f4   :  { %4181 = vmatpush3.xpose.msk.msra.mxu1 %vm344_vm2, %v1422_v7  ;;  %4182 = vmatprep.mubr.msk.f32.mxu1 %vm4487_vm1, %v4486_v14 }
 0x6f5   :  { %4190 = vmatprep.subr.mxu1 %v4486_v14  ;;  %4187 = vmatprep.mubr.msk.f32.mxu0 %vm4487_vm1, %v4486_v14 }
 0x6f7   :  { %4183 = vmatmul.mubr.msk.f32.vlgmr.msra.gmra.mxu1 %vm344_vm2, %v1420_v9 }
 0x6f8   :  { %4192 = vmatprep.mubr.msk.f32.mxu1 %vm4487_vm1, %v4486_v14 }
 0x7af   :  { %v1261_v10 = vpop.f32.mrf.mxu0 }
 0x7b1   :  { %v4169_v11 = vpop.f32.mrf.mxu0 }
 0x7b3   :  { %v1337_v12 = vpop.f32.mrf.mxu1  ;;  %v1415_v13 = vpop.f32.mrf.mxu0 }
 0x7b4   :  { %v1497_v21 = vsel %vm4720_vm3, %v1415_v13, -1e+20 }
 0x7b5   :  { %v1499_v23 = vmul.f32 0.17677669, %v1497_v21  ;;  %v4174_v25 = vpop.f32.mrf.mxu1  ;;  %v4179_v26 = vpop.f32.mrf.mxu0 }
 0x7b7   :  { %v1493_v27 = vpop.f32.mrf.mxu1  ;;  %v1501_v28 = vsel %vm344_vm2, %v1499_v23, -inf }
 0x7b8   :  { %v1498_v29 = vsel %vm4720_vm3, %v1493_v27, -1e+20  ;;  %1502 = vmax.xlane.f32.xlu0 %v1501_v28 }
 0x7b9   :  { %v1500_v30 = vmul.f32 0.17677669, %v1498_v29  ;;  %v4184_v31 = vpop.f32.mrf.mxu1  ;;  %v1848_v29 = vld [vmem:[%s5275_s11 + $0x10] sm:$0xff] }
 0x7ba   :  { %v1844_v31 = vld [vmem:[%s5274_s10 + $0x10] sm:$0xff] }
 0x7bb   :  { %v1504_v32 = vsel %vm344_vm2, %v1500_v30, -inf }
 0x7bc   :  { %1505 = vmax.xlane.f32.xlu1 %v1504_v32  ;;  %v1847_v32 = vld [vmem:[%s5275_s11 + $0x8] sm:$0xff] }
 0x7cd   :  { %1599 = vrot.lane.b32.xlu1 %v4709_v19, %s4490_s27 }
 0x7d1   :  { %1677 = vrot.lane.b32.xlu1 %v4794_v38, %s4491_s6 }
 0x7d5   :  { %1679 = vrot.lane.b32.xlu1 %v4796_v40, %s4491_s6 }
 0x7d9   :  { %1687 = vrot.lane.b32.xlu1 %v1337_v12, %s4492_s7 }
 0x841   :  { %v1503_v24 = vpop.xlane.xlu0 %1502 }
 0x842   :  { %v1507_v33 = vsub.f32 %v1499_v23, %v1503_v24 }
 0x844   :  { %v1509_v34 = vmul.f32 1.442695, %v1507_v33  ;;  %v1846_v33 = vld [vmem:[%s5275_s11] sm:$0xff] }
 0x845   :  { %v1506_v35 = vpop.xlane.xlu1 %1505 }
 0x846   :  { %4411 = vpow2.f32 %v1509_v34  ;;  %v1508_v36 = vsub.f32 %v1500_v30, %v1506_v35  ;;  %v1845_v30 = vld [vmem:[%s5274_s10 + $0x18] sm:$0xff]  ;;  %v1843_v34 = vld [vmem:[%s5274_s10 + $0x8] sm:$0xff] }
 0x848   :  { %v1511_v37 = vmul.f32 1.442695, %v1508_v36  ;;  %v1842_v36 = vld [vmem:[%s5274_s10] sm:$0xff] }
 0x849   :  { %v1600_v39 = vpop.permute.xlu1 %1599 }
 0x84a   :  { %4413 = vpow2.f32 %v1511_v37  ;;  %4191 = vmatpush3.msra.mxu1 %v1600_v39  ;;  %v1853_v37 = vld [vmem:[%s5276_s12 + $0x18] sm:$0xff] }
 0x84b   :  { %4206 = vmatprep.subr.mxu1 %v1845_v30 }
 0x84d   :  { %v1678_v58 = vpop.permute.xlu1 %1677 }
 0x84e   :  { %v1699_v61 = vsel %vm344_vm2, %v4752_v55, %v1678_v58  ;;  %v3900_v55 = vld [vmem:[%s5311_s29] ss:$0 sm:$0xff] }
 0x851   :  { %v1680_v59 = vpop.permute.xlu1 %1679 }
 0x852   :  { %v1700_v63 = vsel %vm344_vm2, %v4754_v57, %v1680_v59 }
 0x853   :  { %v4412_v19 = vpop.eup %4411 }
 0x854   :  { %v1513_v41 = vsel %vm344_vm2, %v4412_v19, 0.0 }
 0x855   :  { %1514 = vadd.xlane.f32.xlu0 %v1513_v41  ;;  %v1688_v17 = vpop.permute.xlu1 %1687 }
 0x856   :  { %v1703_v0 = vsel %vm1701_vm5, %v1700_v63, %v1688_v17 }
 0x857   :  { %v4414_v38 = vpop.eup %4413 }
 0x858   :  { %v1516_v40 = vsel %vm344_vm2, %v4414_v38, 0.0 }
 0x859   :  { %1517 = vadd.xlane.f32.xlu0 %v1516_v40 }
 0x86f   :  { %1523 = vrot.lane.b32.xlu0 %v4712_v20, %s4490_s27  ;;  %v105_v20 = vld [vmem:[%s5310_s3 + $0x18] sm:$0xff] }
 0x873   :  { %1685 = vrot.lane.b32.xlu0 %v1261_v10, %s4492_s7 }
 0x8de   :  { %v1515_v42 = vpop.xlane.xlu0 %1514 }
 0x8df   :  { %4415 = vrcp.f32 %v1515_v42 }
 0x8e2   :  { %v1518_v43 = vpop.xlane.xlu0 %1517 }
 0x8e3   :  { %4417 = vrcp.f32 %v1518_v43 }
 0x8e6   :  { %v1524_v44 = vpop.permute.xlu0 %1523 }
 0x8e7   :  { %4186 = vmatpush3.msra.mxu0 %v1524_v44  ;;  %v3903_v44 = vld [vmem:[%s5272_s8] ss:$0 sm:$0xff] }
 0x8e8   :  { %4195 = vmatprep.subr.mxu0 %v105_v20 }
 0x8ea   :  { %v1686_v60 = vpop.permute.xlu0 %1685 }
 0x8eb   :  { %v1702_v18 = vsel %vm1701_vm5, %v1699_v61, %v1686_v60 }
 0x8ec   :  { %v4416_v45 = vpop.eup %4415 }
 0x8ed   :  { %v1521_v46 = vmul.f32 %v4416_v45, %v4412_v19 }
 0x8ef   :  { %4188 = vmatmul.mubr.msk.f32.vlgmr.msra.gmra.mxu0 %vm344_vm2, %v1521_v46  ;;  %v3904_v46 = vld [vmem:[%s5273_s9] ss:$0 sm:$0xff] }
 0x8f0   :  { %v4418_v47 = vpop.eup %4417  ;;  %4196 = vmatpush3.msra.mxu0 %v105_v20 }
 0x8f1   :  { %v1522_v48 = vmul.f32 %v4418_v47, %v4414_v38  ;;  %4197 = vmatprep.subr.mxu0 %v104_v49 }
 0x8f2   :  { %4198 = vmatpush3.msra.mxu0 %v104_v49 }
 0x8f3   :  { %4193 = vmatmul.mubr.msk.f32.vlgmr.msra.gmra.mxu1 %vm344_vm2, %v1522_v48  ;;  %4199 = vmatprep.subr.mxu0 %v103_v50 }
 0x8f4   :  { %4200 = vmatpush3.msra.mxu0 %v103_v50  ;;  %4207 = vmatpush3.msra.mxu1 %v1845_v30 }
 0x8f5   :  { %4201 = vmatprep.subr.mxu0 %v102_v51  ;;  %4208 = vmatprep.subr.mxu1 %v1844_v31 }
 0x8f6   :  { %4202 = vmatpush3.msra.mxu0 %v102_v51  ;;  %4209 = vmatpush3.msra.mxu1 %v1844_v31 }
 0x8f7   :  { %4210 = vmatprep.subr.mxu1 %v1843_v34 }
 0x8f8   :  { %4211 = vmatpush3.msra.mxu1 %v1843_v34 }
 0x8f9   :  { %4212 = vmatprep.subr.mxu1 %v1842_v36 }
 0x8fa   :  { %4213 = vmatpush3.msra.mxu1 %v1842_v36 }
 0x8fb   :  { %4228 = vmatprep.subr.mxu1 %v1853_v37 }
 0x9af   :  { %v1595_v52 = vpop.f32.mrf.mxu0 }
 0x9b0   :  { %1693 = vrot.lane.b32.xlu0 %v1595_v52, %s5294_s5  ;;  %v1852_v52 = vld [vmem:[%s5276_s12 + $0x10] sm:$0xff] }
 0x9b1   :  { %v4189_v53 = vpop.f32.mrf.mxu0 }
 0x9b2   :  { %v1851_v53 = vld [vmem:[%s5276_s12 + $0x8] sm:$0xff] }
 0x9b3   :  { %v1671_v54 = vpop.f32.mrf.mxu1 }
 0x9b4   :  { %1695 = vrot.lane.b32.xlu1 %v1671_v54, %s5294_s5  ;;  %s5312_s5 = sld [smem:[#allocation6_spill]]  ;;  %v1850_v54 = vld [vmem:[%s5276_s12] sm:$0xff] }
 0x9b5   :  { %v4194_v56 = vpop.f32.mrf.mxu1 }
 0x9ba   :  { %v88_v24 = vld [vmem:[%s5312_s5] sm:$0xff]  ;;  %v89_v35 = vld [vmem:[%s5312_s5 + $0x8] sm:$0xff]  ;;  %s5314_s5 = smov 24  }
 0xa22   :  { %v1694_v15 = vpop.permute.xlu0 %1693 }
 0xa23   :  { %v1705_v62 = vsel %vm1704_vm4, %v1702_v18, %v1694_v15  ;;  %v4494_v18 = vmov 1966171168  }
 0xa24   :  { %4203 = vmatprep.mubr.msk.f32.mxu0 %vm107_vm0, %v1705_v62  ;;  %v2099_v15 = vunpack.c.l.s4 %v4494_v18 }
 0xa26   :  { %v1696_v1 = vpop.permute.xlu1 %1695  ;;  %v2100_v63 = vunpack.c.0.s8 %v2099_v15 }
 0xa27   :  { %v1706_v3 = vsel %vm1704_vm4, %v1703_v0, %v1696_v1  ;;  %v4495_v1 = vmov 0  }
 0xa28   :  { %4204 = vmatmul.mubr.msk.f32.vlgmr.msra.gmra.mxu0 %vm107_vm0, %v1706_v3  ;;  %v2103_v0 = vsub.s32 %v2100_v63, %v4717_v22 }
 0xa29   :  { %4225 = vmatprep.mubr.msk.f32.mxu0 %vm107_vm0, %v88_v24 }
 0xae8   :  { %v4205_v4 = vpop.f32.mrf.mxu0 }
 0xae9   :  { %v1791_v6 = vadd.f32 %v4205_v4, %v3900_v55 }
 0xaea   :  { %v1785_v7 = vpop.f32.mrf.mxu0 }
 0xaeb   :  { %v1786_v8 = vadd.f32 %v3900_v55, %v1785_v7  ;;  %v1797_v16 = vadd.f32 %v1791_v6, %v4641_v5 }
 0xaed   :  { %v1801_v9 = vsel %vm107_vm0, %v1797_v16, 0.0  ;;  %v1796_v57 = vadd.f32 %v1786_v8, %v4628_v2  ;;  %v1849_v2 = vld [vmem:[%s5275_s11 + $0x18] sm:$0xff]  ;;  %s5313_s11 = sld [smem:[#allocation7_spill]]  ;;  %v2278_v8 = vsub.s32 0, %v4717_v22 }
 0xaee   :  { %1802 = vadd.xlane.f32.xlu1 %v1801_v9  ;;  %4217 = vmatprep.subr.mxu0 %v1849_v2 }
 0xaef   :  { %v1798_v10 = vsel %vm107_vm0, %v1796_v57, 0.0  ;;  %4218 = vmatpush3.msra.mxu0 %v1849_v2 }
 0xaf0   :  { %1799 = vadd.xlane.f32.xlu0 %v1798_v10  ;;  %4219 = vmatprep.subr.mxu0 %v1848_v29 }
 0xaf1   :  { %4220 = vmatpush3.msra.mxu0 %v1848_v29 }
 0xaf2   :  { %4221 = vmatprep.subr.mxu0 %v1847_v32 }
 0xaf3   :  { %4222 = vmatpush3.msra.mxu0 %v1847_v32  ;;  %v1841_v62 = vld [vmem:[%s5313_s11] sm:$0x3] }
 0xaf4   :  { %4223 = vmatprep.subr.mxu0 %v1846_v33  ;;  %vm2096_vm6 = vcmp.ne.f32.partialorder %v1841_v62, 0.0 }
 0xaf5   :  { %4224 = vmatpush3.msra.mxu0 %v1846_v33  ;;  %v2097_v3 = vsel %vm2096_vm6, 1, %v4495_v1 }
 0xaf6   :  { %4226 = vmatmul.mubr.msk.f32.vlgmr.msra.gmra.mxu0 %vm107_vm0, %v89_v35  ;;  %4239 = vmatprep.subr.mxu0 %v4486_v14  ;;  %v2104_v55 = vrot.slane %v2097_v3, %v2103_v0 }
 0xaf7   :  { %4241 = vmatprep.mubr.msk.f32.mxu0 %vm4487_vm1, %v4486_v14 }
 0xaf8   :  { %v2105_v4 = vcombine.high %v2104_v55, %v2104_v55  ;;  %v2112_v7 = vrot.slane %v2104_v55, %v2103_v0 }
 0xafa   :  { %v2119_v6 = vrot.slane %v2105_v4, %v2103_v0  ;;  %vm2120_vm8 = vcmp.ne.s32.totalorder %v2112_v7, 0 }
 0xafb   :  { %v2274_v9 = vsel %vm2120_vm8, 1, %v4495_v1 }
 0xafc   :  { %vm2121_vm7 = vcmp.ne.s32.totalorder %v2119_v6, 0  ;;  %v4992_v10 = vrot.slane %v2274_v9, %v2278_v8 }
 0xafe   :  { %vm2284_vm10 = vcmp.eq.s32.totalorder %v4992_v10, 1 }
 0xb77   :  { %v1803_v11 = vpop.xlane.xlu1 %1802 }
 0xb78   :  { %v1806_v12 = vmul.f32 0.03125, %v1803_v11 }
 0xb79   :  { %v1800_v13 = vpop.xlane.xlu0 %1799 }
 0xb7a   :  { %v1805_v21 = vmul.f32 0.03125, %v1800_v13  ;;  %v1808_v23 = vsub.f32 %v1797_v16, %v1806_v12  ;;  %v2275_v16 = vsel %vm2121_vm7, 1, %v4495_v1 }
 0xb7c   :  { %v1807_v25 = vsub.f32 %v1796_v57, %v1805_v21  ;;  %v1810_v28 = vmul.f32 %v1808_v23, %v1808_v23  ;;  %v4990_v57 = vrot.slane %v2275_v16, %v2278_v8 }
 0xb7e   :  { %v1809_v26 = vmul.f32 %v1807_v25, %v1807_v25  ;;  %v1814_v5 = vsel %vm107_vm0, %v1810_v28, 0.0  ;;  %vm2285_vm9 = vcmp.eq.s32.totalorder %v4990_v57, 1 }
 0xb80   :  { %v1811_v27 = vsel %vm107_vm0, %v1809_v26, 0.0 }
 0xb81   :  { %1812 = vadd.xlane.f32.xlu0 %v1811_v27 }
 0xb85   :  { %1815 = vadd.xlane.f32.xlu0 %v1814_v5 }
 0xbb6   :  { %v4955_v56 = vpop.f32.mrf.mxu0 }
 0xbb8   :  { %v4959_v58 = vpop.f32.mrf.mxu0 }
 0xbb9   :  { %4240 = vmatpush3.xpose.msk.msra.mxu0 %vm344_vm2, %v4959_v58 }
 0xbba   :  { %4249 = vmatprep.subr.mxu0 %v4486_v14 }
 0xc0a   :  { %v1813_v39 = vpop.xlane.xlu0 %1812 }
 0xc0b   :  { %v1817_v19 = vmul.f32 0.03125, %v1813_v39 }
 0xc0d   :  { %v1819_v41 = vadd.f32 1e-05, %v1817_v19 }
 0xc0e   :  { %v1816_v38 = vpop.xlane.xlu0 %1815 }
 0xc0f   :  { %4419 = vrsqrt.f32 %v1819_v41  ;;  %v1818_v40 = vmul.f32 0.03125, %v1816_v38 }
 0xc11   :  { %v1820_v42 = vadd.f32 1e-05, %v1818_v40 }
 0xc13   :  { %4421 = vrsqrt.f32 %v1820_v42 }
 0xc1c   :  { %v4420_v43 = vpop.eup %4419 }
 0xc1d   :  { %v1823_v45 = vmul.f32 %v4420_v43, %v1807_v25 }
 0xc1f   :  { %v1831_v47 = vmul.f32 %v3903_v44, %v1823_v45 }
 0xc20   :  { %v4422_v48 = vpop.eup %4421 }
 0xc21   :  { %v1824_v20 = vmul.f32 %v4422_v48, %v1808_v23  ;;  %v4933_v49 = vadd.f32 %v3904_v46, %v1831_v47 }
 0xc23   :  { %v1832_v50 = vmul.f32 %v3903_v44, %v1824_v20  ;;  %4214 = vmatprep.mubr.msk.f32.mxu1 %vm107_vm0, %v4933_v49 }
 0xc25   :  { %v4937_v51 = vadd.f32 %v3904_v46, %v1832_v50 }
 0xc27   :  { %4215 = vmatmul.mubr.msk.f32.vlgmr.msra.gmra.mxu1 %vm107_vm0, %v4937_v51 }
 0xc28   :  { %4229 = vmatpush3.msra.mxu1 %v1853_v37  ;;  %4236 = vmatprep.mubr.msk.f32.mxu1 %vm107_vm0, %v88_v24 }
 0xc29   :  { %4230 = vmatprep.subr.mxu1 %v1852_v52 }
 0xc2a   :  { %4231 = vmatpush3.msra.mxu1 %v1852_v52 }
 0xc2b   :  { %4232 = vmatprep.subr.mxu1 %v1851_v53 }
 0xc2c   :  { %4233 = vmatpush3.msra.mxu1 %v1851_v53 }
 0xc2d   :  { %4234 = vmatprep.subr.mxu1 %v1850_v54 }
 0xc2e   :  { %4235 = vmatpush3.msra.mxu1 %v1850_v54 }
 0xc2f   :  { %4237 = vmatmul.mubr.msk.f32.vlgmr.msra.gmra.mxu1 %vm107_vm0, %v89_v35  ;;  %4244 = vmatprep.subr.mxu1 %v4486_v14 }
 0xc30   :  { %4246 = vmatprep.mubr.msk.f32.mxu1 %vm4487_vm1, %v4486_v14  ;;  %4245 = vmatpush3.xpose.msk.msra.mxu1 %vm344_vm2, %v4955_v56 }
 0xc31   :  { %4254 = vmatprep.subr.mxu1 %v4486_v14 }
 0xce7   :  { %v4965_v59 = vpop.f32.mrf.mxu1 }
 0xce8   :  { %4247 = vmatmul.mubr.msk.f32.vlgmr.msra.gmra.mxu1 %vm344_vm2, %v4965_v59 }
 0xce9   :  { %v4969_v60 = vpop.f32.mrf.mxu1  ;;  %4256 = vmatprep.mubr.msk.f32.mxu1 %vm4487_vm1, %v4486_v14 }
 0xcea   :  { %4242 = vmatmul.mubr.msk.f32.vlgmr.msra.gmra.mxu0 %vm344_vm2, %v4969_v60 }
 0xceb   :  { %4251 = vmatprep.mubr.msk.f32.mxu0 %vm4487_vm1, %v4486_v14 }
 0xcef   :  { %v4977_v61 = vpop.f32.mrf.mxu1 }
 0xcf0   :  { %4255 = vmatpush3.msra.mxu1 %v4977_v61 }
 0xcf1   :  { %v4980_v17 = vpop.f32.mrf.mxu1  ;;  %4264 = vmatprep.subr.mxu1 %v4486_v14 }
 0xcf2   :  { %4250 = vmatpush3.msra.mxu0 %v4980_v17 }
 0xcf3   :  { %4259 = vmatprep.subr.mxu0 %v4486_v14 }
 0xda8   :  { %v2270_v11 = vpop.f32.mrf.mxu1 }
 0xda9   :  { %v2287_v12 = vsel %vm2285_vm9, %v2270_v11, -1e+20 }
 0xdaa   :  { %v2289_v13 = vmul.f32 0.17677669, %v2287_v12  ;;  %v2194_v21 = vpop.f32.mrf.mxu0  ;;  %v4248_v23 = vpop.f32.mrf.mxu1 }
 0xdab   :  { %v2286_v22 = vsel %vm2284_vm10, %v2194_v21, -1e+20 }
 0xdac   :  { %v2288_v25 = vmul.f32 0.17677669, %v2286_v22  ;;  %v4243_v26 = vpop.f32.mrf.mxu0  ;;  %v2293_v27 = vsel %vm344_vm2, %v2289_v13, -inf }
 0xdad   :  { %2294 = vmax.xlane.f32.xlu1 %v2293_v27 }
 0xdae   :  { %v2290_v28 = vsel %vm344_vm2, %v2288_v25, -inf }
 0xdaf   :  { %2291 = vmax.xlane.f32.xlu0 %v2290_v28 }
 0xe36   :  { %v2295_v5 = vpop.xlane.xlu1 %2294 }
 0xe37   :  { %v2297_v2 = vsub.f32 %v2289_v13, %v2295_v5 }
 0xe38   :  { %v2292_v29 = vpop.xlane.xlu0 %2291 }
 0xe39   :  { %v2300_v30 = vmul.f32 1.442695, %v2297_v2  ;;  %v2296_v31 = vsub.f32 %v2288_v25, %v2292_v29 }
 0xe3b   :  { %4423 = vpow2.f32 %v2300_v30  ;;  %v2298_v32 = vmul.f32 1.442695, %v2296_v31 }
 0xe3d   :  { %4425 = vpow2.f32 %v2298_v32 }
 0xe48   :  { %v4424_v24 = vpop.eup %4423 }
 0xe49   :  { %v2305_v33 = vsel %vm344_vm2, %v4424_v24, 0.0 }
 0xe4a   :  { %v4426_v34 = vpop.eup %4425  ;;  %2306 = vadd.xlane.f32.xlu1 %v2305_v33 }
 0xe4b   :  { %v2302_v35 = vsel %vm344_vm2, %v4426_v34, 0.0 }
 0xe4c   :  { %2303 = vadd.xlane.f32.xlu0 %v2302_v35 }
 0xe5b   :  { %2538 = vrot.lane.b32.xlu1 %v4955_v56, %s4488_s26 }
 0xe5f   :  { %2458 = vrot.lane.b32.xlu1 %v4969_v60, %s4488_s26 }
 0xe62   :  { %2460 = vrot.lane.b32.xlu0 %v4959_v58, %s4488_s26 }
 0xe63   :  { %2536 = vrot.lane.b32.xlu1 %v4965_v59, %s4488_s26 }
 0xed3   :  { %v2307_v36 = vpop.xlane.xlu1 %2306 }
 0xed4   :  { %4427 = vrcp.f32 %v2307_v36 }
 0xed5   :  { %v2304_v37 = vpop.xlane.xlu0 %2303 }
 0xed6   :  { %4429 = vrcp.f32 %v2304_v37 }
 0xed7   :  { %v2539_v39 = vpop.permute.xlu1 %2538 }
 0xed9   :  { %v2461_v43 = vpop.permute.xlu0 %2460 }
 0xedb   :  { %v2459_v41 = vpop.permute.xlu1 %2458 }
 0xedf   :  { %v2537_v44 = vpop.permute.xlu1 %2536 }
 0xee1   :  { %v4428_v19 = vpop.eup %4427 }
 0xee2   :  { %v2311_v38 = vmul.f32 %v4428_v19, %v4424_v24 }
 0xee3   :  { %v4430_v40 = vpop.eup %4429 }
 0xee4   :  { %4257 = vmatmul.mubr.msk.f32.vlgmr.msra.gmra.mxu1 %vm344_vm2, %v2311_v38  ;;  %v2310_v42 = vmul.f32 %v4430_v40, %v4426_v34 }
 0xee5   :  { %4265 = vmatpush3.xpose.msk.msra.mxu1 %vm344_vm2, %v2539_v39  ;;  %4266 = vmatprep.mubr.msk.f32.mxu1 %vm4487_vm1, %v4486_v14 }
 0xee6   :  { %4252 = vmatmul.mubr.msk.f32.vlgmr.msra.gmra.mxu0 %vm344_vm2, %v2310_v42  ;;  %4274 = vmatprep.subr.mxu1 %v4486_v14 }
 0xee7   :  { %4260 = vmatpush3.xpose.msk.msra.mxu0 %vm344_vm2, %v2461_v43  ;;  %4261 = vmatprep.mubr.msk.f32.mxu0 %vm4487_vm1, %v4486_v14 }
 0xee8   :  { %4267 = vmatmul.mubr.msk.f32.vlgmr.msra.gmra.mxu1 %vm344_vm2, %v2537_v44  ;;  %4269 = vmatprep.subr.mxu0 %v4486_v14 }
 0xee9   :  { %4276 = vmatprep.mubr.msk.f32.mxu1 %vm4487_vm1, %v4486_v14 }
 0xeea   :  { %4262 = vmatmul.mubr.msk.f32.vlgmr.msra.gmra.mxu0 %vm344_vm2, %v2459_v41 }
 0xeeb   :  { %4271 = vmatprep.mubr.msk.f32.mxu0 %vm4487_vm1, %v4486_v14 }
 0xfa4   :  { %v5028_v45 = vpop.f32.mrf.mxu1 }
 0xfa6   :  { %v5030_v46 = vpop.f32.mrf.mxu0  ;;  %v4258_v47 = vpop.f32.mrf.mxu1 }
 0xfa8   :  { %v4253_v48 = vpop.f32.mrf.mxu0  ;;  %v2610_v20 = vpop.f32.mrf.mxu1 }
 0xfa9   :  { %v2615_v50 = vsel %vm2285_vm9, %v2610_v20, -1e+20 }
 0xfaa   :  { %v2617_v52 = vmul.f32 0.17677669, %v2615_v50  ;;  %v2532_v53 = vpop.f32.mrf.mxu0  ;;  %v4268_v54 = vpop.f32.mrf.mxu1 }
 0xfab   :  { %v2614_v18 = vsel %vm2284_vm10, %v2532_v53, -1e+20 }
 0xfac   :  { %v2616_v15 = vmul.f32 0.17677669, %v2614_v18  ;;  %v4263_v62 = vpop.f32.mrf.mxu0  ;;  %v2621_v63 = vsel %vm344_vm2, %v2617_v52, -inf }
 0xfad   :  { %2622 = vmax.xlane.f32.xlu1 %v2621_v63 }
 0xfae   :  { %v2618_v0 = vsel %vm344_vm2, %v2616_v15, -inf }
 0xfaf   :  { %2619 = vmax.xlane.f32.xlu0 %v2618_v0 }
 0xfbe   :  { %2718 = vrot.lane.b32.xlu1 %v4977_v61, %s4488_s26 }
 0xfc2   :  { %2796 = vrot.lane.b32.xlu1 %v4959_v58, %s4489_s2 }
 0xfc6   :  { %2874 = vrot.lane.b32.xlu1 %v4955_v56, %s4489_s2 }
 0xfca   :  { %2872 = vrot.lane.b32.xlu1 %v4965_v59, %s4489_s2 }
0x1036   :  { %v2623_v1 = vpop.xlane.xlu1 %2622 }
0x1037   :  { %v2625_v3 = vsub.f32 %v2617_v52, %v2623_v1 }
0x1038   :  { %v2620_v55 = vpop.xlane.xlu0 %2619 }
0x1039   :  { %v2628_v4 = vmul.f32 1.442695, %v2625_v3  ;;  %v2624_v6 = vsub.f32 %v2616_v15, %v2620_v55 }
0x103a   :  { %v2719_v7 = vpop.permute.xlu1 %2718 }
0x103b   :  { %4431 = vpow2.f32 %v2628_v4  ;;  %v2626_v8 = vmul.f32 1.442695, %v2624_v6  ;;  %4275 = vmatpush3.msra.mxu1 %v2719_v7 }
0x103c   :  { %4284 = vmatprep.subr.mxu1 %v4486_v14 }
0x103d   :  { %4433 = vpow2.f32 %v2626_v8 }
0x103e   :  { %v2797_v23 = vpop.permute.xlu1 %2796 }
0x1042   :  { %v2875_v26 = vpop.permute.xlu1 %2874 }
0x1046   :  { %v2873_v2 = vpop.permute.xlu1 %2872 }
0x1048   :  { %v4432_v16 = vpop.eup %4431 }
0x1049   :  { %v2633_v9 = vsel %vm344_vm2, %v4432_v16, 0.0 }
0x104a   :  { %v4434_v11 = vpop.eup %4433  ;;  %2634 = vadd.xlane.f32.xlu0 %v2633_v9 }
0x104b   :  { %v2630_v12 = vsel %vm344_vm2, %v4434_v11, 0.0 }
0x104e   :  { %2631 = vadd.xlane.f32.xlu0 %v2630_v12 }
0x1064   :  { %2641 = vrot.lane.b32.xlu0 %v4980_v17, %s4488_s26 }
0x1068   :  { %2794 = vrot.lane.b32.xlu0 %v4969_v60, %s4489_s2 }
0x10d3   :  { %v2635_v13 = vpop.xlane.xlu0 %2634 }
0x10d4   :  { %4435 = vrcp.f32 %v2635_v13 }
0x10d7   :  { %v2632_v21 = vpop.xlane.xlu0 %2631 }
0x10d8   :  { %4437 = vrcp.f32 %v2632_v21 }
0x10db   :  { %v2642_v22 = vpop.permute.xlu0 %2641 }
0x10dc   :  { %4270 = vmatpush3.msra.mxu0 %v2642_v22 }
0x10dd   :  { %4279 = vmatprep.subr.mxu0 %v4486_v14 }
0x10df   :  { %v2795_v29 = vpop.permute.xlu0 %2794 }
0x10e1   :  { %v4436_v25 = vpop.eup %4435 }
0x10e2   :  { %v2639_v27 = vmul.f32 %v4436_v25, %v4432_v16 }
0x10e4   :  { %4277 = vmatmul.mubr.msk.f32.vlgmr.msra.gmra.mxu1 %vm344_vm2, %v2639_v27 }
0x10e5   :  { %v4438_v28 = vpop.eup %4437  ;;  %4285 = vmatpush3.xpose.msk.msra.mxu1 %vm344_vm2, %v2875_v26  ;;  %4286 = vmatprep.mubr.msk.f32.mxu1 %vm4487_vm1, %v4486_v14 }
0x10e6   :  { %v2638_v5 = vmul.f32 %v4438_v28, %v4434_v11  ;;  %4294 = vmatprep.subr.mxu1 %v4486_v14 }
0x10e8   :  { %4272 = vmatmul.mubr.msk.f32.vlgmr.msra.gmra.mxu0 %vm344_vm2, %v2638_v5  ;;  %4287 = vmatmul.mubr.msk.f32.vlgmr.msra.gmra.mxu1 %vm344_vm2, %v2873_v2 }
0x10e9   :  { %4280 = vmatpush3.xpose.msk.msra.mxu0 %vm344_vm2, %v2797_v23  ;;  %4281 = vmatprep.mubr.msk.f32.mxu0 %vm4487_vm1, %v4486_v14 }
0x10ea   :  { %4289 = vmatprep.subr.mxu0 %v4486_v14  ;;  %4296 = vmatprep.mubr.msk.f32.mxu1 %vm4487_vm1, %v4486_v14 }
0x10ec   :  { %4282 = vmatmul.mubr.msk.f32.vlgmr.msra.gmra.mxu0 %vm344_vm2, %v2795_v29 }
0x10ed   :  { %4291 = vmatprep.mubr.msk.f32.mxu0 %vm4487_vm1, %v4486_v14 }
0x11a4   :  { %v5070_v30 = vpop.f32.mrf.mxu1 }
0x11a6   :  { %v4278_v31 = vpop.f32.mrf.mxu1 }
0x11a8   :  { %v5072_v32 = vpop.f32.mrf.mxu0  ;;  %v2946_v24 = vpop.f32.mrf.mxu1 }
0x11a9   :  { %v2951_v33 = vsel %vm2285_vm9, %v2946_v24, -1e+20 }
0x11aa   :  { %v2953_v34 = vmul.f32 0.17677669, %v2951_v33  ;;  %v4273_v35 = vpop.f32.mrf.mxu0  ;;  %v4288_v36 = vpop.f32.mrf.mxu1 }
0x11ac   :  { %v2868_v37 = vpop.f32.mrf.mxu0  ;;  %v2957_v39 = vsel %vm344_vm2, %v2953_v34, -inf }
0x11ad   :  { %v2950_v19 = vsel %vm2284_vm10, %v2868_v37, -1e+20  ;;  %2958 = vmax.xlane.f32.xlu1 %v2957_v39  ;;  %v1856_v39 = vld [vmem:[%s5277_s13 + $0x10] sm:$0xff] }
0x11ae   :  { %v2952_v41 = vmul.f32 0.17677669, %v2950_v19  ;;  %v4283_v38 = vpop.f32.mrf.mxu0  ;;  %v1855_v19 = vld [vmem:[%s5277_s13 + $0x8] sm:$0xff] }
0x11b0   :  { %v2954_v40 = vsel %vm344_vm2, %v2952_v41, -inf }
0x11b1   :  { %2955 = vmax.xlane.f32.xlu0 %v2954_v40 }
0x11be   :  { %3052 = vrot.lane.b32.xlu1 %v4977_v61, %s4489_s2 }
0x11c2   :  { %3130 = vrot.lane.b32.xlu1 %v4959_v58, %s4490_s27 }
0x11c6   :  { %3208 = vrot.lane.b32.xlu1 %v4955_v56, %s4490_s27 }
0x11ca   :  { %3206 = vrot.lane.b32.xlu1 %v4965_v59, %s4490_s27 }
0x1236   :  { %v2959_v42 = vpop.xlane.xlu1 %2958 }
0x1237   :  { %v2961_v43 = vsub.f32 %v2953_v34, %v2959_v42 }
0x1239   :  { %v2964_v44 = vmul.f32 1.442695, %v2961_v43 }
0x123a   :  { %v2956_v47 = vpop.xlane.xlu0 %2955  ;;  %v3053_v48 = vpop.permute.xlu1 %3052 }
0x123b   :  { %4439 = vpow2.f32 %v2964_v44  ;;  %v2960_v20 = vsub.f32 %v2952_v41, %v2956_v47  ;;  %4295 = vmatpush3.msra.mxu1 %v3053_v48  ;;  %v1854_v41 = vld [vmem:[%s5277_s13] sm:$0xff] }
0x123c   :  { %4304 = vmatprep.subr.mxu1 %v4486_v14 }
0x123d   :  { %v2962_v50 = vmul.f32 1.442695, %v2960_v20 }
0x123e   :  { %v3131_v18 = vpop.permute.xlu1 %3130 }
0x123f   :  { %4441 = vpow2.f32 %v2962_v50 }
0x1242   :  { %v3209_v63 = vpop.permute.xlu1 %3208 }
0x1246   :  { %v3207_v3 = vpop.permute.xlu1 %3206 }
0x1248   :  { %v4440_v52 = vpop.eup %4439 }
0x1249   :  { %v2969_v58 = vsel %vm344_vm2, %v4440_v52, 0.0 }
0x124a   :  { %2970 = vadd.xlane.f32.xlu0 %v2969_v58 }
0x124c   :  { %v4442_v56 = vpop.eup %4441 }
0x124d   :  { %v2966_v53 = vsel %vm344_vm2, %v4442_v56, 0.0 }
0x124e   :  { %2967 = vadd.xlane.f32.xlu0 %v2966_v53 }
0x1264   :  { %2976 = vrot.lane.b32.xlu0 %v4980_v17, %s4489_s2 }
0x1268   :  { %3128 = vrot.lane.b32.xlu0 %v4969_v60, %s4490_s27 }
0x12d3   :  { %v2971_v59 = vpop.xlane.xlu0 %2970 }
0x12d4   :  { %4443 = vrcp.f32 %v2971_v59 }
0x12d7   :  { %v2968_v54 = vpop.xlane.xlu0 %2967 }
0x12d8   :  { %4445 = vrcp.f32 %v2968_v54 }
0x12db   :  { %v2977_v15 = vpop.permute.xlu0 %2976 }
0x12dc   :  { %4290 = vmatpush3.msra.mxu0 %v2977_v15 }
0x12dd   :  { %4299 = vmatprep.subr.mxu0 %v4486_v14 }
0x12df   :  { %v3129_v55 = vpop.permute.xlu0 %3128 }
0x12e1   :  { %v4444_v62 = vpop.eup %4443 }
0x12e2   :  { %v2975_v0 = vmul.f32 %v4444_v62, %v4440_v52 }
0x12e4   :  { %4297 = vmatmul.mubr.msk.f32.vlgmr.msra.gmra.mxu1 %vm344_vm2, %v2975_v0 }
0x12e5   :  { %v4446_v1 = vpop.eup %4445  ;;  %4305 = vmatpush3.xpose.msk.msra.mxu1 %vm344_vm2, %v3209_v63  ;;  %4306 = vmatprep.mubr.msk.f32.mxu1 %vm4487_vm1, %v4486_v14 }
0x12e6   :  { %v2974_v60 = vmul.f32 %v4446_v1, %v4442_v56  ;;  %4314 = vmatprep.subr.mxu1 %v4486_v14 }
0x12e8   :  { %4292 = vmatmul.mubr.msk.f32.vlgmr.msra.gmra.mxu0 %vm344_vm2, %v2974_v60  ;;  %4307 = vmatmul.mubr.msk.f32.vlgmr.msra.gmra.mxu1 %vm344_vm2, %v3207_v3 }
0x12e9   :  { %4300 = vmatpush3.xpose.msk.msra.mxu0 %vm344_vm2, %v3131_v18  ;;  %4301 = vmatprep.mubr.msk.f32.mxu0 %vm4487_vm1, %v4486_v14 }
0x12ea   :  { %4309 = vmatprep.subr.mxu0 %v4486_v14  ;;  %4316 = vmatprep.mubr.msk.f32.mxu1 %vm4487_vm1, %v4486_v14 }
0x12ec   :  { %4302 = vmatmul.mubr.msk.f32.vlgmr.msra.gmra.mxu0 %vm344_vm2, %v3129_v55 }
0x12ed   :  { %4311 = vmatprep.mubr.msk.f32.mxu0 %vm4487_vm1, %v4486_v14 }
0x13a4   :  { %v3124_v4 = vpop.f32.mrf.mxu1 }
0x13a6   :  { %v4298_v6 = vpop.f32.mrf.mxu1 }
0x13a8   :  { %v3048_v7 = vpop.f32.mrf.mxu0  ;;  %v3280_v8 = vpop.f32.mrf.mxu1 }
0x13a9   :  { %v3285_v16 = vsel %vm2285_vm9, %v3280_v8, -1e+20 }
0x13aa   :  { %v3287_v9 = vmul.f32 0.17677669, %v3285_v16  ;;  %v4293_v11 = vpop.f32.mrf.mxu0  ;;  %v4308_v12 = vpop.f32.mrf.mxu1 }
0x13ab   :  { %v3628_v12 = vld [vmem:[%s5281_s17 + $0x18] sm:$0xff] }
0x13ac   :  { %v3202_v13 = vpop.f32.mrf.mxu0  ;;  %v3291_v21 = vsel %vm344_vm2, %v3287_v9, -inf }
0x13ad   :  { %v3284_v23 = vsel %vm2284_vm10, %v3202_v13, -1e+20  ;;  %3292 = vmax.xlane.f32.xlu1 %v3291_v21  ;;  %v3627_v13 = vld [vmem:[%s5281_s17 + $0x10] sm:$0xff]  ;;  %v3626_v21 = vld [vmem:[%s5281_s17 + $0x8] sm:$0xff] }
0x13ae   :  { %v3286_v22 = vmul.f32 0.17677669, %v3284_v23  ;;  %v4303_v25 = vpop.f32.mrf.mxu0  ;;  %v3625_v23 = vld [vmem:[%s5281_s17] sm:$0xff] }
0x13af   :  { %v3644_v25 = vld [vmem:[%s5283_s19 + $0x70] sm:$0xff] }
0x13b0   :  { %v3288_v14 = vsel %vm344_vm2, %v3286_v22, -inf }
0x13b1   :  { %3289 = vmax.xlane.f32.xlu0 %v3288_v14  ;;  %v3643_v14 = vld [vmem:[%s5283_s19 + $0x68] sm:$0xff] }
0x13be   :  { %3386 = vrot.lane.b32.xlu1 %v4977_v61, %s4490_s27 }
0x13c2   :  { %3464 = vrot.lane.b32.xlu1 %v5072_v32, %s4491_s6 }
0x13c6   :  { %3466 = vrot.lane.b32.xlu1 %v5070_v30, %s4491_s6 }
0x13ca   :  { %3474 = vrot.lane.b32.xlu1 %v3124_v4, %s4492_s7 }
0x1436   :  { %v3293_v57 = vpop.xlane.xlu1 %3292 }
0x1437   :  { %v3295_v10 = vsub.f32 %v3287_v9, %v3293_v57  ;;  %v3642_v57 = vld [vmem:[%s5283_s19 + $0x60] sm:$0xff] }
0x1439   :  { %v3298_v26 = vmul.f32 1.442695, %v3295_v10  ;;  %v3641_v10 = vld [vmem:[%s5283_s19 + $0x58] sm:$0xff] }
0x143a   :  { %v3290_v27 = vpop.xlane.xlu0 %3289  ;;  %v3387_v28 = vpop.permute.xlu1 %3386 }
0x143b   :  { %4447 = vpow2.f32 %v3298_v26  ;;  %v3294_v5 = vsub.f32 %v3286_v22, %v3290_v27  ;;  %4315 = vmatpush3.msra.mxu1 %v3387_v28  ;;  %v3645_v22 = vld [vmem:[%s5283_s19 + $0x78] sm:$0xff]  ;;  %v3640_v26 = vld [vmem:[%s5283_s19 + $0x50] sm:$0xff]  ;;  %v3639_v27 = vld [vmem:[%s5283_s19 + $0x48] sm:$0xff] }
0x143c   :  { %4330 = vmatprep.subr.mxu1 %v3628_v12  ;;  %v3638_v28 = vld [vmem:[%s5283_s19 + $0x40] sm:$0xff] }
0x143d   :  { %v3296_v2 = vmul.f32 1.442695, %v3294_v5  ;;  %v3637_v5 = vld [vmem:[%s5283_s19 + $0x38] sm:$0xff] }
0x143e   :  { %v3465_v44 = vpop.permute.xlu1 %3464 }
0x143f   :  { %4449 = vpow2.f32 %v3296_v2  ;;  %v3486_v50 = vsel %vm344_vm2, %v5030_v46, %v3465_v44  ;;  %v3935_v46 = vld [vmem:[%s5278_s14] ss:$0 sm:$0xff]  ;;  %v3636_v2 = vld [vmem:[%s5283_s19 + $0x30] sm:$0xff] }
0x1440   :  { %v3632_v44 = vld [vmem:[%s5283_s19 + $0x10] sm:$0xff] }
0x1442   :  { %v3467_v47 = vpop.permute.xlu1 %3466 }
0x1443   :  { %v3487_v58 = vsel %vm344_vm2, %v5028_v45, %v3467_v47  ;;  %v3631_v47 = vld [vmem:[%s5283_s19 + $0x8] sm:$0xff] }
0x1446   :  { %v3475_v48 = vpop.permute.xlu1 %3474 }
0x1447   :  { %v3489_v59 = vsel %vm1701_vm5, %v3487_v58, %v3475_v48  ;;  %v3630_v48 = vld [vmem:[%s5283_s19] sm:$0xff] }
0x1448   :  { %v4448_v29 = vpop.eup %4447 }
0x1449   :  { %v3303_v61 = vsel %vm344_vm2, %v4448_v29, 0.0 }
0x144a   :  { %3304 = vadd.xlane.f32.xlu0 %v3303_v61  ;;  %v3634_v61 = vld [vmem:[%s5283_s19 + $0x20] sm:$0xff] }
0x144c   :  { %v4450_v31 = vpop.eup %4449 }
0x144d   :  { %v3300_v32 = vsel %vm344_vm2, %v4450_v31, 0.0 }
0x144e   :  { %3301 = vadd.xlane.f32.xlu0 %v3300_v32 }
0x1464   :  { %3310 = vrot.lane.b32.xlu0 %v4980_v17, %s4490_s27  ;;  %v1857_v17 = vld [vmem:[%s5277_s13 + $0x18] sm:$0xff] }
0x1468   :  { %3472 = vrot.lane.b32.xlu0 %v3048_v7, %s4492_s7 }
0x14d3   :  { %v3305_v30 = vpop.xlane.xlu0 %3304 }
0x14d4   :  { %4451 = vrcp.f32 %v3305_v30 }
0x14d7   :  { %v3302_v24 = vpop.xlane.xlu0 %3301 }
0x14d8   :  { %4453 = vrcp.f32 %v3302_v24 }
0x14db   :  { %v3311_v33 = vpop.permute.xlu0 %3310 }
0x14dc   :  { %4310 = vmatpush3.msra.mxu0 %v3311_v33 }
0x14dd   :  { %4319 = vmatprep.subr.mxu0 %v1857_v17 }
0x14df   :  { %v3473_v20 = vpop.permute.xlu0 %3472 }
0x14e0   :  { %v3488_v56 = vsel %vm1701_vm5, %v3486_v50, %v3473_v20  ;;  %v3940_v20 = vld [vmem:[%s5282_s18] ss:$0 sm:$0xff] }
0x14e1   :  { %v4452_v34 = vpop.eup %4451 }
0x14e2   :  { %v3309_v35 = vmul.f32 %v4452_v34, %v4448_v29  ;;  %v3635_v29 = vld [vmem:[%s5283_s19 + $0x28] sm:$0xff] }
0x14e4   :  { %4317 = vmatmul.mubr.msk.f32.vlgmr.msra.gmra.mxu1 %vm344_vm2, %v3309_v35 }
0x14e5   :  { %v4454_v36 = vpop.eup %4453  ;;  %4331 = vmatpush3.msra.mxu1 %v3628_v12 }
0x14e6   :  { %v3308_v37 = vmul.f32 %v4454_v36, %v4450_v31  ;;  %4332 = vmatprep.subr.mxu1 %v3627_v13  ;;  %v3938_v36 = vld [vmem:[%s5279_s15] ss:$0 sm:$0xff] }
0x14e7   :  { %4333 = vmatpush3.msra.mxu1 %v3627_v13 }
0x14e8   :  { %4312 = vmatmul.mubr.msk.f32.vlgmr.msra.gmra.mxu0 %vm344_vm2, %v3308_v37  ;;  %4334 = vmatprep.subr.mxu1 %v3626_v21 }
0x14e9   :  { %4320 = vmatpush3.msra.mxu0 %v1857_v17  ;;  %4335 = vmatpush3.msra.mxu1 %v3626_v21  ;;  %v3939_v17 = vld [vmem:[%s5280_s16] ss:$0 sm:$0xff] }
0x14ea   :  { %4321 = vmatprep.subr.mxu0 %v1856_v39  ;;  %4336 = vmatprep.subr.mxu1 %v3625_v23 }
0x14eb   :  { %4322 = vmatpush3.msra.mxu0 %v1856_v39  ;;  %4337 = vmatpush3.msra.mxu1 %v3625_v23 }
0x14ec   :  { %4323 = vmatprep.subr.mxu0 %v1855_v19 }
0x14ed   :  { %4324 = vmatpush3.msra.mxu0 %v1855_v19 }
0x14ee   :  { %4325 = vmatprep.subr.mxu0 %v1854_v41 }
0x14ef   :  { %4326 = vmatpush3.msra.mxu0 %v1854_v41 }
0x14f0   :  { %4341 = vmatprep.subr.mxu0 %v3645_v22 }
0x15a4   :  { %v3458_v38 = vpop.f32.mrf.mxu1 }
0x15a5   :  { %3482 = vrot.lane.b32.xlu1 %v3458_v38, %s5314_s5 }
0x15a6   :  { %v4318_v40 = vpop.f32.mrf.mxu1 }
0x15a8   :  { %v3382_v42 = vpop.f32.mrf.mxu0 }
0x15a9   :  { %3480 = vrot.lane.b32.xlu0 %v3382_v42, %s5314_s5 }
0x15aa   :  { %v4313_v43 = vpop.f32.mrf.mxu0 }
0x15ab   :  { %v3633_v43 = vld [vmem:[%s5283_s19 + $0x18] sm:$0xff] }
0x1617   :  { %v3483_v52 = vpop.permute.xlu1 %3482 }
0x1618   :  { %v3491_v18 = vsel %vm1704_vm4, %v3489_v59, %v3483_v52 }
0x161b   :  { %v3481_v53 = vpop.permute.xlu0 %3480 }
0x161c   :  { %v3490_v54 = vsel %vm1704_vm4, %v3488_v56, %v3481_v53 }
0x161d   :  { %4327 = vmatprep.mubr.msk.f32.mxu0 %vm107_vm0, %v3490_v54  ;;  %v3943_v54 = vld [vmem:[%s5284_s20] ss:$0 sm:$0xff] }
0x161e   :  { %4328 = vmatmul.mubr.msk.f32.vlgmr.msra.gmra.mxu0 %vm107_vm0, %v3491_v18 }
0x161f   :  { %4342 = vmatpush3.msra.mxu0 %v3645_v22 }
0x1620   :  { %4343 = vmatprep.subr.mxu0 %v3644_v25 }
0x1621   :  { %4344 = vmatpush3.msra.mxu0 %v3644_v25  ;;  %v3944_v25 = vld [vmem:[%s5285_s21] ss:$0 sm:$0xff] }
0x1622   :  { %4345 = vmatprep.subr.mxu0 %v3643_v14 }
0x1623   :  { %4346 = vmatpush3.msra.mxu0 %v3643_v14 }
0x1624   :  { %4347 = vmatprep.subr.mxu0 %v3642_v57 }
0x1625   :  { %4348 = vmatpush3.msra.mxu0 %v3642_v57 }
0x1626   :  { %4349 = vmatprep.subr.mxu0 %v3641_v10 }
0x1627   :  { %4350 = vmatpush3.msra.mxu0 %v3641_v10  ;;  %v3945_v10 = vld [vmem:[#allocation2] ss:$0 sm:$0xff] }
0x1628   :  { %4351 = vmatprep.subr.mxu0 %v3640_v26 }
0x1629   :  { %4352 = vmatpush3.msra.mxu0 %v3640_v26 }
0x162a   :  { %4353 = vmatprep.subr.mxu0 %v3639_v27 }
0x162b   :  { %4354 = vmatpush3.msra.mxu0 %v3639_v27 }
0x162c   :  { %4355 = vmatprep.subr.mxu0 %v3638_v28 }
0x162d   :  { %4356 = vmatpush3.msra.mxu0 %v3638_v28 }
0x162e   :  { %4357 = vmatprep.subr.mxu0 %v3637_v5 }
0x162f   :  { %4358 = vmatpush3.msra.mxu0 %v3637_v5 }
0x1630   :  { %4359 = vmatprep.subr.mxu0 %v3636_v2 }
0x1631   :  { %4360 = vmatpush3.msra.mxu0 %v3636_v2 }
0x1632   :  { %4361 = vmatprep.subr.mxu0 %v3635_v29 }
0x1633   :  { %4362 = vmatpush3.msra.mxu0 %v3635_v29 }
0x1634   :  { %4363 = vmatprep.subr.mxu0 %v3634_v61 }
0x1635   :  { %4364 = vmatpush3.msra.mxu0 %v3634_v61 }
0x1636   :  { %4365 = vmatprep.subr.mxu0 %v3633_v43 }
0x1637   :  { %4366 = vmatpush3.msra.mxu0 %v3633_v43 }
0x1638   :  { %4367 = vmatprep.subr.mxu0 %v3632_v44 }
0x1639   :  { %4368 = vmatpush3.msra.mxu0 %v3632_v44 }
0x163a   :  { %4369 = vmatprep.subr.mxu0 %v3631_v47 }
0x163b   :  { %4370 = vmatpush3.msra.mxu0 %v3631_v47 }
0x163c   :  { %4371 = vmatprep.subr.mxu0 %v3630_v48 }
0x163d   :  { %4372 = vmatpush3.msra.mxu0 %v3630_v48 }
0x16de   :  { %v4329_v15 = vpop.f32.mrf.mxu0 }
0x16df   :  { %v3576_v62 = vadd.f32 %v4329_v15, %v3935_v46 }
0x16e0   :  { %v3570_v45 = vpop.f32.mrf.mxu0 }
0x16e1   :  { %v3571_v63 = vadd.f32 %v3935_v46, %v3570_v45  ;;  %v3582_v0 = vadd.f32 %v3576_v62, %v4937_v51 }
0x16e3   :  { %v3586_v1 = vsel %vm107_vm0, %v3582_v0, 0.0  ;;  %v3581_v60 = vadd.f32 %v3571_v63, %v4933_v49 }
0x16e4   :  { %3587 = vadd.xlane.f32.xlu1 %v3586_v1 }
0x16e5   :  { %v3583_v3 = vsel %vm107_vm0, %v3581_v60, 0.0 }
0x16e6   :  { %3584 = vadd.xlane.f32.xlu0 %v3583_v3 }
0x176d   :  { %v3588_v55 = vpop.xlane.xlu1 %3587 }
0x176e   :  { %v3590_v4 = vmul.f32 0.03125, %v3588_v55 }
0x176f   :  { %v3585_v6 = vpop.xlane.xlu0 %3584 }
0x1770   :  { %v3589_v7 = vmul.f32 0.03125, %v3585_v6  ;;  %v5163_v8 = vsub.f32 %v3582_v0, %v3590_v4 }
0x1772   :  { %v5165_v16 = vsub.f32 %v3581_v60, %v3589_v7  ;;  %v3594_v49 = vmul.f32 %v5163_v8, %v5163_v8 }
0x1774   :  { %v3593_v9 = vmul.f32 %v5165_v16, %v5165_v16  ;;  %v3598_v11 = vsel %vm107_vm0, %v3594_v49, 0.0 }
0x1776   :  { %v3595_v51 = vsel %vm107_vm0, %v3593_v9, 0.0 }
0x1777   :  { %3596 = vadd.xlane.f32.xlu0 %v3595_v51 }
0x177b   :  { %3599 = vadd.xlane.f32.xlu0 %v3598_v11 }
0x1800   :  { %v3597_v31 = vpop.xlane.xlu0 %3596 }
0x1801   :  { %v3601_v32 = vmul.f32 0.03125, %v3597_v31 }
0x1803   :  { %v3603_v30 = vadd.f32 1e-05, %v3601_v32 }
0x1804   :  { %v3600_v24 = vpop.xlane.xlu0 %3599 }
0x1805   :  { %4455 = vrsqrt.f32 %v3603_v30  ;;  %v3602_v33 = vmul.f32 0.03125, %v3600_v24 }
0x1807   :  { %v3604_v34 = vadd.f32 1e-05, %v3602_v33 }
0x1809   :  { %4457 = vrsqrt.f32 %v3604_v34 }
0x1812   :  { %v4456_v35 = vpop.eup %4455 }
0x1813   :  { %v3607_v37 = vmul.f32 %v4456_v35, %v5165_v16 }
0x1815   :  { %v3615_v39 = vmul.f32 %v3938_v36, %v3607_v37 }
0x1816   :  { %v4458_v19 = vpop.eup %4457 }
0x1817   :  { %v3608_v41 = vmul.f32 %v4458_v19, %v5163_v8  ;;  %v3623_v38 = vadd.f32 %v3939_v17, %v3615_v39 }
0x1819   :  { %v3616_v40 = vmul.f32 %v3938_v36, %v3608_v41  ;;  %4338 = vmatprep.mubr.msk.f32.mxu1 %vm107_vm0, %v3623_v38 }
0x181b   :  { %v3624_v42 = vadd.f32 %v3939_v17, %v3616_v40 }
0x181d   :  { %4339 = vmatmul.mubr.msk.f32.vlgmr.msra.gmra.mxu1 %vm107_vm0, %v3624_v42 }
0x18dd   :  { %v4340_v50 = vpop.f32.mrf.mxu1 }
0x18de   :  { %v3731_v52 = vadd.f32 %v4340_v50, %v3940_v20 }
0x18df   :  { %v3725_v58 = vpop.f32.mrf.mxu1 }
0x18e0   :  { %v3726_v56 = vadd.f32 %v3940_v20, %v3725_v58  ;;  %v3735_v59 = vmax.f32 %v3731_v52, 0.0 }
0x18e2   :  { %v3734_v53 = vmax.f32 %v3726_v56, 0.0 }
0x18e4   :  { %4373 = vmatprep.mubr.f32.mxu0 %v3734_v53 }
0x18e5   :  { %4374 = vmatmul.mubr.f32.vlgmr.msra.gmra.mxu0 %v3735_v59 }
0x19a5   :  { %v4375_v18 = vpop.f32.mrf.mxu0 }
0x19a6   :  { %v3814_v46 = vadd.f32 %v4375_v18, %v3943_v54 }
0x19a7   :  { %v3808_v15 = vpop.f32.mrf.mxu0 }
0x19a8   :  { %v3809_v62 = vadd.f32 %v3943_v54, %v3808_v15  ;;  %v3820_v45 = vadd.f32 %v3814_v46, %v3624_v42 }
0x19aa   :  { %v3824_v63 = vsel %vm107_vm0, %v3820_v45, 0.0  ;;  %v3819_v0 = vadd.f32 %v3809_v62, %v3623_v38 }
0x19ab   :  { %3825 = vadd.xlane.f32.xlu1 %v3824_v63 }
0x19ac   :  { %v3821_v1 = vsel %vm107_vm0, %v3819_v0, 0.0 }
0x19ad   :  { %3822 = vadd.xlane.f32.xlu0 %v3821_v1 }
0x1a34   :  { %v3826_v60 = vpop.xlane.xlu1 %3825 }
0x1a35   :  { %v3828_v3 = vmul.f32 0.03125, %v3826_v60 }
0x1a36   :  { %v3823_v55 = vpop.xlane.xlu0 %3822 }
0x1a37   :  { %v3830_v4 = vsub.f32 %v3820_v45, %v3828_v3  ;;  %v3827_v6 = vmul.f32 0.03125, %v3823_v55 }
0x1a39   :  { %v3829_v7 = vsub.f32 %v3819_v0, %v3827_v6  ;;  %v3832_v8 = vmul.f32 %v3830_v4, %v3830_v4 }
0x1a3b   :  { %v3836_v16 = vsel %vm107_vm0, %v3832_v8, 0.0  ;;  %v3831_v9 = vmul.f32 %v3829_v7, %v3829_v7 }
0x1a3c   :  { %3837 = vadd.xlane.f32.xlu1 %v3836_v16 }
0x1a3d   :  { %v3833_v51 = vsel %vm107_vm0, %v3831_v9, 0.0 }
0x1a3e   :  { %3834 = vadd.xlane.f32.xlu0 %v3833_v51 }
0x1ac5   :  { %v3838_v49 = vpop.xlane.xlu1 %3837 }
0x1ac6   :  { %v3840_v11 = vmul.f32 0.03125, %v3838_v49 }
0x1ac7   :  { %v3835_v12 = vpop.xlane.xlu0 %3834 }
0x1ac8   :  { %v3842_v13 = vadd.f32 1e-05, %v3840_v11  ;;  %v3839_v21 = vmul.f32 0.03125, %v3835_v12 }
0x1aca   :  { %4459 = vrsqrt.f32 %v3842_v13  ;;  %v3841_v23 = vadd.f32 1e-05, %v3839_v21 }
0x1acc   :  { %4461 = vrsqrt.f32 %v3841_v23 }
0x1ad7   :  { %v4460_v22 = vpop.eup %4459 }
0x1ad8   :  { %v3846_v14 = vmul.f32 %v4460_v22, %v3830_v4 }
0x1ad9   :  { %v4462_v57 = vpop.eup %4461 }
0x1ada   :  { %v3854_v26 = vmul.f32 %v3944_v25, %v3846_v14  ;;  %v3845_v27 = vmul.f32 %v4462_v57, %v3829_v7 }
0x1adc   :  { %v3862_v28 = vadd.f32 %v3945_v10, %v3854_v26  ;;  %v3853_v5 = vmul.f32 %v3944_v25, %v3845_v27 }
0x1ade   :  { %3864 = vst.msk [vmem:[%s5287_s23 + $0x8] sm:$0xff] %vm107_vm0, %v3862_v28  ;;  %v3861_v2 = vadd.f32 %v3945_v10, %v3853_v5 }
0x1ae0   :  { %3863 = vst.msk [vmem:[%s5287_s23] sm:$0xff] %vm107_vm0, %v3861_v2 }
0x1ae1   :  { %3869 = vsyncpa [#allocation3], 1 }

</bundles_post_ra>
